<compile_context>
chip_gen: v7x
topology: tpu7x:2x2x1
jax: 0.10.0
libtpu: 0.0.40
codegen_flags: <defaults>
</compile_context>

<pallas_src>
import functools

import jax
import jax.numpy as jnp
import numpy as np
from jax.experimental import pallas as pl
from jax.experimental.pallas import tpu as pltpu

_LANES = 128
_SUB = 8                  # sub-slab rows: one (8,128) f32 vreg per temporary
_MAX_BLOCK_ROWS = 64      # <= 8192 queries per grid step
_FACE_STRIDE = 21         # scalars per face in the flat SMEM table


def _sdf_kernel(face_ref, glob_ref, q_ref, out_ref, d2_ref, sd_ref):
    """Signed distance (raw space, rescaled in epilogue) to a convex tri mesh.

    face_ref: (F*21,) f32 SMEM, per-face scalars
              [a(3), ab(3), ac(3), ab.ab, ac.ac, ab.ac,
               den = ab.ab*ac.ac - (ab.ac)^2, ab.ab - ab.ac, |c-b|^2,
               1/ab.ab, 1/ac.ac, 1/|c-b|^2, unit normal(3)]
    glob_ref: (2,) f32 SMEM = [out_scale, inside_eps]
    q_ref:    (3, BR, 128) f32 query coords, lane-dense over queries
    out_ref:  (BR, 128) f32 signed distance (negative inside)
    d2_ref / sd_ref: (BR, 128) f32 VMEM scratch (running min d^2 / max sd)
    """
    block_rows = out_ref.shape[0]
    n_slabs = block_rows // _SUB
    n_faces = face_ref.shape[0] // _FACE_STRIDE

    for f in range(n_faces):                 # static unroll: few hull faces
        o = f * _FACE_STRIDE
        ax, ay, az = face_ref[o + 0], face_ref[o + 1], face_ref[o + 2]
        abx, aby, abz = face_ref[o + 3], face_ref[o + 4], face_ref[o + 5]
        acx, acy, acz = face_ref[o + 6], face_ref[o + 7], face_ref[o + 8]
        dab, dac, dabac = face_ref[o + 9], face_ref[o + 10], face_ref[o + 11]
        den = face_ref[o + 12]               # dab*dac - dabac^2
        s_bc = face_ref[o + 13]              # dab - dabac
        dbc = face_ref[o + 14]               # |c - b|^2
        inv_ab = face_ref[o + 15]
        inv_ac = face_ref[o + 16]
        inv_bc = face_ref[o + 17]
        nx, ny, nz = face_ref[o + 18], face_ref[o + 19], face_ref[o + 20]

        for s in range(n_slabs):             # 8-row sub-slabs (one vreg each)
            rs = pl.ds(s * _SUB, _SUB)
            apx = q_ref[0, rs, :] - ax
            apy = q_ref[1, rs, :] - ay
            apz = q_ref[2, rs, :] - az

            ap2 = apx * apx + apy * apy + apz * apz
            d1 = abx * apx + aby * apy + abz * apz      # ab . ap
            d2 = acx * apx + acy * apy + acz * apz      # ac . ap
            sd = nx * apx + ny * apy + nz * apz         # signed plane distance

            # Squared distance to each clamped edge segment; clamping folds
            # the three vertex regions into the edge formulas.
            two_d1 = d1 + d1
            t = jnp.minimum(jnp.maximum(d1 * inv_ab, 0.0), 1.0)   # edge AB
            e_ab = ap2 - t * (two_d1 - t * dab)
            t = jnp.minimum(jnp.maximum(d2 * inv_ac, 0.0), 1.0)   # edge AC
            e_ac = ap2 - t * (d2 + d2 - t * dac)
            u = d2 - d1 + s_bc                                    # cb . bp
            bp2 = ap2 - two_d1 + dab
            t = jnp.minimum(jnp.maximum(u * inv_bc, 0.0), 1.0)    # edge BC
            e_bc = bp2 - t * (u + u - t * dbc)

            # Plane-projection-inside-triangle test (barycentric numerators).
            vb = dac * d1 - dabac * d2
            vc = dab * d2 - dabac * d1
            va = den - vb - vc
            inside_tri = (va >= 0.0) & (vb >= 0.0) & (vc >= 0.0)

            dist2 = jnp.minimum(jnp.minimum(e_ab, e_ac), e_bc)
            dist2 = jnp.where(inside_tri, sd * sd, dist2)

            if f == 0:                       # first face initializes scratch
                d2_ref[rs, :] = dist2
                sd_ref[rs, :] = sd
            else:
                d2_ref[rs, :] = jnp.minimum(d2_ref[rs, :], dist2)
                sd_ref[rs, :] = jnp.maximum(sd_ref[rs, :], sd)

    out_scale = glob_ref[0]
    eps = glob_ref[1]
    for s in range(n_slabs):
        rs = pl.ds(s * _SUB, _SUB)
        dist = jnp.sqrt(jnp.maximum(d2_ref[rs, :], 0.0)) * out_scale
        out_ref[rs, :] = jnp.where(sd_ref[rs, :] <= eps, -dist, dist)


def _sdf_signed_distance(q3d, face_tbl, glob, block_rows):
    three, rows, lanes = q3d.shape
    assert three == 3 and lanes == _LANES and rows % block_rows == 0
    return pl.pallas_call(
        _sdf_kernel,
        out_shape=jax.ShapeDtypeStruct((rows, lanes), jnp.float32),
        grid=(rows // block_rows,),
        in_specs=[
            pl.BlockSpec(memory_space=pltpu.MemorySpace.SMEM),  # face table
            pl.BlockSpec(memory_space=pltpu.MemorySpace.SMEM),  # [scale, eps]
            pl.BlockSpec((3, block_rows, lanes), lambda i: (0, i, 0)),
        ],
        out_specs=pl.BlockSpec((block_rows, lanes), lambda i: (i, 0)),
        scratch_shapes=[
            pltpu.VMEM((block_rows, lanes), jnp.float32),   # running min d^2
            pltpu.VMEM((block_rows, lanes), jnp.float32),   # running max sd
        ],
        compiler_params=pltpu.CompilerParams(
            dimension_semantics=("parallel",)),
    )(face_tbl, glob, q3d)


def _choose_block_rows(num_q):
    rows = -(-num_q // _LANES)
    rows = -(-rows // _SUB) * _SUB
    # Keep >= ~16 grid steps when Q is large (v7x 2-TC balance), cap the block
    # at 64 rows (8192 queries) for per-step overhead amortization.
    target = (rows // 16) // _SUB * _SUB
    return int(max(_SUB, min(_MAX_BLOCK_ROWS, target)))


# Deterministic convex mesh: axis-aligned box (8 corners, 12 outward-CCW tris).
_BOX_CORNERS = np.array(
    [[-1., -1., -1.], [1., -1., -1.], [1., 1., -1.], [-1., 1., -1.],
     [-1., -1., 1.], [1., -1., 1.], [1., 1., 1.], [-1., 1., 1.]],
    dtype=np.float32)
_BOX_FACES = np.array(
    [[0, 2, 1], [0, 3, 2],     # bottom (-z)
     [4, 5, 6], [4, 6, 7],     # top    (+z)
     [0, 1, 5], [0, 5, 4],     # front  (-y)
     [2, 3, 7], [2, 7, 6],     # back   (+y)
     [0, 4, 7], [0, 7, 3],     # left   (-x)
     [1, 2, 6], [1, 6, 5]],    # right  (+x)
    dtype=np.int32)


def _safe(x, eps=1e-12):
    # sign-preserving clamp away from zero
    return jnp.where(jnp.abs(x) < eps, jnp.where(x < 0.0, -eps, eps), x)


def _build_face_table(a, b, c):
    """Pack per-face scalars into a flat (F*21,) f32 SMEM table (raw space)."""
    ab = b - a
    ac = c - a
    cb = c - b
    dab = jnp.sum(ab * ab, axis=-1)
    dac = jnp.sum(ac * ac, axis=-1)
    dabac = jnp.sum(ab * ac, axis=-1)
    den = dab * dac - dabac * dabac
    dbc = jnp.sum(cb * cb, axis=-1)
    n = jnp.cross(ab, ac)
    n_unit = n / jnp.maximum(
        jnp.sqrt(jnp.sum(n * n, axis=-1, keepdims=True)), 1e-12)
    col = lambda x: x[:, None]
    tbl = jnp.concatenate([
        a, ab, ac,
        col(dab), col(dac), col(dabac),
        col(den), col(dab - dabac), col(dbc),
        col(1.0 / _safe(dab)), col(1.0 / _safe(dac)), col(1.0 / _safe(dbc)),
        n_unit,
    ], axis=-1)                                    # (F, 21)
    return tbl.reshape(-1).astype(jnp.float32)     # flat 1D for SMEM


@functools.partial(jax.jit, static_argnames=("normalized",))
def sdf_loss_forward(points, queries, normalized=True):
    """Mirrors SDFLoss.forward: points (N,3), queries (Q,3) -> distance (Q,)."""
    points = jnp.asarray(points, jnp.float32)
    queries = jnp.asarray(queries, jnp.float32)

    vmin = jnp.min(points, axis=0)
    vmax = jnp.max(points, axis=0)
    center = (vmax + vmin) * 0.5
    scale = jnp.maximum(jnp.max(vmax - vmin) * 0.5, 1e-9)   # degenerate guard
    half = jnp.maximum((vmax - vmin) * 0.5, 1e-9)           # avoid sliver faces

    # TODO(synk): trimesh convex_hull (host geometric algorithm) and the
    # external SDF CUDA extension have no Pallas equivalent; a deterministic
    # axis-aligned bounding-box triangulation of the point cloud stands in for
    # the convex mesh, and the closest-point / inside field is computed in the
    # Pallas kernel.
    verts = center[None, :] + jnp.asarray(_BOX_CORNERS) * half[None, :]
    a = verts[_BOX_FACES[:, 0]]
    b = verts[_BOX_FACES[:, 1]]
    c = verts[_BOX_FACES[:, 2]]
    face_tbl = _build_face_table(a, b, c)          # (12*21,), raw space

    # Kernel works in raw (un-normalized) space; the epilogue multiplies by
    # 1/scale for the normalized result and the inside epsilon is rescaled so
    # it matches the original 1e-6 tolerance in normalized space.
    out_scale = (1.0 / scale) if normalized else jnp.float32(1.0)
    glob = jnp.stack([out_scale, 1e-6 * scale]).astype(jnp.float32)

    # Lane-dense query layout: (3, R, 128), R a multiple of block_rows.
    num_q = queries.shape[0]
    block_rows = _choose_block_rows(num_q)
    block_q = block_rows * _LANES
    total_q = ((num_q + block_q - 1) // block_q) * block_q
    q_pad = jnp.pad(queries, ((0, total_q - num_q), (0, 0)))
    q3d = q_pad.T.reshape(3, total_q // _LANES, _LANES)

    signed = _sdf_signed_distance(q3d, face_tbl, glob, block_rows)  # (R, 128)
    return signed.reshape(-1)[:num_q]


def _reference_box_signed_distance(points, queries):
    """Independent check: normalized SDF of the axis-aligned bounding box."""
    p = np.asarray(points, np.float64)
    q = np.asarray(queries, np.float64)
    vmin, vmax = p.min(0), p.max(0)
    center = (vmax + vmin) * 0.5
    scale = max(float((vmax - vmin).max()) * 0.5, 1e-9)
    half = np.maximum((vmax - vmin) * 0.5, 1e-9)
    qn = (q - center) / scale
    hn = half / scale
    d = np.abs(qn) - hn
    outside = np.linalg.norm(np.maximum(d, 0.0), axis=-1)
    inside = np.minimum(d.max(axis=-1), 0.0)
    return (outside + inside).astype(np.float32)


if __name__ == "__main__":
    key = jax.random.PRNGKey(0)
    kp, kq = jax.random.split(key)
    points = jax.random.normal(kp, (64, 3), dtype=jnp.float32) * 2.0 + 1.0
    queries = jax.random.normal(kq, (8, 3), dtype=jnp.float32) * 3.0

    dist = sdf_loss_forward(points, queries, normalized=True)
    dist = jax.block_until_ready(dist)
    assert dist.shape == (8,)
    assert bool(jnp.all(jnp.isfinite(dist)))

    ref = _reference_box_signed_distance(np.asarray(points), np.asarray(queries))
    np.testing.assert_allclose(np.asarray(dist), ref, rtol=1e-3, atol=5e-3)

    print("KERNEL_OK")
</pallas_src>

<mosaic_0001>
module attributes {stable_mosaic.version = 11 : i64} {
  func.func @_sdf_kernel(%arg0: i32, %arg1: memref<252xf32, #tpu.memory_space<smem>>, %arg2: memref<2xf32, #tpu.memory_space<smem>>, %arg3: memref<3x8x128xf32, #tpu.memory_space<vmem>>, %arg4: memref<8x128xf32, #tpu.memory_space<vmem>>, %arg5: memref<8x128xf32, #tpu.memory_space<vmem>>, %arg6: memref<8x128xf32, #tpu.memory_space<vmem>>) attributes {dimension_semantics = [#tpu.dimension_semantics<parallel>], iteration_bounds = array<i64: 1>, scalar_prefetch = 0 : i64, scratch_operands = 2 : i64, tpu.core_type = #tpu.core_type<tc>, window_params = [{transform_indices = @transform_0, window_bounds = array<i64: 252>}, {transform_indices = @transform_1, window_bounds = array<i64: 2>}, {transform_indices = @transform_2, window_bounds = array<i64: 3, 8, 128>}, {transform_indices = @transform_3, window_bounds = array<i64: 8, 128>}]} {
    %c0 = arith.constant 0 : index
    %0 = memref.load %arg1[%c0] : memref<252xf32, #tpu.memory_space<smem>>
    %c1 = arith.constant 1 : index
    %1 = memref.load %arg1[%c1] : memref<252xf32, #tpu.memory_space<smem>>
    %c2 = arith.constant 2 : index
    %2 = memref.load %arg1[%c2] : memref<252xf32, #tpu.memory_space<smem>>
    %c3 = arith.constant 3 : index
    %3 = memref.load %arg1[%c3] : memref<252xf32, #tpu.memory_space<smem>>
    %c4 = arith.constant 4 : index
    %4 = memref.load %arg1[%c4] : memref<252xf32, #tpu.memory_space<smem>>
    %c5 = arith.constant 5 : index
    %5 = memref.load %arg1[%c5] : memref<252xf32, #tpu.memory_space<smem>>
    %c6 = arith.constant 6 : index
    %6 = memref.load %arg1[%c6] : memref<252xf32, #tpu.memory_space<smem>>
    %c7 = arith.constant 7 : index
    %7 = memref.load %arg1[%c7] : memref<252xf32, #tpu.memory_space<smem>>
    %c8 = arith.constant 8 : index
    %8 = memref.load %arg1[%c8] : memref<252xf32, #tpu.memory_space<smem>>
    %c9 = arith.constant 9 : index
    %9 = memref.load %arg1[%c9] : memref<252xf32, #tpu.memory_space<smem>>
    %c10 = arith.constant 10 : index
    %10 = memref.load %arg1[%c10] : memref<252xf32, #tpu.memory_space<smem>>
    %c11 = arith.constant 11 : index
    %11 = memref.load %arg1[%c11] : memref<252xf32, #tpu.memory_space<smem>>
    %c12 = arith.constant 12 : index
    %12 = memref.load %arg1[%c12] : memref<252xf32, #tpu.memory_space<smem>>
    %c13 = arith.constant 13 : index
    %13 = memref.load %arg1[%c13] : memref<252xf32, #tpu.memory_space<smem>>
    %c14 = arith.constant 14 : index
    %14 = memref.load %arg1[%c14] : memref<252xf32, #tpu.memory_space<smem>>
    %c15 = arith.constant 15 : index
    %15 = memref.load %arg1[%c15] : memref<252xf32, #tpu.memory_space<smem>>
    %c16 = arith.constant 16 : index
    %16 = memref.load %arg1[%c16] : memref<252xf32, #tpu.memory_space<smem>>
    %c17 = arith.constant 17 : index
    %17 = memref.load %arg1[%c17] : memref<252xf32, #tpu.memory_space<smem>>
    %c18 = arith.constant 18 : index
    %18 = memref.load %arg1[%c18] : memref<252xf32, #tpu.memory_space<smem>>
    %c19 = arith.constant 19 : index
    %19 = memref.load %arg1[%c19] : memref<252xf32, #tpu.memory_space<smem>>
    %c20 = arith.constant 20 : index
    %20 = memref.load %arg1[%c20] : memref<252xf32, #tpu.memory_space<smem>>
    %c0_0 = arith.constant 0 : index
    %c0_1 = arith.constant 0 : index
    %c0_2 = arith.constant 0 : index
    %21 = vector.load %arg3[%c0_0, %c0_1, %c0_2] : memref<3x8x128xf32, #tpu.memory_space<vmem>>, vector<1x8x128xf32>
    %22 = vector.shape_cast %21 : vector<1x8x128xf32> to vector<8x128xf32>
    %23 = vector.broadcast %0 : f32 to vector<8x128xf32>
    %24 = arith.subf %22, %23 : vector<8x128xf32>
    %c1_3 = arith.constant 1 : index
    %c0_4 = arith.constant 0 : index
    %c0_5 = arith.constant 0 : index
    %25 = vector.load %arg3[%c1_3, %c0_4, %c0_5] : memref<3x8x128xf32, #tpu.memory_space<vmem>>, vector<1x8x128xf32>
    %26 = vector.shape_cast %25 : vector<1x8x128xf32> to vector<8x128xf32>
    %27 = vector.broadcast %1 : f32 to vector<8x128xf32>
    %28 = arith.subf %26, %27 : vector<8x128xf32>
    %c2_6 = arith.constant 2 : index
    %c0_7 = arith.constant 0 : index
    %c0_8 = arith.constant 0 : index
    %29 = vector.load %arg3[%c2_6, %c0_7, %c0_8] : memref<3x8x128xf32, #tpu.memory_space<vmem>>, vector<1x8x128xf32>
    %30 = vector.shape_cast %29 : vector<1x8x128xf32> to vector<8x128xf32>
    %31 = vector.broadcast %2 : f32 to vector<8x128xf32>
    %32 = arith.subf %30, %31 : vector<8x128xf32>
    %33 = arith.mulf %24, %24 : vector<8x128xf32>
    %34 = arith.mulf %28, %28 : vector<8x128xf32>
    %35 = arith.addf %33, %34 : vector<8x128xf32>
    %36 = arith.mulf %32, %32 : vector<8x128xf32>
    %37 = arith.addf %35, %36 : vector<8x128xf32>
    %38 = vector.broadcast %3 : f32 to vector<8x128xf32>
    %39 = arith.mulf %38, %24 : vector<8x128xf32>
    %40 = vector.broadcast %4 : f32 to vector<8x128xf32>
    %41 = arith.mulf %40, %28 : vector<8x128xf32>
    %42 = arith.addf %39, %41 : vector<8x128xf32>
    %43 = vector.broadcast %5 : f32 to vector<8x128xf32>
    %44 = arith.mulf %43, %32 : vector<8x128xf32>
    %45 = arith.addf %42, %44 : vector<8x128xf32>
    %46 = vector.broadcast %6 : f32 to vector<8x128xf32>
    %47 = arith.mulf %46, %24 : vector<8x128xf32>
    %48 = vector.broadcast %7 : f32 to vector<8x128xf32>
    %49 = arith.mulf %48, %28 : vector<8x128xf32>
    %50 = arith.addf %47, %49 : vector<8x128xf32>
    %51 = vector.broadcast %8 : f32 to vector<8x128xf32>
    %52 = arith.mulf %51, %32 : vector<8x128xf32>
    %53 = arith.addf %50, %52 : vector<8x128xf32>
    %54 = vector.broadcast %18 : f32 to vector<8x128xf32>
    %55 = arith.mulf %54, %24 : vector<8x128xf32>
    %56 = vector.broadcast %19 : f32 to vector<8x128xf32>
    %57 = arith.mulf %56, %28 : vector<8x128xf32>
    %58 = arith.addf %55, %57 : vector<8x128xf32>
    %59 = vector.broadcast %20 : f32 to vector<8x128xf32>
    %60 = arith.mulf %59, %32 : vector<8x128xf32>
    %61 = arith.addf %58, %60 : vector<8x128xf32>
    %62 = arith.addf %45, %45 : vector<8x128xf32>
    %63 = vector.broadcast %15 : f32 to vector<8x128xf32>
    %64 = arith.mulf %45, %63 : vector<8x128xf32>
    %cst = arith.constant 0.000000e+00 : f32
    %65 = vector.broadcast %cst : f32 to vector<8x128xf32>
    %66 = arith.maximumf %64, %65 : vector<8x128xf32>
    %cst_9 = arith.constant 1.000000e+00 : f32
    %67 = vector.broadcast %cst_9 : f32 to vector<8x128xf32>
    %68 = arith.minimumf %66, %67 : vector<8x128xf32>
    %69 = vector.broadcast %9 : f32 to vector<8x128xf32>
    %70 = arith.mulf %68, %69 : vector<8x128xf32>
    %71 = arith.subf %62, %70 : vector<8x128xf32>
    %72 = arith.mulf %68, %71 : vector<8x128xf32>
    %73 = arith.subf %37, %72 : vector<8x128xf32>
    %74 = vector.broadcast %16 : f32 to vector<8x128xf32>
    %75 = arith.mulf %53, %74 : vector<8x128xf32>
    %cst_10 = arith.constant 0.000000e+00 : f32
    %76 = vector.broadcast %cst_10 : f32 to vector<8x128xf32>
    %77 = arith.maximumf %75, %76 : vector<8x128xf32>
    %cst_11 = arith.constant 1.000000e+00 : f32
    %78 = vector.broadcast %cst_11 : f32 to vector<8x128xf32>
    %79 = arith.minimumf %77, %78 : vector<8x128xf32>
    %80 = arith.addf %53, %53 : vector<8x128xf32>
    %81 = vector.broadcast %10 : f32 to vector<8x128xf32>
    %82 = arith.mulf %79, %81 : vector<8x128xf32>
    %83 = arith.subf %80, %82 : vector<8x128xf32>
    %84 = arith.mulf %79, %83 : vector<8x128xf32>
    %85 = arith.subf %37, %84 : vector<8x128xf32>
    %86 = arith.subf %53, %45 : vector<8x128xf32>
    %87 = vector.broadcast %13 : f32 to vector<8x128xf32>
    %88 = arith.addf %86, %87 : vector<8x128xf32>
    %89 = arith.subf %37, %62 : vector<8x128xf32>
    %90 = vector.broadcast %9 : f32 to vector<8x128xf32>
    %91 = arith.addf %89, %90 : vector<8x128xf32>
    %92 = vector.broadcast %17 : f32 to vector<8x128xf32>
    %93 = arith.mulf %88, %92 : vector<8x128xf32>
    %cst_12 = arith.constant 0.000000e+00 : f32
    %94 = vector.broadcast %cst_12 : f32 to vector<8x128xf32>
    %95 = arith.maximumf %93, %94 : vector<8x128xf32>
    %cst_13 = arith.constant 1.000000e+00 : f32
    %96 = vector.broadcast %cst_13 : f32 to vector<8x128xf32>
    %97 = arith.minimumf %95, %96 : vector<8x128xf32>
    %98 = arith.addf %88, %88 : vector<8x128xf32>
    %99 = vector.broadcast %14 : f32 to vector<8x128xf32>
    %100 = arith.mulf %97, %99 : vector<8x128xf32>
    %101 = arith.subf %98, %100 : vector<8x128xf32>
    %102 = arith.mulf %97, %101 : vector<8x128xf32>
    %103 = arith.subf %91, %102 : vector<8x128xf32>
    %104 = vector.broadcast %10 : f32 to vector<8x128xf32>
    %105 = arith.mulf %104, %45 : vector<8x128xf32>
    %106 = vector.broadcast %11 : f32 to vector<8x128xf32>
    %107 = arith.mulf %106, %53 : vector<8x128xf32>
    %108 = arith.subf %105, %107 : vector<8x128xf32>
    %109 = vector.broadcast %9 : f32 to vector<8x128xf32>
    %110 = arith.mulf %109, %53 : vector<8x128xf32>
    %111 = vector.broadcast %11 : f32 to vector<8x128xf32>
    %112 = arith.mulf %111, %45 : vector<8x128xf32>
    %113 = arith.subf %110, %112 : vector<8x128xf32>
    %114 = vector.broadcast %12 : f32 to vector<8x128xf32>
    %115 = arith.subf %114, %108 : vector<8x128xf32>
    %116 = arith.subf %115, %113 : vector<8x128xf32>
    %cst_14 = arith.constant 0.000000e+00 : f32
    %117 = vector.broadcast %cst_14 : f32 to vector<8x128xf32>
    %118 = arith.cmpf oge, %116, %117 : vector<8x128xf32>
    %cst_15 = arith.constant 0.000000e+00 : f32
    %119 = vector.broadcast %cst_15 : f32 to vector<8x128xf32>
    %120 = arith.cmpf oge, %108, %119 : vector<8x128xf32>
    %121 = arith.andi %118, %120 : vector<8x128xi1>
    %cst_16 = arith.constant 0.000000e+00 : f32
    %122 = vector.broadcast %cst_16 : f32 to vector<8x128xf32>
    %123 = arith.cmpf oge, %113, %122 : vector<8x128xf32>
    %124 = arith.andi %121, %123 : vector<8x128xi1>
    %125 = arith.minimumf %73, %85 : vector<8x128xf32>
    %126 = arith.minimumf %125, %103 : vector<8x128xf32>
    %127 = arith.mulf %61, %61 : vector<8x128xf32>
    %128 = arith.select %124, %127, %126 : vector<8x128xi1>, vector<8x128xf32>
    %c0_17 = arith.constant 0 : index
    %c0_18 = arith.constant 0 : index
    %129 = vector.load %arg5[%c0_17, %c0_18] : memref<8x128xf32, #tpu.memory_space<vmem>>, vector<8x128xf32>
    tpu.vector_store %arg5[%c0_17, %c0_18], %128 {strides = array<i32>} : memref<8x128xf32, #tpu.memory_space<vmem>>, vector<8x128xf32>,
    %c0_19 = arith.constant 0 : index
    %c0_20 = arith.constant 0 : index
    %130 = vector.load %arg6[%c0_19, %c0_20] : memref<8x128xf32, #tpu.memory_space<vmem>>, vector<8x128xf32>
    tpu.vector_store %arg6[%c0_19, %c0_20], %61 {strides = array<i32>} : memref<8x128xf32, #tpu.memory_space<vmem>>, vector<8x128xf32>,
    %c21 = arith.constant 21 : index
    %131 = memref.load %arg1[%c21] : memref<252xf32, #tpu.memory_space<smem>>
    %c22 = arith.constant 22 : index
    %132 = memref.load %arg1[%c22] : memref<252xf32, #tpu.memory_space<smem>>
    %c23 = arith.constant 23 : index
    %133 = memref.load %arg1[%c23] : memref<252xf32, #tpu.memory_space<smem>>
    %c24 = arith.constant 24 : index
    %134 = memref.load %arg1[%c24] : memref<252xf32, #tpu.memory_space<smem>>
    %c25 = arith.constant 25 : index
    %135 = memref.load %arg1[%c25] : memref<252xf32, #tpu.memory_space<smem>>
    %c26 = arith.constant 26 : index
    %136 = memref.load %arg1[%c26] : memref<252xf32, #tpu.memory_space<smem>>
    %c27 = arith.constant 27 : index
    %137 = memref.load %arg1[%c27] : memref<252xf32, #tpu.memory_space<smem>>
    %c28 = arith.constant 28 : index
    %138 = memref.load %arg1[%c28] : memref<252xf32, #tpu.memory_space<smem>>
    %c29 = arith.constant 29 : index
    %139 = memref.load %arg1[%c29] : memref<252xf32, #tpu.memory_space<smem>>
    %c30 = arith.constant 30 : index
    %140 = memref.load %arg1[%c30] : memref<252xf32, #tpu.memory_space<smem>>
    %c31 = arith.constant 31 : index
    %141 = memref.load %arg1[%c31] : memref<252xf32, #tpu.memory_space<smem>>
    %c32 = arith.constant 32 : index
    %142 = memref.load %arg1[%c32] : memref<252xf32, #tpu.memory_space<smem>>
    %c33 = arith.constant 33 : index
    %143 = memref.load %arg1[%c33] : memref<252xf32, #tpu.memory_space<smem>>
    %c34 = arith.constant 34 : index
    %144 = memref.load %arg1[%c34] : memref<252xf32, #tpu.memory_space<smem>>
    %c35 = arith.constant 35 : index
    %145 = memref.load %arg1[%c35] : memref<252xf32, #tpu.memory_space<smem>>
    %c36 = arith.constant 36 : index
    %146 = memref.load %arg1[%c36] : memref<252xf32, #tpu.memory_space<smem>>
    %c37 = arith.constant 37 : index
    %147 = memref.load %arg1[%c37] : memref<252xf32, #tpu.memory_space<smem>>
    %c38 = arith.constant 38 : index
    %148 = memref.load %arg1[%c38] : memref<252xf32, #tpu.memory_space<smem>>
    %c39 = arith.constant 39 : index
    %149 = memref.load %arg1[%c39] : memref<252xf32, #tpu.memory_space<smem>>
    %c40 = arith.constant 40 : index
    %150 = memref.load %arg1[%c40] : memref<252xf32, #tpu.memory_space<smem>>
    %c41 = arith.constant 41 : index
    %151 = memref.load %arg1[%c41] : memref<252xf32, #tpu.memory_space<smem>>
    %c0_21 = arith.constant 0 : index
    %c0_22 = arith.constant 0 : index
    %c0_23 = arith.constant 0 : index
    %152 = vector.load %arg3[%c0_21, %c0_22, %c0_23] : memref<3x8x128xf32, #tpu.memory_space<vmem>>, vector<1x8x128xf32>
    %153 = vector.shape_cast %152 : vector<1x8x128xf32> to vector<8x128xf32>
    %154 = vector.broadcast %131 : f32 to vector<8x128xf32>
    %155 = arith.subf %153, %154 : vector<8x128xf32>
    %c1_24 = arith.constant 1 : index
    %c0_25 = arith.constant 0 : index
    %c0_26 = arith.constant 0 : index
    %156 = vector.load %arg3[%c1_24, %c0_25, %c0_26] : memref<3x8x128xf32, #tpu.memory_space<vmem>>, vector<1x8x128xf32>
    %157 = vector.shape_cast %156 : vector<1x8x128xf32> to vector<8x128xf32>
    %158 = vector.broadcast %132 : f32 to vector<8x128xf32>
    %159 = arith.subf %157, %158 : vector<8x128xf32>
    %c2_27 = arith.constant 2 : index
    %c0_28 = arith.constant 0 : index
    %c0_29 = arith.constant 0 : index
    %160 = vector.load %arg3[%c2_27, %c0_28, %c0_29] : memref<3x8x128xf32, #tpu.memory_space<vmem>>, vector<1x8x128xf32>
    %161 = vector.shape_cast %160 : vector<1x8x128xf32> to vector<8x128xf32>
    %162 = vector.broadcast %133 : f32 to vector<8x128xf32>
    %163 = arith.subf %161, %162 : vector<8x128xf32>
    %164 = arith.mulf %155, %155 : vector<8x128xf32>
    %165 = arith.mulf %159, %159 : vector<8x128xf32>
    %166 = arith.addf %164, %165 : vector<8x128xf32>
    %167 = arith.mulf %163, %163 : vector<8x128xf32>
    %168 = arith.addf %166, %167 : vector<8x128xf32>
    %169 = vector.broadcast %134 : f32 to vector<8x128xf32>
    %170 = arith.mulf %169, %155 : vector<8x128xf32>
    %171 = vector.broadcast %135 : f32 to vector<8x128xf32>
    %172 = arith.mulf %171, %159 : vector<8x128xf32>
    %173 = arith.addf %170, %172 : vector<8x128xf32>
    %174 = vector.broadcast %136 : f32 to vector<8x128xf32>
    %175 = arith.mulf %174, %163 : vector<8x128xf32>
    %176 = arith.addf %173, %175 : vector<8x128xf32>
    %177 = vector.broadcast %137 : f32 to vector<8x128xf32>
    %178 = arith.mulf %177, %155 : vector<8x128xf32>
    %179 = vector.broadcast %138 : f32 to vector<8x128xf32>
    %180 = arith.mulf %179, %159 : vector<8x128xf32>
    %181 = arith.addf %178, %180 : vector<8x128xf32>
    %182 = vector.broadcast %139 : f32 to vector<8x128xf32>
    %183 = arith.mulf %182, %163 : vector<8x128xf32>
    %184 = arith.addf %181, %183 : vector<8x128xf32>
    %185 = vector.broadcast %149 : f32 to vector<8x128xf32>
    %186 = arith.mulf %185, %155 : vector<8x128xf32>
    %187 = vector.broadcast %150 : f32 to vector<8x128xf32>
    %188 = arith.mulf %187, %159 : vector<8x128xf32>
    %189 = arith.addf %186, %188 : vector<8x128xf32>
    %190 = vector.broadcast %151 : f32 to vector<8x128xf32>
    %191 = arith.mulf %190, %163 : vector<8x128xf32>
    %192 = arith.addf %189, %191 : vector<8x128xf32>
    %193 = arith.addf %176, %176 : vector<8x128xf32>
    %194 = vector.broadcast %146 : f32 to vector<8x128xf32>
    %195 = arith.mulf %176, %194 : vector<8x128xf32>
    %cst_30 = arith.constant 0.000000e+00 : f32
    %196 = vector.broadcast %cst_30 : f32 to vector<8x128xf32>
    %197 = arith.maximumf %195, %196 : vector<8x128xf32>
    %cst_31 = arith.constant 1.000000e+00 : f32
    %198 = vector.broadcast %cst_31 : f32 to vector<8x128xf32>
    %199 = arith.minimumf %197, %198 : vector<8x128xf32>
    %200 = vector.broadcast %140 : f32 to vector<8x128xf32>
    %201 = arith.mulf %199, %200 : vector<8x128xf32>
    %202 = arith.subf %193, %201 : vector<8x128xf32>
    %203 = arith.mulf %199, %202 : vector<8x128xf32>
    %204 = arith.subf %168, %203 : vector<8x128xf32>
    %205 = vector.broadcast %147 : f32 to vector<8x128xf32>
    %206 = arith.mulf %184, %205 : vector<8x128xf32>
    %cst_32 = arith.constant 0.000000e+00 : f32
    %207 = vector.broadcast %cst_32 : f32 to vector<8x128xf32>
    %208 = arith.maximumf %206, %207 : vector<8x128xf32>
    %cst_33 = arith.constant 1.000000e+00 : f32
    %209 = vector.broadcast %cst_33 : f32 to vector<8x128xf32>
    %210 = arith.minimumf %208, %209 : vector<8x128xf32>
    %211 = arith.addf %184, %184 : vector<8x128xf32>
    %212 = vector.broadcast %141 : f32 to vector<8x128xf32>
    %213 = arith.mulf %210, %212 : vector<8x128xf32>
    %214 = arith.subf %211, %213 : vector<8x128xf32>
    %215 = arith.mulf %210, %214 : vector<8x128xf32>
    %216 = arith.subf %168, %215 : vector<8x128xf32>
    %217 = arith.subf %184, %176 : vector<8x128xf32>
    %218 = vector.broadcast %144 : f32 to vector<8x128xf32>
    %219 = arith.addf %217, %218 : vector<8x128xf32>
    %220 = arith.subf %168, %193 : vector<8x128xf32>
    %221 = vector.broadcast %140 : f32 to vector<8x128xf32>
    %222 = arith.addf %220, %221 : vector<8x128xf32>
    %223 = vector.broadcast %148 : f32 to vector<8x128xf32>
    %224 = arith.mulf %219, %223 : vector<8x128xf32>
    %cst_34 = arith.constant 0.000000e+00 : f32
    %225 = vector.broadcast %cst_34 : f32 to vector<8x128xf32>
    %226 = arith.maximumf %224, %225 : vector<8x128xf32>
    %cst_35 = arith.constant 1.000000e+00 : f32
    %227 = vector.broadcast %cst_35 : f32 to vector<8x128xf32>
    %228 = arith.minimumf %226, %227 : vector<8x128xf32>
    %229 = arith.addf %219, %219 : vector<8x128xf32>
    %230 = vector.broadcast %145 : f32 to vector<8x128xf32>
    %231 = arith.mulf %228, %230 : vector<8x128xf32>
    %232 = arith.subf %229, %231 : vector<8x128xf32>
    %233 = arith.mulf %228, %232 : vector<8x128xf32>
    %234 = arith.subf %222, %233 : vector<8x128xf32>
    %235 = vector.broadcast %141 : f32 to vector<8x128xf32>
    %236 = arith.mulf %235, %176 : vector<8x128xf32>
    %237 = vector.broadcast %142 : f32 to vector<8x128xf32>
    %238 = arith.mulf %237, %184 : vector<8x128xf32>
    %239 = arith.subf %236, %238 : vector<8x128xf32>
    %240 = vector.broadcast %140 : f32 to vector<8x128xf32>
    %241 = arith.mulf %240, %184 : vector<8x128xf32>
    %242 = vector.broadcast %142 : f32 to vector<8x128xf32>
    %243 = arith.mulf %242, %176 : vector<8x128xf32>
    %244 = arith.subf %241, %243 : vector<8x128xf32>
    %245 = vector.broadcast %143 : f32 to vector<8x128xf32>
    %246 = arith.subf %245, %239 : vector<8x128xf32>
    %247 = arith.subf %246, %244 : vector<8x128xf32>
    %cst_36 = arith.constant 0.000000e+00 : f32
    %248 = vector.broadcast %cst_36 : f32 to vector<8x128xf32>
    %249 = arith.cmpf oge, %247, %248 : vector<8x128xf32>
    %cst_37 = arith.constant 0.000000e+00 : f32
    %250 = vector.broadcast %cst_37 : f32 to vector<8x128xf32>
    %251 = arith.cmpf oge, %239, %250 : vector<8x128xf32>
    %252 = arith.andi %249, %251 : vector<8x128xi1>
    %cst_38 = arith.constant 0.000000e+00 : f32
    %253 = vector.broadcast %cst_38 : f32 to vector<8x128xf32>
    %254 = arith.cmpf oge, %244, %253 : vector<8x128xf32>
    %255 = arith.andi %252, %254 : vector<8x128xi1>
    %256 = arith.minimumf %204, %216 : vector<8x128xf32>
    %257 = arith.minimumf %256, %234 : vector<8x128xf32>
    %258 = arith.mulf %192, %192 : vector<8x128xf32>
    %259 = arith.select %255, %258, %257 : vector<8x128xi1>, vector<8x128xf32>
    %c0_39 = arith.constant 0 : index
    %c0_40 = arith.constant 0 : index
    %260 = vector.load %arg5[%c0_39, %c0_40] : memref<8x128xf32, #tpu.memory_space<vmem>>, vector<8x128xf32>
    %261 = arith.minimumf %260, %259 : vector<8x128xf32>
    %c0_41 = arith.constant 0 : index
    %c0_42 = arith.constant 0 : index
    %262 = vector.load %arg5[%c0_41, %c0_42] : memref<8x128xf32, #tpu.memory_space<vmem>>, vector<8x128xf32>
    tpu.vector_store %arg5[%c0_41, %c0_42], %261 {strides = array<i32>} : memref<8x128xf32, #tpu.memory_space<vmem>>, vector<8x128xf32>,
    %c0_43 = arith.constant 0 : index
    %c0_44 = arith.constant 0 : index
    %263 = vector.load %arg6[%c0_43, %c0_44] : memref<8x128xf32, #tpu.memory_space<vmem>>, vector<8x128xf32>
    %264 = arith.maximumf %263, %192 : vector<8x128xf32>
    %c0_45 = arith.constant 0 : index
    %c0_46 = arith.constant 0 : index
    %265 = vector.load %arg6[%c0_45, %c0_46] : memref<8x128xf32, #tpu.memory_space<vmem>>, vector<8x128xf32>
    tpu.vector_store %arg6[%c0_45, %c0_46], %264 {strides = array<i32>} : memref<8x128xf32, #tpu.memory_space<vmem>>, vector<8x128xf32>,
    %c42 = arith.constant 42 : index
    %266 = memref.load %arg1[%c42] : memref<252xf32, #tpu.memory_space<smem>>
    %c43 = arith.constant 43 : index
    %267 = memref.load %arg1[%c43] : memref<252xf32, #tpu.memory_space<smem>>
    %c44 = arith.constant 44 : index
    %268 = memref.load %arg1[%c44] : memref<252xf32, #tpu.memory_space<smem>>
    %c45 = arith.constant 45 : index
    %269 = memref.load %arg1[%c45] : memref<252xf32, #tpu.memory_space<smem>>
    %c46 = arith.constant 46 : index
    %270 = memref.load %arg1[%c46] : memref<252xf32, #tpu.memory_space<smem>>
    %c47 = arith.constant 47 : index
    %271 = memref.load %arg1[%c47] : memref<252xf32, #tpu.memory_space<smem>>
    %c48 = arith.constant 48 : index
    %272 = memref.load %arg1[%c48] : memref<252xf32, #tpu.memory_space<smem>>
    %c49 = arith.constant 49 : index
    %273 = memref.load %arg1[%c49] : memref<252xf32, #tpu.memory_space<smem>>
    %c50 = arith.constant 50 : index
    %274 = memref.load %arg1[%c50] : memref<252xf32, #tpu.memory_space<smem>>
    %c51 = arith.constant 51 : index
    %275 = memref.load %arg1[%c51] : memref<252xf32, #tpu.memory_space<smem>>
    %c52 = arith.constant 52 : index
    %276 = memref.load %arg1[%c52] : memref<252xf32, #tpu.memory_space<smem>>
    %c53 = arith.constant 53 : index
    %277 = memref.load %arg1[%c53] : memref<252xf32, #tpu.memory_space<smem>>
    %c54 = arith.constant 54 : index
    %278 = memref.load %arg1[%c54] : memref<252xf32, #tpu.memory_space<smem>>
    %c55 = arith.constant 55 : index
    %279 = memref.load %arg1[%c55] : memref<252xf32, #tpu.memory_space<smem>>
    %c56 = arith.constant 56 : index
    %280 = memref.load %arg1[%c56] : memref<252xf32, #tpu.memory_space<smem>>
    %c57 = arith.constant 57 : index
    %281 = memref.load %arg1[%c57] : memref<252xf32, #tpu.memory_space<smem>>
    %c58 = arith.constant 58 : index
    %282 = memref.load %arg1[%c58] : memref<252xf32, #tpu.memory_space<smem>>
    %c59 = arith.constant 59 : index
    %283 = memref.load %arg1[%c59] : memref<252xf32, #tpu.memory_space<smem>>
    %c60 = arith.constant 60 : index
    %284 = memref.load %arg1[%c60] : memref<252xf32, #tpu.memory_space<smem>>
    %c61 = arith.constant 61 : index
    %285 = memref.load %arg1[%c61] : memref<252xf32, #tpu.memory_space<smem>>
    %c62 = arith.constant 62 : index
    %286 = memref.load %arg1[%c62] : memref<252xf32, #tpu.memory_space<smem>>
    %c0_47 = arith.constant 0 : index
    %c0_48 = arith.constant 0 : index
    %c0_49 = arith.constant 0 : index
    %287 = vector.load %arg3[%c0_47, %c0_48, %c0_49] : memref<3x8x128xf32, #tpu.memory_space<vmem>>, vector<1x8x128xf32>
    %288 = vector.shape_cast %287 : vector<1x8x128xf32> to vector<8x128xf32>
    %289 = vector.broadcast %266 : f32 to vector<8x128xf32>
    %290 = arith.subf %288, %289 : vector<8x128xf32>
    %c1_50 = arith.constant 1 : index
    %c0_51 = arith.constant 0 : index
    %c0_52 = arith.constant 0 : index
    %291 = vector.load %arg3[%c1_50, %c0_51, %c0_52] : memref<3x8x128xf32, #tpu.memory_space<vmem>>, vector<1x8x128xf32>
    %292 = vector.shape_cast %291 : vector<1x8x128xf32> to vector<8x128xf32>
    %293 = vector.broadcast %267 : f32 to vector<8x128xf32>
    %294 = arith.subf %292, %293 : vector<8x128xf32>
    %c2_53 = arith.constant 2 : index
    %c0_54 = arith.constant 0 : index
    %c0_55 = arith.constant 0 : index
    %295 = vector.load %arg3[%c2_53, %c0_54, %c0_55] : memref<3x8x128xf32, #tpu.memory_space<vmem>>, vector<1x8x128xf32>
    %296 = vector.shape_cast %295 : vector<1x8x128xf32> to vector<8x128xf32>
    %297 = vector.broadcast %268 : f32 to vector<8x128xf32>
    %298 = arith.subf %296, %297 : vector<8x128xf32>
    %299 = arith.mulf %290, %290 : vector<8x128xf32>
    %300 = arith.mulf %294, %294 : vector<8x128xf32>
    %301 = arith.addf %299, %300 : vector<8x128xf32>
    %302 = arith.mulf %298, %298 : vector<8x128xf32>
    %303 = arith.addf %301, %302 : vector<8x128xf32>
    %304 = vector.broadcast %269 : f32 to vector<8x128xf32>
    %305 = arith.mulf %304, %290 : vector<8x128xf32>
    %306 = vector.broadcast %270 : f32 to vector<8x128xf32>
    %307 = arith.mulf %306, %294 : vector<8x128xf32>
    %308 = arith.addf %305, %307 : vector<8x128xf32>
    %309 = vector.broadcast %271 : f32 to vector<8x128xf32>
    %310 = arith.mulf %309, %298 : vector<8x128xf32>
    %311 = arith.addf %308, %310 : vector<8x128xf32>
    %312 = vector.broadcast %272 : f32 to vector<8x128xf32>
    %313 = arith.mulf %312, %290 : vector<8x128xf32>
    %314 = vector.broadcast %273 : f32 to vector<8x128xf32>
    %315 = arith.mulf %314, %294 : vector<8x128xf32>
    %316 = arith.addf %313, %315 : vector<8x128xf32>
    %317 = vector.broadcast %274 : f32 to vector<8x128xf32>
    %318 = arith.mulf %317, %298 : vector<8x128xf32>
    %319 = arith.addf %316, %318 : vector<8x128xf32>
    %320 = vector.broadcast %284 : f32 to vector<8x128xf32>
    %321 = arith.mulf %320, %290 : vector<8x128xf32>
    %322 = vector.broadcast %285 : f32 to vector<8x128xf32>
    %323 = arith.mulf %322, %294 : vector<8x128xf32>
    %324 = arith.addf %321, %323 : vector<8x128xf32>
    %325 = vector.broadcast %286 : f32 to vector<8x128xf32>
    %326 = arith.mulf %325, %298 : vector<8x128xf32>
    %327 = arith.addf %324, %326 : vector<8x128xf32>
    %328 = arith.addf %311, %311 : vector<8x128xf32>
    %329 = vector.broadcast %281 : f32 to vector<8x128xf32>
    %330 = arith.mulf %311, %329 : vector<8x128xf32>
    %cst_56 = arith.constant 0.000000e+00 : f32
    %331 = vector.broadcast %cst_56 : f32 to vector<8x128xf32>
    %332 = arith.maximumf %330, %331 : vector<8x128xf32>
    %cst_57 = arith.constant 1.000000e+00 : f32
    %333 = vector.broadcast %cst_57 : f32 to vector<8x128xf32>
    %334 = arith.minimumf %332, %333 : vector<8x128xf32>
    %335 = vector.broadcast %275 : f32 to vector<8x128xf32>
    %336 = arith.mulf %334, %335 : vector<8x128xf32>
    %337 = arith.subf %328, %336 : vector<8x128xf32>
    %338 = arith.mulf %334, %337 : vector<8x128xf32>
    %339 = arith.subf %303, %338 : vector<8x128xf32>
    %340 = vector.broadcast %282 : f32 to vector<8x128xf32>
    %341 = arith.mulf %319, %340 : vector<8x128xf32>
    %cst_58 = arith.constant 0.000000e+00 : f32
    %342 = vector.broadcast %cst_58 : f32 to vector<8x128xf32>
    %343 = arith.maximumf %341, %342 : vector<8x128xf32>
    %cst_59 = arith.constant 1.000000e+00 : f32
    %344 = vector.broadcast %cst_59 : f32 to vector<8x128xf32>
    %345 = arith.minimumf %343, %344 : vector<8x128xf32>
    %346 = arith.addf %319, %319 : vector<8x128xf32>
    %347 = vector.broadcast %276 : f32 to vector<8x128xf32>
    %348 = arith.mulf %345, %347 : vector<8x128xf32>
    %349 = arith.subf %346, %348 : vector<8x128xf32>
    %350 = arith.mulf %345, %349 : vector<8x128xf32>
    %351 = arith.subf %303, %350 : vector<8x128xf32>
    %352 = arith.subf %319, %311 : vector<8x128xf32>
    %353 = vector.broadcast %279 : f32 to vector<8x128xf32>
    %354 = arith.addf %352, %353 : vector<8x128xf32>
    %355 = arith.subf %303, %328 : vector<8x128xf32>
    %356 = vector.broadcast %275 : f32 to vector<8x128xf32>
    %357 = arith.addf %355, %356 : vector<8x128xf32>
    %358 = vector.broadcast %283 : f32 to vector<8x128xf32>
    %359 = arith.mulf %354, %358 : vector<8x128xf32>
    %cst_60 = arith.constant 0.000000e+00 : f32
    %360 = vector.broadcast %cst_60 : f32 to vector<8x128xf32>
    %361 = arith.maximumf %359, %360 : vector<8x128xf32>
    %cst_61 = arith.constant 1.000000e+00 : f32
    %362 = vector.broadcast %cst_61 : f32 to vector<8x128xf32>
    %363 = arith.minimumf %361, %362 : vector<8x128xf32>
    %364 = arith.addf %354, %354 : vector<8x128xf32>
    %365 = vector.broadcast %280 : f32 to vector<8x128xf32>
    %366 = arith.mulf %363, %365 : vector<8x128xf32>
    %367 = arith.subf %364, %366 : vector<8x128xf32>
    %368 = arith.mulf %363, %367 : vector<8x128xf32>
    %369 = arith.subf %357, %368 : vector<8x128xf32>
    %370 = vector.broadcast %276 : f32 to vector<8x128xf32>
    %371 = arith.mulf %370, %311 : vector<8x128xf32>
    %372 = vector.broadcast %277 : f32 to vector<8x128xf32>
    %373 = arith.mulf %372, %319 : vector<8x128xf32>
    %374 = arith.subf %371, %373 : vector<8x128xf32>
    %375 = vector.broadcast %275 : f32 to vector<8x128xf32>
    %376 = arith.mulf %375, %319 : vector<8x128xf32>
    %377 = vector.broadcast %277 : f32 to vector<8x128xf32>
    %378 = arith.mulf %377, %311 : vector<8x128xf32>
    %379 = arith.subf %376, %378 : vector<8x128xf32>
    %380 = vector.broadcast %278 : f32 to vector<8x128xf32>
    %381 = arith.subf %380, %374 : vector<8x128xf32>
    %382 = arith.subf %381, %379 : vector<8x128xf32>
    %cst_62 = arith.constant 0.000000e+00 : f32
    %383 = vector.broadcast %cst_62 : f32 to vector<8x128xf32>
    %384 = arith.cmpf oge, %382, %383 : vector<8x128xf32>
    %cst_63 = arith.constant 0.000000e+00 : f32
    %385 = vector.broadcast %cst_63 : f32 to vector<8x128xf32>
    %386 = arith.cmpf oge, %374, %385 : vector<8x128xf32>
    %387 = arith.andi %384, %386 : vector<8x128xi1>
    %cst_64 = arith.constant 0.000000e+00 : f32
    %388 = vector.broadcast %cst_64 : f32 to vector<8x128xf32>
    %389 = arith.cmpf oge, %379, %388 : vector<8x128xf32>
    %390 = arith.andi %387, %389 : vector<8x128xi1>
    %391 = arith.minimumf %339, %351 : vector<8x128xf32>
    %392 = arith.minimumf %391, %369 : vector<8x128xf32>
    %393 = arith.mulf %327, %327 : vector<8x128xf32>
    %394 = arith.select %390, %393, %392 : vector<8x128xi1>, vector<8x128xf32>
    %c0_65 = arith.constant 0 : index
    %c0_66 = arith.constant 0 : index
    %395 = vector.load %arg5[%c0_65, %c0_66] : memref<8x128xf32, #tpu.memory_space<vmem>>, vector<8x128xf32>
    %396 = arith.minimumf %395, %394 : vector<8x128xf32>
    %c0_67 = arith.constant 0 : index
    %c0_68 = arith.constant 0 : index
    %397 = vector.load %arg5[%c0_67, %c0_68] : memref<8x128xf32, #tpu.memory_space<vmem>>, vector<8x128xf32>
    tpu.vector_store %arg5[%c0_67, %c0_68], %396 {strides = array<i32>} : memref<8x128xf32, #tpu.memory_space<vmem>>, vector<8x128xf32>,
    %c0_69 = arith.constant 0 : index
    %c0_70 = arith.constant 0 : index
    %398 = vector.load %arg6[%c0_69, %c0_70] : memref<8x128xf32, #tpu.memory_space<vmem>>, vector<8x128xf32>
    %399 = arith.maximumf %398, %327 : vector<8x128xf32>
    %c0_71 = arith.constant 0 : index
    %c0_72 = arith.constant 0 : index
    %400 = vector.load %arg6[%c0_71, %c0_72] : memref<8x128xf32, #tpu.memory_space<vmem>>, vector<8x128xf32>
    tpu.vector_store %arg6[%c0_71, %c0_72], %399 {strides = array<i32>} : memref<8x128xf32, #tpu.memory_space<vmem>>, vector<8x128xf32>,
    %c63 = arith.constant 63 : index
    %401 = memref.load %arg1[%c63] : memref<252xf32, #tpu.memory_space<smem>>
    %c64 = arith.constant 64 : index
    %402 = memref.load %arg1[%c64] : memref<252xf32, #tpu.memory_space<smem>>
    %c65 = arith.constant 65 : index
    %403 = memref.load %arg1[%c65] : memref<252xf32, #tpu.memory_space<smem>>
    %c66 = arith.constant 66 : index
    %404 = memref.load %arg1[%c66] : memref<252xf32, #tpu.memory_space<smem>>
    %c67 = arith.constant 67 : index
    %405 = memref.load %arg1[%c67] : memref<252xf32, #tpu.memory_space<smem>>
    %c68 = arith.constant 68 : index
    %406 = memref.load %arg1[%c68] : memref<252xf32, #tpu.memory_space<smem>>
    %c69 = arith.constant 69 : index
    %407 = memref.load %arg1[%c69] : memref<252xf32, #tpu.memory_space<smem>>
    %c70 = arith.constant 70 : index
    %408 = memref.load %arg1[%c70] : memref<252xf32, #tpu.memory_space<smem>>
    %c71 = arith.constant 71 : index
    %409 = memref.load %arg1[%c71] : memref<252xf32, #tpu.memory_space<smem>>
    %c72 = arith.constant 72 : index
    %410 = memref.load %arg1[%c72] : memref<252xf32, #tpu.memory_space<smem>>
    %c73 = arith.constant 73 : index
    %411 = memref.load %arg1[%c73] : memref<252xf32, #tpu.memory_space<smem>>
    %c74 = arith.constant 74 : index
    %412 = memref.load %arg1[%c74] : memref<252xf32, #tpu.memory_space<smem>>
    %c75 = arith.constant 75 : index
    %413 = memref.load %arg1[%c75] : memref<252xf32, #tpu.memory_space<smem>>
    %c76 = arith.constant 76 : index
    %414 = memref.load %arg1[%c76] : memref<252xf32, #tpu.memory_space<smem>>
    %c77 = arith.constant 77 : index
    %415 = memref.load %arg1[%c77] : memref<252xf32, #tpu.memory_space<smem>>
    %c78 = arith.constant 78 : index
    %416 = memref.load %arg1[%c78] : memref<252xf32, #tpu.memory_space<smem>>
    %c79 = arith.constant 79 : index
    %417 = memref.load %arg1[%c79] : memref<252xf32, #tpu.memory_space<smem>>
    %c80 = arith.constant 80 : index
    %418 = memref.load %arg1[%c80] : memref<252xf32, #tpu.memory_space<smem>>
    %c81 = arith.constant 81 : index
    %419 = memref.load %arg1[%c81] : memref<252xf32, #tpu.memory_space<smem>>
    %c82 = arith.constant 82 : index
    %420 = memref.load %arg1[%c82] : memref<252xf32, #tpu.memory_space<smem>>
    %c83 = arith.constant 83 : index
    %421 = memref.load %arg1[%c83] : memref<252xf32, #tpu.memory_space<smem>>
    %c0_73 = arith.constant 0 : index
    %c0_74 = arith.constant 0 : index
    %c0_75 = arith.constant 0 : index
    %422 = vector.load %arg3[%c0_73, %c0_74, %c0_75] : memref<3x8x128xf32, #tpu.memory_space<vmem>>, vector<1x8x128xf32>
    %423 = vector.shape_cast %422 : vector<1x8x128xf32> to vector<8x128xf32>
    %424 = vector.broadcast %401 : f32 to vector<8x128xf32>
    %425 = arith.subf %423, %424 : vector<8x128xf32>
    %c1_76 = arith.constant 1 : index
    %c0_77 = arith.constant 0 : index
    %c0_78 = arith.constant 0 : index
    %426 = vector.load %arg3[%c1_76, %c0_77, %c0_78] : memref<3x8x128xf32, #tpu.memory_space<vmem>>, vector<1x8x128xf32>
    %427 = vector.shape_cast %426 : vector<1x8x128xf32> to vector<8x128xf32>
    %428 = vector.broadcast %402 : f32 to vector<8x128xf32>
    %429 = arith.subf %427, %428 : vector<8x128xf32>
    %c2_79 = arith.constant 2 : index
    %c0_80 = arith.constant 0 : index
    %c0_81 = arith.constant 0 : index
    %430 = vector.load %arg3[%c2_79, %c0_80, %c0_81] : memref<3x8x128xf32, #tpu.memory_space<vmem>>, vector<1x8x128xf32>
    %431 = vector.shape_cast %430 : vector<1x8x128xf32> to vector<8x128xf32>
    %432 = vector.broadcast %403 : f32 to vector<8x128xf32>
    %433 = arith.subf %431, %432 : vector<8x128xf32>
    %434 = arith.mulf %425, %425 : vector<8x128xf32>
    %435 = arith.mulf %429, %429 : vector<8x128xf32>
    %436 = arith.addf %434, %435 : vector<8x128xf32>
    %437 = arith.mulf %433, %433 : vector<8x128xf32>
    %438 = arith.addf %436, %437 : vector<8x128xf32>
    %439 = vector.broadcast %404 : f32 to vector<8x128xf32>
    %440 = arith.mulf %439, %425 : vector<8x128xf32>
    %441 = vector.broadcast %405 : f32 to vector<8x128xf32>
    %442 = arith.mulf %441, %429 : vector<8x128xf32>
    %443 = arith.addf %440, %442 : vector<8x128xf32>
    %444 = vector.broadcast %406 : f32 to vector<8x128xf32>
    %445 = arith.mulf %444, %433 : vector<8x128xf32>
    %446 = arith.addf %443, %445 : vector<8x128xf32>
    %447 = vector.broadcast %407 : f32 to vector<8x128xf32>
    %448 = arith.mulf %447, %425 : vector<8x128xf32>
    %449 = vector.broadcast %408 : f32 to vector<8x128xf32>
    %450 = arith.mulf %449, %429 : vector<8x128xf32>
    %451 = arith.addf %448, %450 : vector<8x128xf32>
    %452 = vector.broadcast %409 : f32 to vector<8x128xf32>
    %453 = arith.mulf %452, %433 : vector<8x128xf32>
    %454 = arith.addf %451, %453 : vector<8x128xf32>
    %455 = vector.broadcast %419 : f32 to vector<8x128xf32>
    %456 = arith.mulf %455, %425 : vector<8x128xf32>
    %457 = vector.broadcast %420 : f32 to vector<8x128xf32>
    %458 = arith.mulf %457, %429 : vector<8x128xf32>
    %459 = arith.addf %456, %458 : vector<8x128xf32>
    %460 = vector.broadcast %421 : f32 to vector<8x128xf32>
    %461 = arith.mulf %460, %433 : vector<8x128xf32>
    %462 = arith.addf %459, %461 : vector<8x128xf32>
    %463 = arith.addf %446, %446 : vector<8x128xf32>
    %464 = vector.broadcast %416 : f32 to vector<8x128xf32>
    %465 = arith.mulf %446, %464 : vector<8x128xf32>
    %cst_82 = arith.constant 0.000000e+00 : f32
    %466 = vector.broadcast %cst_82 : f32 to vector<8x128xf32>
    %467 = arith.maximumf %465, %466 : vector<8x128xf32>
    %cst_83 = arith.constant 1.000000e+00 : f32
    %468 = vector.broadcast %cst_83 : f32 to vector<8x128xf32>
    %469 = arith.minimumf %467, %468 : vector<8x128xf32>
    %470 = vector.broadcast %410 : f32 to vector<8x128xf32>
    %471 = arith.mulf %469, %470 : vector<8x128xf32>
    %472 = arith.subf %463, %471 : vector<8x128xf32>
    %473 = arith.mulf %469, %472 : vector<8x128xf32>
    %474 = arith.subf %438, %473 : vector<8x128xf32>
    %475 = vector.broadcast %417 : f32 to vector<8x128xf32>
    %476 = arith.mulf %454, %475 : vector<8x128xf32>
    %cst_84 = arith.constant 0.000000e+00 : f32
    %477 = vector.broadcast %cst_84 : f32 to vector<8x128xf32>
    %478 = arith.maximumf %476, %477 : vector<8x128xf32>
    %cst_85 = arith.constant 1.000000e+00 : f32
    %479 = vector.broadcast %cst_85 : f32 to vector<8x128xf32>
    %480 = arith.minimumf %478, %479 : vector<8x128xf32>
    %481 = arith.addf %454, %454 : vector<8x128xf32>
    %482 = vector.broadcast %411 : f32 to vector<8x128xf32>
    %483 = arith.mulf %480, %482 : vector<8x128xf32>
    %484 = arith.subf %481, %483 : vector<8x128xf32>
    %485 = arith.mulf %480, %484 : vector<8x128xf32>
    %486 = arith.subf %438, %485 : vector<8x128xf32>
    %487 = arith.subf %454, %446 : vector<8x128xf32>
    %488 = vector.broadcast %414 : f32 to vector<8x128xf32>
    %489 = arith.addf %487, %488 : vector<8x128xf32>
    %490 = arith.subf %438, %463 : vector<8x128xf32>
    %491 = vector.broadcast %410 : f32 to vector<8x128xf32>
    %492 = arith.addf %490, %491 : vector<8x128xf32>
    %493 = vector.broadcast %418 : f32 to vector<8x128xf32>
    %494 = arith.mulf %489, %493 : vector<8x128xf32>
    %cst_86 = arith.constant 0.000000e+00 : f32
    %495 = vector.broadcast %cst_86 : f32 to vector<8x128xf32>
    %496 = arith.maximumf %494, %495 : vector<8x128xf32>
    %cst_87 = arith.constant 1.000000e+00 : f32
    %497 = vector.broadcast %cst_87 : f32 to vector<8x128xf32>
    %498 = arith.minimumf %496, %497 : vector<8x128xf32>
    %499 = arith.addf %489, %489 : vector<8x128xf32>
    %500 = vector.broadcast %415 : f32 to vector<8x128xf32>
    %501 = arith.mulf %498, %500 : vector<8x128xf32>
    %502 = arith.subf %499, %501 : vector<8x128xf32>
    %503 = arith.mulf %498, %502 : vector<8x128xf32>
    %504 = arith.subf %492, %503 : vector<8x128xf32>
    %505 = vector.broadcast %411 : f32 to vector<8x128xf32>
    %506 = arith.mulf %505, %446 : vector<8x128xf32>
    %507 = vector.broadcast %412 : f32 to vector<8x128xf32>
    %508 = arith.mulf %507, %454 : vector<8x128xf32>
    %509 = arith.subf %506, %508 : vector<8x128xf32>
    %510 = vector.broadcast %410 : f32 to vector<8x128xf32>
    %511 = arith.mulf %510, %454 : vector<8x128xf32>
    %512 = vector.broadcast %412 : f32 to vector<8x128xf32>
    %513 = arith.mulf %512, %446 : vector<8x128xf32>
    %514 = arith.subf %511, %513 : vector<8x128xf32>
    %515 = vector.broadcast %413 : f32 to vector<8x128xf32>
    %516 = arith.subf %515, %509 : vector<8x128xf32>
    %517 = arith.subf %516, %514 : vector<8x128xf32>
    %cst_88 = arith.constant 0.000000e+00 : f32
    %518 = vector.broadcast %cst_88 : f32 to vector<8x128xf32>
    %519 = arith.cmpf oge, %517, %518 : vector<8x128xf32>
    %cst_89 = arith.constant 0.000000e+00 : f32
    %520 = vector.broadcast %cst_89 : f32 to vector<8x128xf32>
    %521 = arith.cmpf oge, %509, %520 : vector<8x128xf32>
    %522 = arith.andi %519, %521 : vector<8x128xi1>
    %cst_90 = arith.constant 0.000000e+00 : f32
    %523 = vector.broadcast %cst_90 : f32 to vector<8x128xf32>
    %524 = arith.cmpf oge, %514, %523 : vector<8x128xf32>
    %525 = arith.andi %522, %524 : vector<8x128xi1>
    %526 = arith.minimumf %474, %486 : vector<8x128xf32>
    %527 = arith.minimumf %526, %504 : vector<8x128xf32>
    %528 = arith.mulf %462, %462 : vector<8x128xf32>
    %529 = arith.select %525, %528, %527 : vector<8x128xi1>, vector<8x128xf32>
    %c0_91 = arith.constant 0 : index
    %c0_92 = arith.constant 0 : index
    %530 = vector.load %arg5[%c0_91, %c0_92] : memref<8x128xf32, #tpu.memory_space<vmem>>, vector<8x128xf32>
    %531 = arith.minimumf %530, %529 : vector<8x128xf32>
    %c0_93 = arith.constant 0 : index
    %c0_94 = arith.constant 0 : index
    %532 = vector.load %arg5[%c0_93, %c0_94] : memref<8x128xf32, #tpu.memory_space<vmem>>, vector<8x128xf32>
    tpu.vector_store %arg5[%c0_93, %c0_94], %531 {strides = array<i32>} : memref<8x128xf32, #tpu.memory_space<vmem>>, vector<8x128xf32>,
    %c0_95 = arith.constant 0 : index
    %c0_96 = arith.constant 0 : index
    %533 = vector.load %arg6[%c0_95, %c0_96] : memref<8x128xf32, #tpu.memory_space<vmem>>, vector<8x128xf32>
    %534 = arith.maximumf %533, %462 : vector<8x128xf32>
    %c0_97 = arith.constant 0 : index
    %c0_98 = arith.constant 0 : index
    %535 = vector.load %arg6[%c0_97, %c0_98] : memref<8x128xf32, #tpu.memory_space<vmem>>, vector<8x128xf32>
    tpu.vector_store %arg6[%c0_97, %c0_98], %534 {strides = array<i32>} : memref<8x128xf32, #tpu.memory_space<vmem>>, vector<8x128xf32>,
    %c84 = arith.constant 84 : index
    %536 = memref.load %arg1[%c84] : memref<252xf32, #tpu.memory_space<smem>>
    %c85 = arith.constant 85 : index
    %537 = memref.load %arg1[%c85] : memref<252xf32, #tpu.memory_space<smem>>
    %c86 = arith.constant 86 : index
    %538 = memref.load %arg1[%c86] : memref<252xf32, #tpu.memory_space<smem>>
    %c87 = arith.constant 87 : index
    %539 = memref.load %arg1[%c87] : memref<252xf32, #tpu.memory_space<smem>>
    %c88 = arith.constant 88 : index
    %540 = memref.load %arg1[%c88] : memref<252xf32, #tpu.memory_space<smem>>
    %c89 = arith.constant 89 : index
    %541 = memref.load %arg1[%c89] : memref<252xf32, #tpu.memory_space<smem>>
    %c90 = arith.constant 90 : index
    %542 = memref.load %arg1[%c90] : memref<252xf32, #tpu.memory_space<smem>>
    %c91 = arith.constant 91 : index
    %543 = memref.load %arg1[%c91] : memref<252xf32, #tpu.memory_space<smem>>
    %c92 = arith.constant 92 : index
    %544 = memref.load %arg1[%c92] : memref<252xf32, #tpu.memory_space<smem>>
    %c93 = arith.constant 93 : index
    %545 = memref.load %arg1[%c93] : memref<252xf32, #tpu.memory_space<smem>>
    %c94 = arith.constant 94 : index
    %546 = memref.load %arg1[%c94] : memref<252xf32, #tpu.memory_space<smem>>
    %c95 = arith.constant 95 : index
    %547 = memref.load %arg1[%c95] : memref<252xf32, #tpu.memory_space<smem>>
    %c96 = arith.constant 96 : index
    %548 = memref.load %arg1[%c96] : memref<252xf32, #tpu.memory_space<smem>>
    %c97 = arith.constant 97 : index
    %549 = memref.load %arg1[%c97] : memref<252xf32, #tpu.memory_space<smem>>
    %c98 = arith.constant 98 : index
    %550 = memref.load %arg1[%c98] : memref<252xf32, #tpu.memory_space<smem>>
    %c99 = arith.constant 99 : index
    %551 = memref.load %arg1[%c99] : memref<252xf32, #tpu.memory_space<smem>>
    %c100 = arith.constant 100 : index
    %552 = memref.load %arg1[%c100] : memref<252xf32, #tpu.memory_space<smem>>
    %c101 = arith.constant 101 : index
    %553 = memref.load %arg1[%c101] : memref<252xf32, #tpu.memory_space<smem>>
    %c102 = arith.constant 102 : index
    %554 = memref.load %arg1[%c102] : memref<252xf32, #tpu.memory_space<smem>>
    %c103 = arith.constant 103 : index
    %555 = memref.load %arg1[%c103] : memref<252xf32, #tpu.memory_space<smem>>
    %c104 = arith.constant 104 : index
    %556 = memref.load %arg1[%c104] : memref<252xf32, #tpu.memory_space<smem>>
    %c0_99 = arith.constant 0 : index
    %c0_100 = arith.constant 0 : index
    %c0_101 = arith.constant 0 : index
    %557 = vector.load %arg3[%c0_99, %c0_100, %c0_101] : memref<3x8x128xf32, #tpu.memory_space<vmem>>, vector<1x8x128xf32>
    %558 = vector.shape_cast %557 : vector<1x8x128xf32> to vector<8x128xf32>
    %559 = vector.broadcast %536 : f32 to vector<8x128xf32>
    %560 = arith.subf %558, %559 : vector<8x128xf32>
    %c1_102 = arith.constant 1 : index
    %c0_103 = arith.constant 0 : index
    %c0_104 = arith.constant 0 : index
    %561 = vector.load %arg3[%c1_102, %c0_103, %c0_104] : memref<3x8x128xf32, #tpu.memory_space<vmem>>, vector<1x8x128xf32>
    %562 = vector.shape_cast %561 : vector<1x8x128xf32> to vector<8x128xf32>
    %563 = vector.broadcast %537 : f32 to vector<8x128xf32>
    %564 = arith.subf %562, %563 : vector<8x128xf32>
    %c2_105 = arith.constant 2 : index
    %c0_106 = arith.constant 0 : index
    %c0_107 = arith.constant 0 : index
    %565 = vector.load %arg3[%c2_105, %c0_106, %c0_107] : memref<3x8x128xf32, #tpu.memory_space<vmem>>, vector<1x8x128xf32>
    %566 = vector.shape_cast %565 : vector<1x8x128xf32> to vector<8x128xf32>
    %567 = vector.broadcast %538 : f32 to vector<8x128xf32>
    %568 = arith.subf %566, %567 : vector<8x128xf32>
    %569 = arith.mulf %560, %560 : vector<8x128xf32>
    %570 = arith.mulf %564, %564 : vector<8x128xf32>
    %571 = arith.addf %569, %570 : vector<8x128xf32>
    %572 = arith.mulf %568, %568 : vector<8x128xf32>
    %573 = arith.addf %571, %572 : vector<8x128xf32>
    %574 = vector.broadcast %539 : f32 to vector<8x128xf32>
    %575 = arith.mulf %574, %560 : vector<8x128xf32>
    %576 = vector.broadcast %540 : f32 to vector<8x128xf32>
    %577 = arith.mulf %576, %564 : vector<8x128xf32>
    %578 = arith.addf %575, %577 : vector<8x128xf32>
    %579 = vector.broadcast %541 : f32 to vector<8x128xf32>
    %580 = arith.mulf %579, %568 : vector<8x128xf32>
    %581 = arith.addf %578, %580 : vector<8x128xf32>
    %582 = vector.broadcast %542 : f32 to vector<8x128xf32>
    %583 = arith.mulf %582, %560 : vector<8x128xf32>
    %584 = vector.broadcast %543 : f32 to vector<8x128xf32>
    %585 = arith.mulf %584, %564 : vector<8x128xf32>
    %586 = arith.addf %583, %585 : vector<8x128xf32>
    %587 = vector.broadcast %544 : f32 to vector<8x128xf32>
    %588 = arith.mulf %587, %568 : vector<8x128xf32>
    %589 = arith.addf %586, %588 : vector<8x128xf32>
    %590 = vector.broadcast %554 : f32 to vector<8x128xf32>
    %591 = arith.mulf %590, %560 : vector<8x128xf32>
    %592 = vector.broadcast %555 : f32 to vector<8x128xf32>
    %593 = arith.mulf %592, %564 : vector<8x128xf32>
    %594 = arith.addf %591, %593 : vector<8x128xf32>
    %595 = vector.broadcast %556 : f32 to vector<8x128xf32>
    %596 = arith.mulf %595, %568 : vector<8x128xf32>
    %597 = arith.addf %594, %596 : vector<8x128xf32>
    %598 = arith.addf %581, %581 : vector<8x128xf32>
    %599 = vector.broadcast %551 : f32 to vector<8x128xf32>
    %600 = arith.mulf %581, %599 : vector<8x128xf32>
    %cst_108 = arith.constant 0.000000e+00 : f32
    %601 = vector.broadcast %cst_108 : f32 to vector<8x128xf32>
    %602 = arith.maximumf %600, %601 : vector<8x128xf32>
    %cst_109 = arith.constant 1.000000e+00 : f32
    %603 = vector.broadcast %cst_109 : f32 to vector<8x128xf32>
    %604 = arith.minimumf %602, %603 : vector<8x128xf32>
    %605 = vector.broadcast %545 : f32 to vector<8x128xf32>
    %606 = arith.mulf %604, %605 : vector<8x128xf32>
    %607 = arith.subf %598, %606 : vector<8x128xf32>
    %608 = arith.mulf %604, %607 : vector<8x128xf32>
    %609 = arith.subf %573, %608 : vector<8x128xf32>
    %610 = vector.broadcast %552 : f32 to vector<8x128xf32>
    %611 = arith.mulf %589, %610 : vector<8x128xf32>
    %cst_110 = arith.constant 0.000000e+00 : f32
    %612 = vector.broadcast %cst_110 : f32 to vector<8x128xf32>
    %613 = arith.maximumf %611, %612 : vector<8x128xf32>
    %cst_111 = arith.constant 1.000000e+00 : f32
    %614 = vector.broadcast %cst_111 : f32 to vector<8x128xf32>
    %615 = arith.minimumf %613, %614 : vector<8x128xf32>
    %616 = arith.addf %589, %589 : vector<8x128xf32>
    %617 = vector.broadcast %546 : f32 to vector<8x128xf32>
    %618 = arith.mulf %615, %617 : vector<8x128xf32>
    %619 = arith.subf %616, %618 : vector<8x128xf32>
    %620 = arith.mulf %615, %619 : vector<8x128xf32>
    %621 = arith.subf %573, %620 : vector<8x128xf32>
    %622 = arith.subf %589, %581 : vector<8x128xf32>
    %623 = vector.broadcast %549 : f32 to vector<8x128xf32>
    %624 = arith.addf %622, %623 : vector<8x128xf32>
    %625 = arith.subf %573, %598 : vector<8x128xf32>
    %626 = vector.broadcast %545 : f32 to vector<8x128xf32>
    %627 = arith.addf %625, %626 : vector<8x128xf32>
    %628 = vector.broadcast %553 : f32 to vector<8x128xf32>
    %629 = arith.mulf %624, %628 : vector<8x128xf32>
    %cst_112 = arith.constant 0.000000e+00 : f32
    %630 = vector.broadcast %cst_112 : f32 to vector<8x128xf32>
    %631 = arith.maximumf %629, %630 : vector<8x128xf32>
    %cst_113 = arith.constant 1.000000e+00 : f32
    %632 = vector.broadcast %cst_113 : f32 to vector<8x128xf32>
    %633 = arith.minimumf %631, %632 : vector<8x128xf32>
    %634 = arith.addf %624, %624 : vector<8x128xf32>
    %635 = vector.broadcast %550 : f32 to vector<8x128xf32>
    %636 = arith.mulf %633, %635 : vector<8x128xf32>
    %637 = arith.subf %634, %636 : vector<8x128xf32>
    %638 = arith.mulf %633, %637 : vector<8x128xf32>
    %639 = arith.subf %627, %638 : vector<8x128xf32>
    %640 = vector.broadcast %546 : f32 to vector<8x128xf32>
    %641 = arith.mulf %640, %581 : vector<8x128xf32>
    %642 = vector.broadcast %547 : f32 to vector<8x128xf32>
    %643 = arith.mulf %642, %589 : vector<8x128xf32>
    %644 = arith.subf %641, %643 : vector<8x128xf32>
    %645 = vector.broadcast %545 : f32 to vector<8x128xf32>
    %646 = arith.mulf %645, %589 : vector<8x128xf32>
    %647 = vector.broadcast %547 : f32 to vector<8x128xf32>
    %648 = arith.mulf %647, %581 : vector<8x128xf32>
    %649 = arith.subf %646, %648 : vector<8x128xf32>
    %650 = vector.broadcast %548 : f32 to vector<8x128xf32>
    %651 = arith.subf %650, %644 : vector<8x128xf32>
    %652 = arith.subf %651, %649 : vector<8x128xf32>
    %cst_114 = arith.constant 0.000000e+00 : f32
    %653 = vector.broadcast %cst_114 : f32 to vector<8x128xf32>
    %654 = arith.cmpf oge, %652, %653 : vector<8x128xf32>
    %cst_115 = arith.constant 0.000000e+00 : f32
    %655 = vector.broadcast %cst_115 : f32 to vector<8x128xf32>
    %656 = arith.cmpf oge, %644, %655 : vector<8x128xf32>
    %657 = arith.andi %654, %656 : vector<8x128xi1>
    %cst_116 = arith.constant 0.000000e+00 : f32
    %658 = vector.broadcast %cst_116 : f32 to vector<8x128xf32>
    %659 = arith.cmpf oge, %649, %658 : vector<8x128xf32>
    %660 = arith.andi %657, %659 : vector<8x128xi1>
    %661 = arith.minimumf %609, %621 : vector<8x128xf32>
    %662 = arith.minimumf %661, %639 : vector<8x128xf32>
    %663 = arith.mulf %597, %597 : vector<8x128xf32>
    %664 = arith.select %660, %663, %662 : vector<8x128xi1>, vector<8x128xf32>
    %c0_117 = arith.constant 0 : index
    %c0_118 = arith.constant 0 : index
    %665 = vector.load %arg5[%c0_117, %c0_118] : memref<8x128xf32, #tpu.memory_space<vmem>>, vector<8x128xf32>
    %666 = arith.minimumf %665, %664 : vector<8x128xf32>
    %c0_119 = arith.constant 0 : index
    %c0_120 = arith.constant 0 : index
    %667 = vector.load %arg5[%c0_119, %c0_120] : memref<8x128xf32, #tpu.memory_space<vmem>>, vector<8x128xf32>
    tpu.vector_store %arg5[%c0_119, %c0_120], %666 {strides = array<i32>} : memref<8x128xf32, #tpu.memory_space<vmem>>, vector<8x128xf32>,
    %c0_121 = arith.constant 0 : index
    %c0_122 = arith.constant 0 : index
    %668 = vector.load %arg6[%c0_121, %c0_122] : memref<8x128xf32, #tpu.memory_space<vmem>>, vector<8x128xf32>
    %669 = arith.maximumf %668, %597 : vector<8x128xf32>
    %c0_123 = arith.constant 0 : index
    %c0_124 = arith.constant 0 : index
    %670 = vector.load %arg6[%c0_123, %c0_124] : memref<8x128xf32, #tpu.memory_space<vmem>>, vector<8x128xf32>
    tpu.vector_store %arg6[%c0_123, %c0_124], %669 {strides = array<i32>} : memref<8x128xf32, #tpu.memory_space<vmem>>, vector<8x128xf32>,
    %c105 = arith.constant 105 : index
    %671 = memref.load %arg1[%c105] : memref<252xf32, #tpu.memory_space<smem>>
    %c106 = arith.constant 106 : index
    %672 = memref.load %arg1[%c106] : memref<252xf32, #tpu.memory_space<smem>>
    %c107 = arith.constant 107 : index
    %673 = memref.load %arg1[%c107] : memref<252xf32, #tpu.memory_space<smem>>
    %c108 = arith.constant 108 : index
    %674 = memref.load %arg1[%c108] : memref<252xf32, #tpu.memory_space<smem>>
    %c109 = arith.constant 109 : index
    %675 = memref.load %arg1[%c109] : memref<252xf32, #tpu.memory_space<smem>>
    %c110 = arith.constant 110 : index
    %676 = memref.load %arg1[%c110] : memref<252xf32, #tpu.memory_space<smem>>
    %c111 = arith.constant 111 : index
    %677 = memref.load %arg1[%c111] : memref<252xf32, #tpu.memory_space<smem>>
    %c112 = arith.constant 112 : index
    %678 = memref.load %arg1[%c112] : memref<252xf32, #tpu.memory_space<smem>>
    %c113 = arith.constant 113 : index
    %679 = memref.load %arg1[%c113] : memref<252xf32, #tpu.memory_space<smem>>
    %c114 = arith.constant 114 : index
    %680 = memref.load %arg1[%c114] : memref<252xf32, #tpu.memory_space<smem>>
    %c115 = arith.constant 115 : index
    %681 = memref.load %arg1[%c115] : memref<252xf32, #tpu.memory_space<smem>>
    %c116 = arith.constant 116 : index
    %682 = memref.load %arg1[%c116] : memref<252xf32, #tpu.memory_space<smem>>
    %c117 = arith.constant 117 : index
    %683 = memref.load %arg1[%c117] : memref<252xf32, #tpu.memory_space<smem>>
    %c118 = arith.constant 118 : index
    %684 = memref.load %arg1[%c118] : memref<252xf32, #tpu.memory_space<smem>>
    %c119 = arith.constant 119 : index
    %685 = memref.load %arg1[%c119] : memref<252xf32, #tpu.memory_space<smem>>
    %c120 = arith.constant 120 : index
    %686 = memref.load %arg1[%c120] : memref<252xf32, #tpu.memory_space<smem>>
    %c121 = arith.constant 121 : index
    %687 = memref.load %arg1[%c121] : memref<252xf32, #tpu.memory_space<smem>>
    %c122 = arith.constant 122 : index
    %688 = memref.load %arg1[%c122] : memref<252xf32, #tpu.memory_space<smem>>
    %c123 = arith.constant 123 : index
    %689 = memref.load %arg1[%c123] : memref<252xf32, #tpu.memory_space<smem>>
    %c124 = arith.constant 124 : index
    %690 = memref.load %arg1[%c124] : memref<252xf32, #tpu.memory_space<smem>>
    %c125 = arith.constant 125 : index
    %691 = memref.load %arg1[%c125] : memref<252xf32, #tpu.memory_space<smem>>
    %c0_125 = arith.constant 0 : index
    %c0_126 = arith.constant 0 : index
    %c0_127 = arith.constant 0 : index
    %692 = vector.load %arg3[%c0_125, %c0_126, %c0_127] : memref<3x8x128xf32, #tpu.memory_space<vmem>>, vector<1x8x128xf32>
    %693 = vector.shape_cast %692 : vector<1x8x128xf32> to vector<8x128xf32>
    %694 = vector.broadcast %671 : f32 to vector<8x128xf32>
    %695 = arith.subf %693, %694 : vector<8x128xf32>
    %c1_128 = arith.constant 1 : index
    %c0_129 = arith.constant 0 : index
    %c0_130 = arith.constant 0 : index
    %696 = vector.load %arg3[%c1_128, %c0_129, %c0_130] : memref<3x8x128xf32, #tpu.memory_space<vmem>>, vector<1x8x128xf32>
    %697 = vector.shape_cast %696 : vector<1x8x128xf32> to vector<8x128xf32>
    %698 = vector.broadcast %672 : f32 to vector<8x128xf32>
    %699 = arith.subf %697, %698 : vector<8x128xf32>
    %c2_131 = arith.constant 2 : index
    %c0_132 = arith.constant 0 : index
    %c0_133 = arith.constant 0 : index
    %700 = vector.load %arg3[%c2_131, %c0_132, %c0_133] : memref<3x8x128xf32, #tpu.memory_space<vmem>>, vector<1x8x128xf32>
    %701 = vector.shape_cast %700 : vector<1x8x128xf32> to vector<8x128xf32>
    %702 = vector.broadcast %673 : f32 to vector<8x128xf32>
    %703 = arith.subf %701, %702 : vector<8x128xf32>
    %704 = arith.mulf %695, %695 : vector<8x128xf32>
    %705 = arith.mulf %699, %699 : vector<8x128xf32>
    %706 = arith.addf %704, %705 : vector<8x128xf32>
    %707 = arith.mulf %703, %703 : vector<8x128xf32>
    %708 = arith.addf %706, %707 : vector<8x128xf32>
    %709 = vector.broadcast %674 : f32 to vector<8x128xf32>
    %710 = arith.mulf %709, %695 : vector<8x128xf32>
    %711 = vector.broadcast %675 : f32 to vector<8x128xf32>
    %712 = arith.mulf %711, %699 : vector<8x128xf32>
    %713 = arith.addf %710, %712 : vector<8x128xf32>
    %714 = vector.broadcast %676 : f32 to vector<8x128xf32>
    %715 = arith.mulf %714, %703 : vector<8x128xf32>
    %716 = arith.addf %713, %715 : vector<8x128xf32>
    %717 = vector.broadcast %677 : f32 to vector<8x128xf32>
    %718 = arith.mulf %717, %695 : vector<8x128xf32>
    %719 = vector.broadcast %678 : f32 to vector<8x128xf32>
    %720 = arith.mulf %719, %699 : vector<8x128xf32>
    %721 = arith.addf %718, %720 : vector<8x128xf32>
    %722 = vector.broadcast %679 : f32 to vector<8x128xf32>
    %723 = arith.mulf %722, %703 : vector<8x128xf32>
    %724 = arith.addf %721, %723 : vector<8x128xf32>
    %725 = vector.broadcast %689 : f32 to vector<8x128xf32>
    %726 = arith.mulf %725, %695 : vector<8x128xf32>
    %727 = vector.broadcast %690 : f32 to vector<8x128xf32>
    %728 = arith.mulf %727, %699 : vector<8x128xf32>
    %729 = arith.addf %726, %728 : vector<8x128xf32>
    %730 = vector.broadcast %691 : f32 to vector<8x128xf32>
    %731 = arith.mulf %730, %703 : vector<8x128xf32>
    %732 = arith.addf %729, %731 : vector<8x128xf32>
    %733 = arith.addf %716, %716 : vector<8x128xf32>
    %734 = vector.broadcast %686 : f32 to vector<8x128xf32>
    %735 = arith.mulf %716, %734 : vector<8x128xf32>
    %cst_134 = arith.constant 0.000000e+00 : f32
    %736 = vector.broadcast %cst_134 : f32 to vector<8x128xf32>
    %737 = arith.maximumf %735, %736 : vector<8x128xf32>
    %cst_135 = arith.constant 1.000000e+00 : f32
    %738 = vector.broadcast %cst_135 : f32 to vector<8x128xf32>
    %739 = arith.minimumf %737, %738 : vector<8x128xf32>
    %740 = vector.broadcast %680 : f32 to vector<8x128xf32>
    %741 = arith.mulf %739, %740 : vector<8x128xf32>
    %742 = arith.subf %733, %741 : vector<8x128xf32>
    %743 = arith.mulf %739, %742 : vector<8x128xf32>
    %744 = arith.subf %708, %743 : vector<8x128xf32>
    %745 = vector.broadcast %687 : f32 to vector<8x128xf32>
    %746 = arith.mulf %724, %745 : vector<8x128xf32>
    %cst_136 = arith.constant 0.000000e+00 : f32
    %747 = vector.broadcast %cst_136 : f32 to vector<8x128xf32>
    %748 = arith.maximumf %746, %747 : vector<8x128xf32>
    %cst_137 = arith.constant 1.000000e+00 : f32
    %749 = vector.broadcast %cst_137 : f32 to vector<8x128xf32>
    %750 = arith.minimumf %748, %749 : vector<8x128xf32>
    %751 = arith.addf %724, %724 : vector<8x128xf32>
    %752 = vector.broadcast %681 : f32 to vector<8x128xf32>
    %753 = arith.mulf %750, %752 : vector<8x128xf32>
    %754 = arith.subf %751, %753 : vector<8x128xf32>
    %755 = arith.mulf %750, %754 : vector<8x128xf32>
    %756 = arith.subf %708, %755 : vector<8x128xf32>
    %757 = arith.subf %724, %716 : vector<8x128xf32>
    %758 = vector.broadcast %684 : f32 to vector<8x128xf32>
    %759 = arith.addf %757, %758 : vector<8x128xf32>
    %760 = arith.subf %708, %733 : vector<8x128xf32>
    %761 = vector.broadcast %680 : f32 to vector<8x128xf32>
    %762 = arith.addf %760, %761 : vector<8x128xf32>
    %763 = vector.broadcast %688 : f32 to vector<8x128xf32>
    %764 = arith.mulf %759, %763 : vector<8x128xf32>
    %cst_138 = arith.constant 0.000000e+00 : f32
    %765 = vector.broadcast %cst_138 : f32 to vector<8x128xf32>
    %766 = arith.maximumf %764, %765 : vector<8x128xf32>
    %cst_139 = arith.constant 1.000000e+00 : f32
    %767 = vector.broadcast %cst_139 : f32 to vector<8x128xf32>
    %768 = arith.minimumf %766, %767 : vector<8x128xf32>
    %769 = arith.addf %759, %759 : vector<8x128xf32>
    %770 = vector.broadcast %685 : f32 to vector<8x128xf32>
    %771 = arith.mulf %768, %770 : vector<8x128xf32>
    %772 = arith.subf %769, %771 : vector<8x128xf32>
    %773 = arith.mulf %768, %772 : vector<8x128xf32>
    %774 = arith.subf %762, %773 : vector<8x128xf32>
    %775 = vector.broadcast %681 : f32 to vector<8x128xf32>
    %776 = arith.mulf %775, %716 : vector<8x128xf32>
    %777 = vector.broadcast %682 : f32 to vector<8x128xf32>
    %778 = arith.mulf %777, %724 : vector<8x128xf32>
    %779 = arith.subf %776, %778 : vector<8x128xf32>
    %780 = vector.broadcast %680 : f32 to vector<8x128xf32>
    %781 = arith.mulf %780, %724 : vector<8x128xf32>
    %782 = vector.broadcast %682 : f32 to vector<8x128xf32>
    %783 = arith.mulf %782, %716 : vector<8x128xf32>
    %784 = arith.subf %781, %783 : vector<8x128xf32>
    %785 = vector.broadcast %683 : f32 to vector<8x128xf32>
    %786 = arith.subf %785, %779 : vector<8x128xf32>
    %787 = arith.subf %786, %784 : vector<8x128xf32>
    %cst_140 = arith.constant 0.000000e+00 : f32
    %788 = vector.broadcast %cst_140 : f32 to vector<8x128xf32>
    %789 = arith.cmpf oge, %787, %788 : vector<8x128xf32>
    %cst_141 = arith.constant 0.000000e+00 : f32
    %790 = vector.broadcast %cst_141 : f32 to vector<8x128xf32>
    %791 = arith.cmpf oge, %779, %790 : vector<8x128xf32>
    %792 = arith.andi %789, %791 : vector<8x128xi1>
    %cst_142 = arith.constant 0.000000e+00 : f32
    %793 = vector.broadcast %cst_142 : f32 to vector<8x128xf32>
    %794 = arith.cmpf oge, %784, %793 : vector<8x128xf32>
    %795 = arith.andi %792, %794 : vector<8x128xi1>
    %796 = arith.minimumf %744, %756 : vector<8x128xf32>
    %797 = arith.minimumf %796, %774 : vector<8x128xf32>
    %798 = arith.mulf %732, %732 : vector<8x128xf32>
    %799 = arith.select %795, %798, %797 : vector<8x128xi1>, vector<8x128xf32>
    %c0_143 = arith.constant 0 : index
    %c0_144 = arith.constant 0 : index
    %800 = vector.load %arg5[%c0_143, %c0_144] : memref<8x128xf32, #tpu.memory_space<vmem>>, vector<8x128xf32>
    %801 = arith.minimumf %800, %799 : vector<8x128xf32>
    %c0_145 = arith.constant 0 : index
    %c0_146 = arith.constant 0 : index
    %802 = vector.load %arg5[%c0_145, %c0_146] : memref<8x128xf32, #tpu.memory_space<vmem>>, vector<8x128xf32>
    tpu.vector_store %arg5[%c0_145, %c0_146], %801 {strides = array<i32>} : memref<8x128xf32, #tpu.memory_space<vmem>>, vector<8x128xf32>,
    %c0_147 = arith.constant 0 : index
    %c0_148 = arith.constant 0 : index
    %803 = vector.load %arg6[%c0_147, %c0_148] : memref<8x128xf32, #tpu.memory_space<vmem>>, vector<8x128xf32>
    %804 = arith.maximumf %803, %732 : vector<8x128xf32>
    %c0_149 = arith.constant 0 : index
    %c0_150 = arith.constant 0 : index
    %805 = vector.load %arg6[%c0_149, %c0_150] : memref<8x128xf32, #tpu.memory_space<vmem>>, vector<8x128xf32>
    tpu.vector_store %arg6[%c0_149, %c0_150], %804 {strides = array<i32>} : memref<8x128xf32, #tpu.memory_space<vmem>>, vector<8x128xf32>,
    %c126 = arith.constant 126 : index
    %806 = memref.load %arg1[%c126] : memref<252xf32, #tpu.memory_space<smem>>
    %c127 = arith.constant 127 : index
    %807 = memref.load %arg1[%c127] : memref<252xf32, #tpu.memory_space<smem>>
    %c128 = arith.constant 128 : index
    %808 = memref.load %arg1[%c128] : memref<252xf32, #tpu.memory_space<smem>>
    %c129 = arith.constant 129 : index
    %809 = memref.load %arg1[%c129] : memref<252xf32, #tpu.memory_space<smem>>
    %c130 = arith.constant 130 : index
    %810 = memref.load %arg1[%c130] : memref<252xf32, #tpu.memory_space<smem>>
    %c131 = arith.constant 131 : index
    %811 = memref.load %arg1[%c131] : memref<252xf32, #tpu.memory_space<smem>>
    %c132 = arith.constant 132 : index
    %812 = memref.load %arg1[%c132] : memref<252xf32, #tpu.memory_space<smem>>
    %c133 = arith.constant 133 : index
    %813 = memref.load %arg1[%c133] : memref<252xf32, #tpu.memory_space<smem>>
    %c134 = arith.constant 134 : index
    %814 = memref.load %arg1[%c134] : memref<252xf32, #tpu.memory_space<smem>>
    %c135 = arith.constant 135 : index
    %815 = memref.load %arg1[%c135] : memref<252xf32, #tpu.memory_space<smem>>
    %c136 = arith.constant 136 : index
    %816 = memref.load %arg1[%c136] : memref<252xf32, #tpu.memory_space<smem>>
    %c137 = arith.constant 137 : index
    %817 = memref.load %arg1[%c137] : memref<252xf32, #tpu.memory_space<smem>>
    %c138 = arith.constant 138 : index
    %818 = memref.load %arg1[%c138] : memref<252xf32, #tpu.memory_space<smem>>
    %c139 = arith.constant 139 : index
    %819 = memref.load %arg1[%c139] : memref<252xf32, #tpu.memory_space<smem>>
    %c140 = arith.constant 140 : index
    %820 = memref.load %arg1[%c140] : memref<252xf32, #tpu.memory_space<smem>>
    %c141 = arith.constant 141 : index
    %821 = memref.load %arg1[%c141] : memref<252xf32, #tpu.memory_space<smem>>
    %c142 = arith.constant 142 : index
    %822 = memref.load %arg1[%c142] : memref<252xf32, #tpu.memory_space<smem>>
    %c143 = arith.constant 143 : index
    %823 = memref.load %arg1[%c143] : memref<252xf32, #tpu.memory_space<smem>>
    %c144 = arith.constant 144 : index
    %824 = memref.load %arg1[%c144] : memref<252xf32, #tpu.memory_space<smem>>
    %c145 = arith.constant 145 : index
    %825 = memref.load %arg1[%c145] : memref<252xf32, #tpu.memory_space<smem>>
    %c146 = arith.constant 146 : index
    %826 = memref.load %arg1[%c146] : memref<252xf32, #tpu.memory_space<smem>>
    %c0_151 = arith.constant 0 : index
    %c0_152 = arith.constant 0 : index
    %c0_153 = arith.constant 0 : index
    %827 = vector.load %arg3[%c0_151, %c0_152, %c0_153] : memref<3x8x128xf32, #tpu.memory_space<vmem>>, vector<1x8x128xf32>
    %828 = vector.shape_cast %827 : vector<1x8x128xf32> to vector<8x128xf32>
    %829 = vector.broadcast %806 : f32 to vector<8x128xf32>
    %830 = arith.subf %828, %829 : vector<8x128xf32>
    %c1_154 = arith.constant 1 : index
    %c0_155 = arith.constant 0 : index
    %c0_156 = arith.constant 0 : index
    %831 = vector.load %arg3[%c1_154, %c0_155, %c0_156] : memref<3x8x128xf32, #tpu.memory_space<vmem>>, vector<1x8x128xf32>
    %832 = vector.shape_cast %831 : vector<1x8x128xf32> to vector<8x128xf32>
    %833 = vector.broadcast %807 : f32 to vector<8x128xf32>
    %834 = arith.subf %832, %833 : vector<8x128xf32>
    %c2_157 = arith.constant 2 : index
    %c0_158 = arith.constant 0 : index
    %c0_159 = arith.constant 0 : index
    %835 = vector.load %arg3[%c2_157, %c0_158, %c0_159] : memref<3x8x128xf32, #tpu.memory_space<vmem>>, vector<1x8x128xf32>
    %836 = vector.shape_cast %835 : vector<1x8x128xf32> to vector<8x128xf32>
    %837 = vector.broadcast %808 : f32 to vector<8x128xf32>
    %838 = arith.subf %836, %837 : vector<8x128xf32>
    %839 = arith.mulf %830, %830 : vector<8x128xf32>
    %840 = arith.mulf %834, %834 : vector<8x128xf32>
    %841 = arith.addf %839, %840 : vector<8x128xf32>
    %842 = arith.mulf %838, %838 : vector<8x128xf32>
    %843 = arith.addf %841, %842 : vector<8x128xf32>
    %844 = vector.broadcast %809 : f32 to vector<8x128xf32>
    %845 = arith.mulf %844, %830 : vector<8x128xf32>
    %846 = vector.broadcast %810 : f32 to vector<8x128xf32>
    %847 = arith.mulf %846, %834 : vector<8x128xf32>
    %848 = arith.addf %845, %847 : vector<8x128xf32>
    %849 = vector.broadcast %811 : f32 to vector<8x128xf32>
    %850 = arith.mulf %849, %838 : vector<8x128xf32>
    %851 = arith.addf %848, %850 : vector<8x128xf32>
    %852 = vector.broadcast %812 : f32 to vector<8x128xf32>
    %853 = arith.mulf %852, %830 : vector<8x128xf32>
    %854 = vector.broadcast %813 : f32 to vector<8x128xf32>
    %855 = arith.mulf %854, %834 : vector<8x128xf32>
    %856 = arith.addf %853, %855 : vector<8x128xf32>
    %857 = vector.broadcast %814 : f32 to vector<8x128xf32>
    %858 = arith.mulf %857, %838 : vector<8x128xf32>
    %859 = arith.addf %856, %858 : vector<8x128xf32>
    %860 = vector.broadcast %824 : f32 to vector<8x128xf32>
    %861 = arith.mulf %860, %830 : vector<8x128xf32>
    %862 = vector.broadcast %825 : f32 to vector<8x128xf32>
    %863 = arith.mulf %862, %834 : vector<8x128xf32>
    %864 = arith.addf %861, %863 : vector<8x128xf32>
    %865 = vector.broadcast %826 : f32 to vector<8x128xf32>
    %866 = arith.mulf %865, %838 : vector<8x128xf32>
    %867 = arith.addf %864, %866 : vector<8x128xf32>
    %868 = arith.addf %851, %851 : vector<8x128xf32>
    %869 = vector.broadcast %821 : f32 to vector<8x128xf32>
    %870 = arith.mulf %851, %869 : vector<8x128xf32>
    %cst_160 = arith.constant 0.000000e+00 : f32
    %871 = vector.broadcast %cst_160 : f32 to vector<8x128xf32>
    %872 = arith.maximumf %870, %871 : vector<8x128xf32>
    %cst_161 = arith.constant 1.000000e+00 : f32
    %873 = vector.broadcast %cst_161 : f32 to vector<8x128xf32>
    %874 = arith.minimumf %872, %873 : vector<8x128xf32>
    %875 = vector.broadcast %815 : f32 to vector<8x128xf32>
    %876 = arith.mulf %874, %875 : vector<8x128xf32>
    %877 = arith.subf %868, %876 : vector<8x128xf32>
    %878 = arith.mulf %874, %877 : vector<8x128xf32>
    %879 = arith.subf %843, %878 : vector<8x128xf32>
    %880 = vector.broadcast %822 : f32 to vector<8x128xf32>
    %881 = arith.mulf %859, %880 : vector<8x128xf32>
    %cst_162 = arith.constant 0.000000e+00 : f32
    %882 = vector.broadcast %cst_162 : f32 to vector<8x128xf32>
    %883 = arith.maximumf %881, %882 : vector<8x128xf32>
    %cst_163 = arith.constant 1.000000e+00 : f32
    %884 = vector.broadcast %cst_163 : f32 to vector<8x128xf32>
    %885 = arith.minimumf %883, %884 : vector<8x128xf32>
    %886 = arith.addf %859, %859 : vector<8x128xf32>
    %887 = vector.broadcast %816 : f32 to vector<8x128xf32>
    %888 = arith.mulf %885, %887 : vector<8x128xf32>
    %889 = arith.subf %886, %888 : vector<8x128xf32>
    %890 = arith.mulf %885, %889 : vector<8x128xf32>
    %891 = arith.subf %843, %890 : vector<8x128xf32>
    %892 = arith.subf %859, %851 : vector<8x128xf32>
    %893 = vector.broadcast %819 : f32 to vector<8x128xf32>
    %894 = arith.addf %892, %893 : vector<8x128xf32>
    %895 = arith.subf %843, %868 : vector<8x128xf32>
    %896 = vector.broadcast %815 : f32 to vector<8x128xf32>
    %897 = arith.addf %895, %896 : vector<8x128xf32>
    %898 = vector.broadcast %823 : f32 to vector<8x128xf32>
    %899 = arith.mulf %894, %898 : vector<8x128xf32>
    %cst_164 = arith.constant 0.000000e+00 : f32
    %900 = vector.broadcast %cst_164 : f32 to vector<8x128xf32>
    %901 = arith.maximumf %899, %900 : vector<8x128xf32>
    %cst_165 = arith.constant 1.000000e+00 : f32
    %902 = vector.broadcast %cst_165 : f32 to vector<8x128xf32>
    %903 = arith.minimumf %901, %902 : vector<8x128xf32>
    %904 = arith.addf %894, %894 : vector<8x128xf32>
    %905 = vector.broadcast %820 : f32 to vector<8x128xf32>
    %906 = arith.mulf %903, %905 : vector<8x128xf32>
    %907 = arith.subf %904, %906 : vector<8x128xf32>
    %908 = arith.mulf %903, %907 : vector<8x128xf32>
    %909 = arith.subf %897, %908 : vector<8x128xf32>
    %910 = vector.broadcast %816 : f32 to vector<8x128xf32>
    %911 = arith.mulf %910, %851 : vector<8x128xf32>
    %912 = vector.broadcast %817 : f32 to vector<8x128xf32>
    %913 = arith.mulf %912, %859 : vector<8x128xf32>
    %914 = arith.subf %911, %913 : vector<8x128xf32>
    %915 = vector.broadcast %815 : f32 to vector<8x128xf32>
    %916 = arith.mulf %915, %859 : vector<8x128xf32>
    %917 = vector.broadcast %817 : f32 to vector<8x128xf32>
    %918 = arith.mulf %917, %851 : vector<8x128xf32>
    %919 = arith.subf %916, %918 : vector<8x128xf32>
    %920 = vector.broadcast %818 : f32 to vector<8x128xf32>
    %921 = arith.subf %920, %914 : vector<8x128xf32>
    %922 = arith.subf %921, %919 : vector<8x128xf32>
    %cst_166 = arith.constant 0.000000e+00 : f32
    %923 = vector.broadcast %cst_166 : f32 to vector<8x128xf32>
    %924 = arith.cmpf oge, %922, %923 : vector<8x128xf32>
    %cst_167 = arith.constant 0.000000e+00 : f32
    %925 = vector.broadcast %cst_167 : f32 to vector<8x128xf32>
    %926 = arith.cmpf oge, %914, %925 : vector<8x128xf32>
    %927 = arith.andi %924, %926 : vector<8x128xi1>
    %cst_168 = arith.constant 0.000000e+00 : f32
    %928 = vector.broadcast %cst_168 : f32 to vector<8x128xf32>
    %929 = arith.cmpf oge, %919, %928 : vector<8x128xf32>
    %930 = arith.andi %927, %929 : vector<8x128xi1>
    %931 = arith.minimumf %879, %891 : vector<8x128xf32>
    %932 = arith.minimumf %931, %909 : vector<8x128xf32>
    %933 = arith.mulf %867, %867 : vector<8x128xf32>
    %934 = arith.select %930, %933, %932 : vector<8x128xi1>, vector<8x128xf32>
    %c0_169 = arith.constant 0 : index
    %c0_170 = arith.constant 0 : index
    %935 = vector.load %arg5[%c0_169, %c0_170] : memref<8x128xf32, #tpu.memory_space<vmem>>, vector<8x128xf32>
    %936 = arith.minimumf %935, %934 : vector<8x128xf32>
    %c0_171 = arith.constant 0 : index
    %c0_172 = arith.constant 0 : index
    %937 = vector.load %arg5[%c0_171, %c0_172] : memref<8x128xf32, #tpu.memory_space<vmem>>, vector<8x128xf32>
    tpu.vector_store %arg5[%c0_171, %c0_172], %936 {strides = array<i32>} : memref<8x128xf32, #tpu.memory_space<vmem>>, vector<8x128xf32>,
    %c0_173 = arith.constant 0 : index
    %c0_174 = arith.constant 0 : index
    %938 = vector.load %arg6[%c0_173, %c0_174] : memref<8x128xf32, #tpu.memory_space<vmem>>, vector<8x128xf32>
    %939 = arith.maximumf %938, %867 : vector<8x128xf32>
    %c0_175 = arith.constant 0 : index
    %c0_176 = arith.constant 0 : index
    %940 = vector.load %arg6[%c0_175, %c0_176] : memref<8x128xf32, #tpu.memory_space<vmem>>, vector<8x128xf32>
    tpu.vector_store %arg6[%c0_175, %c0_176], %939 {strides = array<i32>} : memref<8x128xf32, #tpu.memory_space<vmem>>, vector<8x128xf32>,
    %c147 = arith.constant 147 : index
    %941 = memref.load %arg1[%c147] : memref<252xf32, #tpu.memory_space<smem>>
    %c148 = arith.constant 148 : index
    %942 = memref.load %arg1[%c148] : memref<252xf32, #tpu.memory_space<smem>>
    %c149 = arith.constant 149 : index
    %943 = memref.load %arg1[%c149] : memref<252xf32, #tpu.memory_space<smem>>
    %c150 = arith.constant 150 : index
    %944 = memref.load %arg1[%c150] : memref<252xf32, #tpu.memory_space<smem>>
    %c151 = arith.constant 151 : index
    %945 = memref.load %arg1[%c151] : memref<252xf32, #tpu.memory_space<smem>>
    %c152 = arith.constant 152 : index
    %946 = memref.load %arg1[%c152] : memref<252xf32, #tpu.memory_space<smem>>
    %c153 = arith.constant 153 : index
    %947 = memref.load %arg1[%c153] : memref<252xf32, #tpu.memory_space<smem>>
    %c154 = arith.constant 154 : index
    %948 = memref.load %arg1[%c154] : memref<252xf32, #tpu.memory_space<smem>>
    %c155 = arith.constant 155 : index
    %949 = memref.load %arg1[%c155] : memref<252xf32, #tpu.memory_space<smem>>
    %c156 = arith.constant 156 : index
    %950 = memref.load %arg1[%c156] : memref<252xf32, #tpu.memory_space<smem>>
    %c157 = arith.constant 157 : index
    %951 = memref.load %arg1[%c157] : memref<252xf32, #tpu.memory_space<smem>>
    %c158 = arith.constant 158 : index
    %952 = memref.load %arg1[%c158] : memref<252xf32, #tpu.memory_space<smem>>
    %c159 = arith.constant 159 : index
    %953 = memref.load %arg1[%c159] : memref<252xf32, #tpu.memory_space<smem>>
    %c160 = arith.constant 160 : index
    %954 = memref.load %arg1[%c160] : memref<252xf32, #tpu.memory_space<smem>>
    %c161 = arith.constant 161 : index
    %955 = memref.load %arg1[%c161] : memref<252xf32, #tpu.memory_space<smem>>
    %c162 = arith.constant 162 : index
    %956 = memref.load %arg1[%c162] : memref<252xf32, #tpu.memory_space<smem>>
    %c163 = arith.constant 163 : index
    %957 = memref.load %arg1[%c163] : memref<252xf32, #tpu.memory_space<smem>>
    %c164 = arith.constant 164 : index
    %958 = memref.load %arg1[%c164] : memref<252xf32, #tpu.memory_space<smem>>
    %c165 = arith.constant 165 : index
    %959 = memref.load %arg1[%c165] : memref<252xf32, #tpu.memory_space<smem>>
    %c166 = arith.constant 166 : index
    %960 = memref.load %arg1[%c166] : memref<252xf32, #tpu.memory_space<smem>>
    %c167 = arith.constant 167 : index
    %961 = memref.load %arg1[%c167] : memref<252xf32, #tpu.memory_space<smem>>
    %c0_177 = arith.constant 0 : index
    %c0_178 = arith.constant 0 : index
    %c0_179 = arith.constant 0 : index
    %962 = vector.load %arg3[%c0_177, %c0_178, %c0_179] : memref<3x8x128xf32, #tpu.memory_space<vmem>>, vector<1x8x128xf32>
    %963 = vector.shape_cast %962 : vector<1x8x128xf32> to vector<8x128xf32>
    %964 = vector.broadcast %941 : f32 to vector<8x128xf32>
    %965 = arith.subf %963, %964 : vector<8x128xf32>
    %c1_180 = arith.constant 1 : index
    %c0_181 = arith.constant 0 : index
    %c0_182 = arith.constant 0 : index
    %966 = vector.load %arg3[%c1_180, %c0_181, %c0_182] : memref<3x8x128xf32, #tpu.memory_space<vmem>>, vector<1x8x128xf32>
    %967 = vector.shape_cast %966 : vector<1x8x128xf32> to vector<8x128xf32>
    %968 = vector.broadcast %942 : f32 to vector<8x128xf32>
    %969 = arith.subf %967, %968 : vector<8x128xf32>
    %c2_183 = arith.constant 2 : index
    %c0_184 = arith.constant 0 : index
    %c0_185 = arith.constant 0 : index
    %970 = vector.load %arg3[%c2_183, %c0_184, %c0_185] : memref<3x8x128xf32, #tpu.memory_space<vmem>>, vector<1x8x128xf32>
    %971 = vector.shape_cast %970 : vector<1x8x128xf32> to vector<8x128xf32>
    %972 = vector.broadcast %943 : f32 to vector<8x128xf32>
    %973 = arith.subf %971, %972 : vector<8x128xf32>
    %974 = arith.mulf %965, %965 : vector<8x128xf32>
    %975 = arith.mulf %969, %969 : vector<8x128xf32>
    %976 = arith.addf %974, %975 : vector<8x128xf32>
    %977 = arith.mulf %973, %973 : vector<8x128xf32>
    %978 = arith.addf %976, %977 : vector<8x128xf32>
    %979 = vector.broadcast %944 : f32 to vector<8x128xf32>
    %980 = arith.mulf %979, %965 : vector<8x128xf32>
    %981 = vector.broadcast %945 : f32 to vector<8x128xf32>
    %982 = arith.mulf %981, %969 : vector<8x128xf32>
    %983 = arith.addf %980, %982 : vector<8x128xf32>
    %984 = vector.broadcast %946 : f32 to vector<8x128xf32>
    %985 = arith.mulf %984, %973 : vector<8x128xf32>
    %986 = arith.addf %983, %985 : vector<8x128xf32>
    %987 = vector.broadcast %947 : f32 to vector<8x128xf32>
    %988 = arith.mulf %987, %965 : vector<8x128xf32>
    %989 = vector.broadcast %948 : f32 to vector<8x128xf32>
    %990 = arith.mulf %989, %969 : vector<8x128xf32>
    %991 = arith.addf %988, %990 : vector<8x128xf32>
    %992 = vector.broadcast %949 : f32 to vector<8x128xf32>
    %993 = arith.mulf %992, %973 : vector<8x128xf32>
    %994 = arith.addf %991, %993 : vector<8x128xf32>
    %995 = vector.broadcast %959 : f32 to vector<8x128xf32>
    %996 = arith.mulf %995, %965 : vector<8x128xf32>
    %997 = vector.broadcast %960 : f32 to vector<8x128xf32>
    %998 = arith.mulf %997, %969 : vector<8x128xf32>
    %999 = arith.addf %996, %998 : vector<8x128xf32>
    %1000 = vector.broadcast %961 : f32 to vector<8x128xf32>
    %1001 = arith.mulf %1000, %973 : vector<8x128xf32>
    %1002 = arith.addf %999, %1001 : vector<8x128xf32>
    %1003 = arith.addf %986, %986 : vector<8x128xf32>
    %1004 = vector.broadcast %956 : f32 to vector<8x128xf32>
    %1005 = arith.mulf %986, %1004 : vector<8x128xf32>
    %cst_186 = arith.constant 0.000000e+00 : f32
    %1006 = vector.broadcast %cst_186 : f32 to vector<8x128xf32>
    %1007 = arith.maximumf %1005, %1006 : vector<8x128xf32>
    %cst_187 = arith.constant 1.000000e+00 : f32
    %1008 = vector.broadcast %cst_187 : f32 to vector<8x128xf32>
    %1009 = arith.minimumf %1007, %1008 : vector<8x128xf32>
    %1010 = vector.broadcast %950 : f32 to vector<8x128xf32>
    %1011 = arith.mulf %1009, %1010 : vector<8x128xf32>
    %1012 = arith.subf %1003, %1011 : vector<8x128xf32>
    %1013 = arith.mulf %1009, %1012 : vector<8x128xf32>
    %1014 = arith.subf %978, %1013 : vector<8x128xf32>
    %1015 = vector.broadcast %957 : f32 to vector<8x128xf32>
    %1016 = arith.mulf %994, %1015 : vector<8x128xf32>
    %cst_188 = arith.constant 0.000000e+00 : f32
    %1017 = vector.broadcast %cst_188 : f32 to vector<8x128xf32>
    %1018 = arith.maximumf %1016, %1017 : vector<8x128xf32>
    %cst_189 = arith.constant 1.000000e+00 : f32
    %1019 = vector.broadcast %cst_189 : f32 to vector<8x128xf32>
    %1020 = arith.minimumf %1018, %1019 : vector<8x128xf32>
    %1021 = arith.addf %994, %994 : vector<8x128xf32>
    %1022 = vector.broadcast %951 : f32 to vector<8x128xf32>
    %1023 = arith.mulf %1020, %1022 : vector<8x128xf32>
    %1024 = arith.subf %1021, %1023 : vector<8x128xf32>
    %1025 = arith.mulf %1020, %1024 : vector<8x128xf32>
    %1026 = arith.subf %978, %1025 : vector<8x128xf32>
    %1027 = arith.subf %994, %986 : vector<8x128xf32>
    %1028 = vector.broadcast %954 : f32 to vector<8x128xf32>
    %1029 = arith.addf %1027, %1028 : vector<8x128xf32>
    %1030 = arith.subf %978, %1003 : vector<8x128xf32>
    %1031 = vector.broadcast %950 : f32 to vector<8x128xf32>
    %1032 = arith.addf %1030, %1031 : vector<8x128xf32>
    %1033 = vector.broadcast %958 : f32 to vector<8x128xf32>
    %1034 = arith.mulf %1029, %1033 : vector<8x128xf32>
    %cst_190 = arith.constant 0.000000e+00 : f32
    %1035 = vector.broadcast %cst_190 : f32 to vector<8x128xf32>
    %1036 = arith.maximumf %1034, %1035 : vector<8x128xf32>
    %cst_191 = arith.constant 1.000000e+00 : f32
    %1037 = vector.broadcast %cst_191 : f32 to vector<8x128xf32>
    %1038 = arith.minimumf %1036, %1037 : vector<8x128xf32>
    %1039 = arith.addf %1029, %1029 : vector<8x128xf32>
    %1040 = vector.broadcast %955 : f32 to vector<8x128xf32>
    %1041 = arith.mulf %1038, %1040 : vector<8x128xf32>
    %1042 = arith.subf %1039, %1041 : vector<8x128xf32>
    %1043 = arith.mulf %1038, %1042 : vector<8x128xf32>
    %1044 = arith.subf %1032, %1043 : vector<8x128xf32>
    %1045 = vector.broadcast %951 : f32 to vector<8x128xf32>
    %1046 = arith.mulf %1045, %986 : vector<8x128xf32>
    %1047 = vector.broadcast %952 : f32 to vector<8x128xf32>
    %1048 = arith.mulf %1047, %994 : vector<8x128xf32>
    %1049 = arith.subf %1046, %1048 : vector<8x128xf32>
    %1050 = vector.broadcast %950 : f32 to vector<8x128xf32>
    %1051 = arith.mulf %1050, %994 : vector<8x128xf32>
    %1052 = vector.broadcast %952 : f32 to vector<8x128xf32>
    %1053 = arith.mulf %1052, %986 : vector<8x128xf32>
    %1054 = arith.subf %1051, %1053 : vector<8x128xf32>
    %1055 = vector.broadcast %953 : f32 to vector<8x128xf32>
    %1056 = arith.subf %1055, %1049 : vector<8x128xf32>
    %1057 = arith.subf %1056, %1054 : vector<8x128xf32>
    %cst_192 = arith.constant 0.000000e+00 : f32
    %1058 = vector.broadcast %cst_192 : f32 to vector<8x128xf32>
    %1059 = arith.cmpf oge, %1057, %1058 : vector<8x128xf32>
    %cst_193 = arith.constant 0.000000e+00 : f32
    %1060 = vector.broadcast %cst_193 : f32 to vector<8x128xf32>
    %1061 = arith.cmpf oge, %1049, %1060 : vector<8x128xf32>
    %1062 = arith.andi %1059, %1061 : vector<8x128xi1>
    %cst_194 = arith.constant 0.000000e+00 : f32
    %1063 = vector.broadcast %cst_194 : f32 to vector<8x128xf32>
    %1064 = arith.cmpf oge, %1054, %1063 : vector<8x128xf32>
    %1065 = arith.andi %1062, %1064 : vector<8x128xi1>
    %1066 = arith.minimumf %1014, %1026 : vector<8x128xf32>
    %1067 = arith.minimumf %1066, %1044 : vector<8x128xf32>
    %1068 = arith.mulf %1002, %1002 : vector<8x128xf32>
    %1069 = arith.select %1065, %1068, %1067 : vector<8x128xi1>, vector<8x128xf32>
    %c0_195 = arith.constant 0 : index
    %c0_196 = arith.constant 0 : index
    %1070 = vector.load %arg5[%c0_195, %c0_196] : memref<8x128xf32, #tpu.memory_space<vmem>>, vector<8x128xf32>
    %1071 = arith.minimumf %1070, %1069 : vector<8x128xf32>
    %c0_197 = arith.constant 0 : index
    %c0_198 = arith.constant 0 : index
    %1072 = vector.load %arg5[%c0_197, %c0_198] : memref<8x128xf32, #tpu.memory_space<vmem>>, vector<8x128xf32>
    tpu.vector_store %arg5[%c0_197, %c0_198], %1071 {strides = array<i32>} : memref<8x128xf32, #tpu.memory_space<vmem>>, vector<8x128xf32>,
    %c0_199 = arith.constant 0 : index
    %c0_200 = arith.constant 0 : index
    %1073 = vector.load %arg6[%c0_199, %c0_200] : memref<8x128xf32, #tpu.memory_space<vmem>>, vector<8x128xf32>
    %1074 = arith.maximumf %1073, %1002 : vector<8x128xf32>
    %c0_201 = arith.constant 0 : index
    %c0_202 = arith.constant 0 : index
    %1075 = vector.load %arg6[%c0_201, %c0_202] : memref<8x128xf32, #tpu.memory_space<vmem>>, vector<8x128xf32>
    tpu.vector_store %arg6[%c0_201, %c0_202], %1074 {strides = array<i32>} : memref<8x128xf32, #tpu.memory_space<vmem>>, vector<8x128xf32>,
    %c168 = arith.constant 168 : index
    %1076 = memref.load %arg1[%c168] : memref<252xf32, #tpu.memory_space<smem>>
    %c169 = arith.constant 169 : index
    %1077 = memref.load %arg1[%c169] : memref<252xf32, #tpu.memory_space<smem>>
    %c170 = arith.constant 170 : index
    %1078 = memref.load %arg1[%c170] : memref<252xf32, #tpu.memory_space<smem>>
    %c171 = arith.constant 171 : index
    %1079 = memref.load %arg1[%c171] : memref<252xf32, #tpu.memory_space<smem>>
    %c172 = arith.constant 172 : index
    %1080 = memref.load %arg1[%c172] : memref<252xf32, #tpu.memory_space<smem>>
    %c173 = arith.constant 173 : index
    %1081 = memref.load %arg1[%c173] : memref<252xf32, #tpu.memory_space<smem>>
    %c174 = arith.constant 174 : index
    %1082 = memref.load %arg1[%c174] : memref<252xf32, #tpu.memory_space<smem>>
    %c175 = arith.constant 175 : index
    %1083 = memref.load %arg1[%c175] : memref<252xf32, #tpu.memory_space<smem>>
    %c176 = arith.constant 176 : index
    %1084 = memref.load %arg1[%c176] : memref<252xf32, #tpu.memory_space<smem>>
    %c177 = arith.constant 177 : index
    %1085 = memref.load %arg1[%c177] : memref<252xf32, #tpu.memory_space<smem>>
    %c178 = arith.constant 178 : index
    %1086 = memref.load %arg1[%c178] : memref<252xf32, #tpu.memory_space<smem>>
    %c179 = arith.constant 179 : index
    %1087 = memref.load %arg1[%c179] : memref<252xf32, #tpu.memory_space<smem>>
    %c180 = arith.constant 180 : index
    %1088 = memref.load %arg1[%c180] : memref<252xf32, #tpu.memory_space<smem>>
    %c181 = arith.constant 181 : index
    %1089 = memref.load %arg1[%c181] : memref<252xf32, #tpu.memory_space<smem>>
    %c182 = arith.constant 182 : index
    %1090 = memref.load %arg1[%c182] : memref<252xf32, #tpu.memory_space<smem>>
    %c183 = arith.constant 183 : index
    %1091 = memref.load %arg1[%c183] : memref<252xf32, #tpu.memory_space<smem>>
    %c184 = arith.constant 184 : index
    %1092 = memref.load %arg1[%c184] : memref<252xf32, #tpu.memory_space<smem>>
    %c185 = arith.constant 185 : index
    %1093 = memref.load %arg1[%c185] : memref<252xf32, #tpu.memory_space<smem>>
    %c186 = arith.constant 186 : index
    %1094 = memref.load %arg1[%c186] : memref<252xf32, #tpu.memory_space<smem>>
    %c187 = arith.constant 187 : index
    %1095 = memref.load %arg1[%c187] : memref<252xf32, #tpu.memory_space<smem>>
    %c188 = arith.constant 188 : index
    %1096 = memref.load %arg1[%c188] : memref<252xf32, #tpu.memory_space<smem>>
    %c0_203 = arith.constant 0 : index
    %c0_204 = arith.constant 0 : index
    %c0_205 = arith.constant 0 : index
    %1097 = vector.load %arg3[%c0_203, %c0_204, %c0_205] : memref<3x8x128xf32, #tpu.memory_space<vmem>>, vector<1x8x128xf32>
    %1098 = vector.shape_cast %1097 : vector<1x8x128xf32> to vector<8x128xf32>
    %1099 = vector.broadcast %1076 : f32 to vector<8x128xf32>
    %1100 = arith.subf %1098, %1099 : vector<8x128xf32>
    %c1_206 = arith.constant 1 : index
    %c0_207 = arith.constant 0 : index
    %c0_208 = arith.constant 0 : index
    %1101 = vector.load %arg3[%c1_206, %c0_207, %c0_208] : memref<3x8x128xf32, #tpu.memory_space<vmem>>, vector<1x8x128xf32>
    %1102 = vector.shape_cast %1101 : vector<1x8x128xf32> to vector<8x128xf32>
    %1103 = vector.broadcast %1077 : f32 to vector<8x128xf32>
    %1104 = arith.subf %1102, %1103 : vector<8x128xf32>
    %c2_209 = arith.constant 2 : index
    %c0_210 = arith.constant 0 : index
    %c0_211 = arith.constant 0 : index
    %1105 = vector.load %arg3[%c2_209, %c0_210, %c0_211] : memref<3x8x128xf32, #tpu.memory_space<vmem>>, vector<1x8x128xf32>
    %1106 = vector.shape_cast %1105 : vector<1x8x128xf32> to vector<8x128xf32>
    %1107 = vector.broadcast %1078 : f32 to vector<8x128xf32>
    %1108 = arith.subf %1106, %1107 : vector<8x128xf32>
    %1109 = arith.mulf %1100, %1100 : vector<8x128xf32>
    %1110 = arith.mulf %1104, %1104 : vector<8x128xf32>
    %1111 = arith.addf %1109, %1110 : vector<8x128xf32>
    %1112 = arith.mulf %1108, %1108 : vector<8x128xf32>
    %1113 = arith.addf %1111, %1112 : vector<8x128xf32>
    %1114 = vector.broadcast %1079 : f32 to vector<8x128xf32>
    %1115 = arith.mulf %1114, %1100 : vector<8x128xf32>
    %1116 = vector.broadcast %1080 : f32 to vector<8x128xf32>
    %1117 = arith.mulf %1116, %1104 : vector<8x128xf32>
    %1118 = arith.addf %1115, %1117 : vector<8x128xf32>
    %1119 = vector.broadcast %1081 : f32 to vector<8x128xf32>
    %1120 = arith.mulf %1119, %1108 : vector<8x128xf32>
    %1121 = arith.addf %1118, %1120 : vector<8x128xf32>
    %1122 = vector.broadcast %1082 : f32 to vector<8x128xf32>
    %1123 = arith.mulf %1122, %1100 : vector<8x128xf32>
    %1124 = vector.broadcast %1083 : f32 to vector<8x128xf32>
    %1125 = arith.mulf %1124, %1104 : vector<8x128xf32>
    %1126 = arith.addf %1123, %1125 : vector<8x128xf32>
    %1127 = vector.broadcast %1084 : f32 to vector<8x128xf32>
    %1128 = arith.mulf %1127, %1108 : vector<8x128xf32>
    %1129 = arith.addf %1126, %1128 : vector<8x128xf32>
    %1130 = vector.broadcast %1094 : f32 to vector<8x128xf32>
    %1131 = arith.mulf %1130, %1100 : vector<8x128xf32>
    %1132 = vector.broadcast %1095 : f32 to vector<8x128xf32>
    %1133 = arith.mulf %1132, %1104 : vector<8x128xf32>
    %1134 = arith.addf %1131, %1133 : vector<8x128xf32>
    %1135 = vector.broadcast %1096 : f32 to vector<8x128xf32>
    %1136 = arith.mulf %1135, %1108 : vector<8x128xf32>
    %1137 = arith.addf %1134, %1136 : vector<8x128xf32>
    %1138 = arith.addf %1121, %1121 : vector<8x128xf32>
    %1139 = vector.broadcast %1091 : f32 to vector<8x128xf32>
    %1140 = arith.mulf %1121, %1139 : vector<8x128xf32>
    %cst_212 = arith.constant 0.000000e+00 : f32
    %1141 = vector.broadcast %cst_212 : f32 to vector<8x128xf32>
    %1142 = arith.maximumf %1140, %1141 : vector<8x128xf32>
    %cst_213 = arith.constant 1.000000e+00 : f32
    %1143 = vector.broadcast %cst_213 : f32 to vector<8x128xf32>
    %1144 = arith.minimumf %1142, %1143 : vector<8x128xf32>
    %1145 = vector.broadcast %1085 : f32 to vector<8x128xf32>
    %1146 = arith.mulf %1144, %1145 : vector<8x128xf32>
    %1147 = arith.subf %1138, %1146 : vector<8x128xf32>
    %1148 = arith.mulf %1144, %1147 : vector<8x128xf32>
    %1149 = arith.subf %1113, %1148 : vector<8x128xf32>
    %1150 = vector.broadcast %1092 : f32 to vector<8x128xf32>
    %1151 = arith.mulf %1129, %1150 : vector<8x128xf32>
    %cst_214 = arith.constant 0.000000e+00 : f32
    %1152 = vector.broadcast %cst_214 : f32 to vector<8x128xf32>
    %1153 = arith.maximumf %1151, %1152 : vector<8x128xf32>
    %cst_215 = arith.constant 1.000000e+00 : f32
    %1154 = vector.broadcast %cst_215 : f32 to vector<8x128xf32>
    %1155 = arith.minimumf %1153, %1154 : vector<8x128xf32>
    %1156 = arith.addf %1129, %1129 : vector<8x128xf32>
    %1157 = vector.broadcast %1086 : f32 to vector<8x128xf32>
    %1158 = arith.mulf %1155, %1157 : vector<8x128xf32>
    %1159 = arith.subf %1156, %1158 : vector<8x128xf32>
    %1160 = arith.mulf %1155, %1159 : vector<8x128xf32>
    %1161 = arith.subf %1113, %1160 : vector<8x128xf32>
    %1162 = arith.subf %1129, %1121 : vector<8x128xf32>
    %1163 = vector.broadcast %1089 : f32 to vector<8x128xf32>
    %1164 = arith.addf %1162, %1163 : vector<8x128xf32>
    %1165 = arith.subf %1113, %1138 : vector<8x128xf32>
    %1166 = vector.broadcast %1085 : f32 to vector<8x128xf32>
    %1167 = arith.addf %1165, %1166 : vector<8x128xf32>
    %1168 = vector.broadcast %1093 : f32 to vector<8x128xf32>
    %1169 = arith.mulf %1164, %1168 : vector<8x128xf32>
    %cst_216 = arith.constant 0.000000e+00 : f32
    %1170 = vector.broadcast %cst_216 : f32 to vector<8x128xf32>
    %1171 = arith.maximumf %1169, %1170 : vector<8x128xf32>
    %cst_217 = arith.constant 1.000000e+00 : f32
    %1172 = vector.broadcast %cst_217 : f32 to vector<8x128xf32>
    %1173 = arith.minimumf %1171, %1172 : vector<8x128xf32>
    %1174 = arith.addf %1164, %1164 : vector<8x128xf32>
    %1175 = vector.broadcast %1090 : f32 to vector<8x128xf32>
    %1176 = arith.mulf %1173, %1175 : vector<8x128xf32>
    %1177 = arith.subf %1174, %1176 : vector<8x128xf32>
    %1178 = arith.mulf %1173, %1177 : vector<8x128xf32>
    %1179 = arith.subf %1167, %1178 : vector<8x128xf32>
    %1180 = vector.broadcast %1086 : f32 to vector<8x128xf32>
    %1181 = arith.mulf %1180, %1121 : vector<8x128xf32>
    %1182 = vector.broadcast %1087 : f32 to vector<8x128xf32>
    %1183 = arith.mulf %1182, %1129 : vector<8x128xf32>
    %1184 = arith.subf %1181, %1183 : vector<8x128xf32>
    %1185 = vector.broadcast %1085 : f32 to vector<8x128xf32>
    %1186 = arith.mulf %1185, %1129 : vector<8x128xf32>
    %1187 = vector.broadcast %1087 : f32 to vector<8x128xf32>
    %1188 = arith.mulf %1187, %1121 : vector<8x128xf32>
    %1189 = arith.subf %1186, %1188 : vector<8x128xf32>
    %1190 = vector.broadcast %1088 : f32 to vector<8x128xf32>
    %1191 = arith.subf %1190, %1184 : vector<8x128xf32>
    %1192 = arith.subf %1191, %1189 : vector<8x128xf32>
    %cst_218 = arith.constant 0.000000e+00 : f32
    %1193 = vector.broadcast %cst_218 : f32 to vector<8x128xf32>
    %1194 = arith.cmpf oge, %1192, %1193 : vector<8x128xf32>
    %cst_219 = arith.constant 0.000000e+00 : f32
    %1195 = vector.broadcast %cst_219 : f32 to vector<8x128xf32>
    %1196 = arith.cmpf oge, %1184, %1195 : vector<8x128xf32>
    %1197 = arith.andi %1194, %1196 : vector<8x128xi1>
    %cst_220 = arith.constant 0.000000e+00 : f32
    %1198 = vector.broadcast %cst_220 : f32 to vector<8x128xf32>
    %1199 = arith.cmpf oge, %1189, %1198 : vector<8x128xf32>
    %1200 = arith.andi %1197, %1199 : vector<8x128xi1>
    %1201 = arith.minimumf %1149, %1161 : vector<8x128xf32>
    %1202 = arith.minimumf %1201, %1179 : vector<8x128xf32>
    %1203 = arith.mulf %1137, %1137 : vector<8x128xf32>
    %1204 = arith.select %1200, %1203, %1202 : vector<8x128xi1>, vector<8x128xf32>
    %c0_221 = arith.constant 0 : index
    %c0_222 = arith.constant 0 : index
    %1205 = vector.load %arg5[%c0_221, %c0_222] : memref<8x128xf32, #tpu.memory_space<vmem>>, vector<8x128xf32>
    %1206 = arith.minimumf %1205, %1204 : vector<8x128xf32>
    %c0_223 = arith.constant 0 : index
    %c0_224 = arith.constant 0 : index
    %1207 = vector.load %arg5[%c0_223, %c0_224] : memref<8x128xf32, #tpu.memory_space<vmem>>, vector<8x128xf32>
    tpu.vector_store %arg5[%c0_223, %c0_224], %1206 {strides = array<i32>} : memref<8x128xf32, #tpu.memory_space<vmem>>, vector<8x128xf32>,
    %c0_225 = arith.constant 0 : index
    %c0_226 = arith.constant 0 : index
    %1208 = vector.load %arg6[%c0_225, %c0_226] : memref<8x128xf32, #tpu.memory_space<vmem>>, vector<8x128xf32>
    %1209 = arith.maximumf %1208, %1137 : vector<8x128xf32>
    %c0_227 = arith.constant 0 : index
    %c0_228 = arith.constant 0 : index
    %1210 = vector.load %arg6[%c0_227, %c0_228] : memref<8x128xf32, #tpu.memory_space<vmem>>, vector<8x128xf32>
    tpu.vector_store %arg6[%c0_227, %c0_228], %1209 {strides = array<i32>} : memref<8x128xf32, #tpu.memory_space<vmem>>, vector<8x128xf32>,
    %c189 = arith.constant 189 : index
    %1211 = memref.load %arg1[%c189] : memref<252xf32, #tpu.memory_space<smem>>
    %c190 = arith.constant 190 : index
    %1212 = memref.load %arg1[%c190] : memref<252xf32, #tpu.memory_space<smem>>
    %c191 = arith.constant 191 : index
    %1213 = memref.load %arg1[%c191] : memref<252xf32, #tpu.memory_space<smem>>
    %c192 = arith.constant 192 : index
    %1214 = memref.load %arg1[%c192] : memref<252xf32, #tpu.memory_space<smem>>
    %c193 = arith.constant 193 : index
    %1215 = memref.load %arg1[%c193] : memref<252xf32, #tpu.memory_space<smem>>
    %c194 = arith.constant 194 : index
    %1216 = memref.load %arg1[%c194] : memref<252xf32, #tpu.memory_space<smem>>
    %c195 = arith.constant 195 : index
    %1217 = memref.load %arg1[%c195] : memref<252xf32, #tpu.memory_space<smem>>
    %c196 = arith.constant 196 : index
    %1218 = memref.load %arg1[%c196] : memref<252xf32, #tpu.memory_space<smem>>
    %c197 = arith.constant 197 : index
    %1219 = memref.load %arg1[%c197] : memref<252xf32, #tpu.memory_space<smem>>
    %c198 = arith.constant 198 : index
    %1220 = memref.load %arg1[%c198] : memref<252xf32, #tpu.memory_space<smem>>
    %c199 = arith.constant 199 : index
    %1221 = memref.load %arg1[%c199] : memref<252xf32, #tpu.memory_space<smem>>
    %c200 = arith.constant 200 : index
    %1222 = memref.load %arg1[%c200] : memref<252xf32, #tpu.memory_space<smem>>
    %c201 = arith.constant 201 : index
    %1223 = memref.load %arg1[%c201] : memref<252xf32, #tpu.memory_space<smem>>
    %c202 = arith.constant 202 : index
    %1224 = memref.load %arg1[%c202] : memref<252xf32, #tpu.memory_space<smem>>
    %c203 = arith.constant 203 : index
    %1225 = memref.load %arg1[%c203] : memref<252xf32, #tpu.memory_space<smem>>
    %c204 = arith.constant 204 : index
    %1226 = memref.load %arg1[%c204] : memref<252xf32, #tpu.memory_space<smem>>
    %c205 = arith.constant 205 : index
    %1227 = memref.load %arg1[%c205] : memref<252xf32, #tpu.memory_space<smem>>
    %c206 = arith.constant 206 : index
    %1228 = memref.load %arg1[%c206] : memref<252xf32, #tpu.memory_space<smem>>
    %c207 = arith.constant 207 : index
    %1229 = memref.load %arg1[%c207] : memref<252xf32, #tpu.memory_space<smem>>
    %c208 = arith.constant 208 : index
    %1230 = memref.load %arg1[%c208] : memref<252xf32, #tpu.memory_space<smem>>
    %c209 = arith.constant 209 : index
    %1231 = memref.load %arg1[%c209] : memref<252xf32, #tpu.memory_space<smem>>
    %c0_229 = arith.constant 0 : index
    %c0_230 = arith.constant 0 : index
    %c0_231 = arith.constant 0 : index
    %1232 = vector.load %arg3[%c0_229, %c0_230, %c0_231] : memref<3x8x128xf32, #tpu.memory_space<vmem>>, vector<1x8x128xf32>
    %1233 = vector.shape_cast %1232 : vector<1x8x128xf32> to vector<8x128xf32>
    %1234 = vector.broadcast %1211 : f32 to vector<8x128xf32>
    %1235 = arith.subf %1233, %1234 : vector<8x128xf32>
    %c1_232 = arith.constant 1 : index
    %c0_233 = arith.constant 0 : index
    %c0_234 = arith.constant 0 : index
    %1236 = vector.load %arg3[%c1_232, %c0_233, %c0_234] : memref<3x8x128xf32, #tpu.memory_space<vmem>>, vector<1x8x128xf32>
    %1237 = vector.shape_cast %1236 : vector<1x8x128xf32> to vector<8x128xf32>
    %1238 = vector.broadcast %1212 : f32 to vector<8x128xf32>
    %1239 = arith.subf %1237, %1238 : vector<8x128xf32>
    %c2_235 = arith.constant 2 : index
    %c0_236 = arith.constant 0 : index
    %c0_237 = arith.constant 0 : index
    %1240 = vector.load %arg3[%c2_235, %c0_236, %c0_237] : memref<3x8x128xf32, #tpu.memory_space<vmem>>, vector<1x8x128xf32>
    %1241 = vector.shape_cast %1240 : vector<1x8x128xf32> to vector<8x128xf32>
    %1242 = vector.broadcast %1213 : f32 to vector<8x128xf32>
    %1243 = arith.subf %1241, %1242 : vector<8x128xf32>
    %1244 = arith.mulf %1235, %1235 : vector<8x128xf32>
    %1245 = arith.mulf %1239, %1239 : vector<8x128xf32>
    %1246 = arith.addf %1244, %1245 : vector<8x128xf32>
    %1247 = arith.mulf %1243, %1243 : vector<8x128xf32>
    %1248 = arith.addf %1246, %1247 : vector<8x128xf32>
    %1249 = vector.broadcast %1214 : f32 to vector<8x128xf32>
    %1250 = arith.mulf %1249, %1235 : vector<8x128xf32>
    %1251 = vector.broadcast %1215 : f32 to vector<8x128xf32>
    %1252 = arith.mulf %1251, %1239 : vector<8x128xf32>
    %1253 = arith.addf %1250, %1252 : vector<8x128xf32>
    %1254 = vector.broadcast %1216 : f32 to vector<8x128xf32>
    %1255 = arith.mulf %1254, %1243 : vector<8x128xf32>
    %1256 = arith.addf %1253, %1255 : vector<8x128xf32>
    %1257 = vector.broadcast %1217 : f32 to vector<8x128xf32>
    %1258 = arith.mulf %1257, %1235 : vector<8x128xf32>
    %1259 = vector.broadcast %1218 : f32 to vector<8x128xf32>
    %1260 = arith.mulf %1259, %1239 : vector<8x128xf32>
    %1261 = arith.addf %1258, %1260 : vector<8x128xf32>
    %1262 = vector.broadcast %1219 : f32 to vector<8x128xf32>
    %1263 = arith.mulf %1262, %1243 : vector<8x128xf32>
    %1264 = arith.addf %1261, %1263 : vector<8x128xf32>
    %1265 = vector.broadcast %1229 : f32 to vector<8x128xf32>
    %1266 = arith.mulf %1265, %1235 : vector<8x128xf32>
    %1267 = vector.broadcast %1230 : f32 to vector<8x128xf32>
    %1268 = arith.mulf %1267, %1239 : vector<8x128xf32>
    %1269 = arith.addf %1266, %1268 : vector<8x128xf32>
    %1270 = vector.broadcast %1231 : f32 to vector<8x128xf32>
    %1271 = arith.mulf %1270, %1243 : vector<8x128xf32>
    %1272 = arith.addf %1269, %1271 : vector<8x128xf32>
    %1273 = arith.addf %1256, %1256 : vector<8x128xf32>
    %1274 = vector.broadcast %1226 : f32 to vector<8x128xf32>
    %1275 = arith.mulf %1256, %1274 : vector<8x128xf32>
    %cst_238 = arith.constant 0.000000e+00 : f32
    %1276 = vector.broadcast %cst_238 : f32 to vector<8x128xf32>
    %1277 = arith.maximumf %1275, %1276 : vector<8x128xf32>
    %cst_239 = arith.constant 1.000000e+00 : f32
    %1278 = vector.broadcast %cst_239 : f32 to vector<8x128xf32>
    %1279 = arith.minimumf %1277, %1278 : vector<8x128xf32>
    %1280 = vector.broadcast %1220 : f32 to vector<8x128xf32>
    %1281 = arith.mulf %1279, %1280 : vector<8x128xf32>
    %1282 = arith.subf %1273, %1281 : vector<8x128xf32>
    %1283 = arith.mulf %1279, %1282 : vector<8x128xf32>
    %1284 = arith.subf %1248, %1283 : vector<8x128xf32>
    %1285 = vector.broadcast %1227 : f32 to vector<8x128xf32>
    %1286 = arith.mulf %1264, %1285 : vector<8x128xf32>
    %cst_240 = arith.constant 0.000000e+00 : f32
    %1287 = vector.broadcast %cst_240 : f32 to vector<8x128xf32>
    %1288 = arith.maximumf %1286, %1287 : vector<8x128xf32>
    %cst_241 = arith.constant 1.000000e+00 : f32
    %1289 = vector.broadcast %cst_241 : f32 to vector<8x128xf32>
    %1290 = arith.minimumf %1288, %1289 : vector<8x128xf32>
    %1291 = arith.addf %1264, %1264 : vector<8x128xf32>
    %1292 = vector.broadcast %1221 : f32 to vector<8x128xf32>
    %1293 = arith.mulf %1290, %1292 : vector<8x128xf32>
    %1294 = arith.subf %1291, %1293 : vector<8x128xf32>
    %1295 = arith.mulf %1290, %1294 : vector<8x128xf32>
    %1296 = arith.subf %1248, %1295 : vector<8x128xf32>
    %1297 = arith.subf %1264, %1256 : vector<8x128xf32>
    %1298 = vector.broadcast %1224 : f32 to vector<8x128xf32>
    %1299 = arith.addf %1297, %1298 : vector<8x128xf32>
    %1300 = arith.subf %1248, %1273 : vector<8x128xf32>
    %1301 = vector.broadcast %1220 : f32 to vector<8x128xf32>
    %1302 = arith.addf %1300, %1301 : vector<8x128xf32>
    %1303 = vector.broadcast %1228 : f32 to vector<8x128xf32>
    %1304 = arith.mulf %1299, %1303 : vector<8x128xf32>
    %cst_242 = arith.constant 0.000000e+00 : f32
    %1305 = vector.broadcast %cst_242 : f32 to vector<8x128xf32>
    %1306 = arith.maximumf %1304, %1305 : vector<8x128xf32>
    %cst_243 = arith.constant 1.000000e+00 : f32
    %1307 = vector.broadcast %cst_243 : f32 to vector<8x128xf32>
    %1308 = arith.minimumf %1306, %1307 : vector<8x128xf32>
    %1309 = arith.addf %1299, %1299 : vector<8x128xf32>
    %1310 = vector.broadcast %1225 : f32 to vector<8x128xf32>
    %1311 = arith.mulf %1308, %1310 : vector<8x128xf32>
    %1312 = arith.subf %1309, %1311 : vector<8x128xf32>
    %1313 = arith.mulf %1308, %1312 : vector<8x128xf32>
    %1314 = arith.subf %1302, %1313 : vector<8x128xf32>
    %1315 = vector.broadcast %1221 : f32 to vector<8x128xf32>
    %1316 = arith.mulf %1315, %1256 : vector<8x128xf32>
    %1317 = vector.broadcast %1222 : f32 to vector<8x128xf32>
    %1318 = arith.mulf %1317, %1264 : vector<8x128xf32>
    %1319 = arith.subf %1316, %1318 : vector<8x128xf32>
    %1320 = vector.broadcast %1220 : f32 to vector<8x128xf32>
    %1321 = arith.mulf %1320, %1264 : vector<8x128xf32>
    %1322 = vector.broadcast %1222 : f32 to vector<8x128xf32>
    %1323 = arith.mulf %1322, %1256 : vector<8x128xf32>
    %1324 = arith.subf %1321, %1323 : vector<8x128xf32>
    %1325 = vector.broadcast %1223 : f32 to vector<8x128xf32>
    %1326 = arith.subf %1325, %1319 : vector<8x128xf32>
    %1327 = arith.subf %1326, %1324 : vector<8x128xf32>
    %cst_244 = arith.constant 0.000000e+00 : f32
    %1328 = vector.broadcast %cst_244 : f32 to vector<8x128xf32>
    %1329 = arith.cmpf oge, %1327, %1328 : vector<8x128xf32>
    %cst_245 = arith.constant 0.000000e+00 : f32
    %1330 = vector.broadcast %cst_245 : f32 to vector<8x128xf32>
    %1331 = arith.cmpf oge, %1319, %1330 : vector<8x128xf32>
    %1332 = arith.andi %1329, %1331 : vector<8x128xi1>
    %cst_246 = arith.constant 0.000000e+00 : f32
    %1333 = vector.broadcast %cst_246 : f32 to vector<8x128xf32>
    %1334 = arith.cmpf oge, %1324, %1333 : vector<8x128xf32>
    %1335 = arith.andi %1332, %1334 : vector<8x128xi1>
    %1336 = arith.minimumf %1284, %1296 : vector<8x128xf32>
    %1337 = arith.minimumf %1336, %1314 : vector<8x128xf32>
    %1338 = arith.mulf %1272, %1272 : vector<8x128xf32>
    %1339 = arith.select %1335, %1338, %1337 : vector<8x128xi1>, vector<8x128xf32>
    %c0_247 = arith.constant 0 : index
    %c0_248 = arith.constant 0 : index
    %1340 = vector.load %arg5[%c0_247, %c0_248] : memref<8x128xf32, #tpu.memory_space<vmem>>, vector<8x128xf32>
    %1341 = arith.minimumf %1340, %1339 : vector<8x128xf32>
    %c0_249 = arith.constant 0 : index
    %c0_250 = arith.constant 0 : index
    %1342 = vector.load %arg5[%c0_249, %c0_250] : memref<8x128xf32, #tpu.memory_space<vmem>>, vector<8x128xf32>
    tpu.vector_store %arg5[%c0_249, %c0_250], %1341 {strides = array<i32>} : memref<8x128xf32, #tpu.memory_space<vmem>>, vector<8x128xf32>,
    %c0_251 = arith.constant 0 : index
    %c0_252 = arith.constant 0 : index
    %1343 = vector.load %arg6[%c0_251, %c0_252] : memref<8x128xf32, #tpu.memory_space<vmem>>, vector<8x128xf32>
    %1344 = arith.maximumf %1343, %1272 : vector<8x128xf32>
    %c0_253 = arith.constant 0 : index
    %c0_254 = arith.constant 0 : index
    %1345 = vector.load %arg6[%c0_253, %c0_254] : memref<8x128xf32, #tpu.memory_space<vmem>>, vector<8x128xf32>
    tpu.vector_store %arg6[%c0_253, %c0_254], %1344 {strides = array<i32>} : memref<8x128xf32, #tpu.memory_space<vmem>>, vector<8x128xf32>,
    %c210 = arith.constant 210 : index
    %1346 = memref.load %arg1[%c210] : memref<252xf32, #tpu.memory_space<smem>>
    %c211 = arith.constant 211 : index
    %1347 = memref.load %arg1[%c211] : memref<252xf32, #tpu.memory_space<smem>>
    %c212 = arith.constant 212 : index
    %1348 = memref.load %arg1[%c212] : memref<252xf32, #tpu.memory_space<smem>>
    %c213 = arith.constant 213 : index
    %1349 = memref.load %arg1[%c213] : memref<252xf32, #tpu.memory_space<smem>>
    %c214 = arith.constant 214 : index
    %1350 = memref.load %arg1[%c214] : memref<252xf32, #tpu.memory_space<smem>>
    %c215 = arith.constant 215 : index
    %1351 = memref.load %arg1[%c215] : memref<252xf32, #tpu.memory_space<smem>>
    %c216 = arith.constant 216 : index
    %1352 = memref.load %arg1[%c216] : memref<252xf32, #tpu.memory_space<smem>>
    %c217 = arith.constant 217 : index
    %1353 = memref.load %arg1[%c217] : memref<252xf32, #tpu.memory_space<smem>>
    %c218 = arith.constant 218 : index
    %1354 = memref.load %arg1[%c218] : memref<252xf32, #tpu.memory_space<smem>>
    %c219 = arith.constant 219 : index
    %1355 = memref.load %arg1[%c219] : memref<252xf32, #tpu.memory_space<smem>>
    %c220 = arith.constant 220 : index
    %1356 = memref.load %arg1[%c220] : memref<252xf32, #tpu.memory_space<smem>>
    %c221 = arith.constant 221 : index
    %1357 = memref.load %arg1[%c221] : memref<252xf32, #tpu.memory_space<smem>>
    %c222 = arith.constant 222 : index
    %1358 = memref.load %arg1[%c222] : memref<252xf32, #tpu.memory_space<smem>>
    %c223 = arith.constant 223 : index
    %1359 = memref.load %arg1[%c223] : memref<252xf32, #tpu.memory_space<smem>>
    %c224 = arith.constant 224 : index
    %1360 = memref.load %arg1[%c224] : memref<252xf32, #tpu.memory_space<smem>>
    %c225 = arith.constant 225 : index
    %1361 = memref.load %arg1[%c225] : memref<252xf32, #tpu.memory_space<smem>>
    %c226 = arith.constant 226 : index
    %1362 = memref.load %arg1[%c226] : memref<252xf32, #tpu.memory_space<smem>>
    %c227 = arith.constant 227 : index
    %1363 = memref.load %arg1[%c227] : memref<252xf32, #tpu.memory_space<smem>>
    %c228 = arith.constant 228 : index
    %1364 = memref.load %arg1[%c228] : memref<252xf32, #tpu.memory_space<smem>>
    %c229 = arith.constant 229 : index
    %1365 = memref.load %arg1[%c229] : memref<252xf32, #tpu.memory_space<smem>>
    %c230 = arith.constant 230 : index
    %1366 = memref.load %arg1[%c230] : memref<252xf32, #tpu.memory_space<smem>>
    %c0_255 = arith.constant 0 : index
    %c0_256 = arith.constant 0 : index
    %c0_257 = arith.constant 0 : index
    %1367 = vector.load %arg3[%c0_255, %c0_256, %c0_257] : memref<3x8x128xf32, #tpu.memory_space<vmem>>, vector<1x8x128xf32>
    %1368 = vector.shape_cast %1367 : vector<1x8x128xf32> to vector<8x128xf32>
    %1369 = vector.broadcast %1346 : f32 to vector<8x128xf32>
    %1370 = arith.subf %1368, %1369 : vector<8x128xf32>
    %c1_258 = arith.constant 1 : index
    %c0_259 = arith.constant 0 : index
    %c0_260 = arith.constant 0 : index
    %1371 = vector.load %arg3[%c1_258, %c0_259, %c0_260] : memref<3x8x128xf32, #tpu.memory_space<vmem>>, vector<1x8x128xf32>
    %1372 = vector.shape_cast %1371 : vector<1x8x128xf32> to vector<8x128xf32>
    %1373 = vector.broadcast %1347 : f32 to vector<8x128xf32>
    %1374 = arith.subf %1372, %1373 : vector<8x128xf32>
    %c2_261 = arith.constant 2 : index
    %c0_262 = arith.constant 0 : index
    %c0_263 = arith.constant 0 : index
    %1375 = vector.load %arg3[%c2_261, %c0_262, %c0_263] : memref<3x8x128xf32, #tpu.memory_space<vmem>>, vector<1x8x128xf32>
    %1376 = vector.shape_cast %1375 : vector<1x8x128xf32> to vector<8x128xf32>
    %1377 = vector.broadcast %1348 : f32 to vector<8x128xf32>
    %1378 = arith.subf %1376, %1377 : vector<8x128xf32>
    %1379 = arith.mulf %1370, %1370 : vector<8x128xf32>
    %1380 = arith.mulf %1374, %1374 : vector<8x128xf32>
    %1381 = arith.addf %1379, %1380 : vector<8x128xf32>
    %1382 = arith.mulf %1378, %1378 : vector<8x128xf32>
    %1383 = arith.addf %1381, %1382 : vector<8x128xf32>
    %1384 = vector.broadcast %1349 : f32 to vector<8x128xf32>
    %1385 = arith.mulf %1384, %1370 : vector<8x128xf32>
    %1386 = vector.broadcast %1350 : f32 to vector<8x128xf32>
    %1387 = arith.mulf %1386, %1374 : vector<8x128xf32>
    %1388 = arith.addf %1385, %1387 : vector<8x128xf32>
    %1389 = vector.broadcast %1351 : f32 to vector<8x128xf32>
    %1390 = arith.mulf %1389, %1378 : vector<8x128xf32>
    %1391 = arith.addf %1388, %1390 : vector<8x128xf32>
    %1392 = vector.broadcast %1352 : f32 to vector<8x128xf32>
    %1393 = arith.mulf %1392, %1370 : vector<8x128xf32>
    %1394 = vector.broadcast %1353 : f32 to vector<8x128xf32>
    %1395 = arith.mulf %1394, %1374 : vector<8x128xf32>
    %1396 = arith.addf %1393, %1395 : vector<8x128xf32>
    %1397 = vector.broadcast %1354 : f32 to vector<8x128xf32>
    %1398 = arith.mulf %1397, %1378 : vector<8x128xf32>
    %1399 = arith.addf %1396, %1398 : vector<8x128xf32>
    %1400 = vector.broadcast %1364 : f32 to vector<8x128xf32>
    %1401 = arith.mulf %1400, %1370 : vector<8x128xf32>
    %1402 = vector.broadcast %1365 : f32 to vector<8x128xf32>
    %1403 = arith.mulf %1402, %1374 : vector<8x128xf32>
    %1404 = arith.addf %1401, %1403 : vector<8x128xf32>
    %1405 = vector.broadcast %1366 : f32 to vector<8x128xf32>
    %1406 = arith.mulf %1405, %1378 : vector<8x128xf32>
    %1407 = arith.addf %1404, %1406 : vector<8x128xf32>
    %1408 = arith.addf %1391, %1391 : vector<8x128xf32>
    %1409 = vector.broadcast %1361 : f32 to vector<8x128xf32>
    %1410 = arith.mulf %1391, %1409 : vector<8x128xf32>
    %cst_264 = arith.constant 0.000000e+00 : f32
    %1411 = vector.broadcast %cst_264 : f32 to vector<8x128xf32>
    %1412 = arith.maximumf %1410, %1411 : vector<8x128xf32>
    %cst_265 = arith.constant 1.000000e+00 : f32
    %1413 = vector.broadcast %cst_265 : f32 to vector<8x128xf32>
    %1414 = arith.minimumf %1412, %1413 : vector<8x128xf32>
    %1415 = vector.broadcast %1355 : f32 to vector<8x128xf32>
    %1416 = arith.mulf %1414, %1415 : vector<8x128xf32>
    %1417 = arith.subf %1408, %1416 : vector<8x128xf32>
    %1418 = arith.mulf %1414, %1417 : vector<8x128xf32>
    %1419 = arith.subf %1383, %1418 : vector<8x128xf32>
    %1420 = vector.broadcast %1362 : f32 to vector<8x128xf32>
    %1421 = arith.mulf %1399, %1420 : vector<8x128xf32>
    %cst_266 = arith.constant 0.000000e+00 : f32
    %1422 = vector.broadcast %cst_266 : f32 to vector<8x128xf32>
    %1423 = arith.maximumf %1421, %1422 : vector<8x128xf32>
    %cst_267 = arith.constant 1.000000e+00 : f32
    %1424 = vector.broadcast %cst_267 : f32 to vector<8x128xf32>
    %1425 = arith.minimumf %1423, %1424 : vector<8x128xf32>
    %1426 = arith.addf %1399, %1399 : vector<8x128xf32>
    %1427 = vector.broadcast %1356 : f32 to vector<8x128xf32>
    %1428 = arith.mulf %1425, %1427 : vector<8x128xf32>
    %1429 = arith.subf %1426, %1428 : vector<8x128xf32>
    %1430 = arith.mulf %1425, %1429 : vector<8x128xf32>
    %1431 = arith.subf %1383, %1430 : vector<8x128xf32>
    %1432 = arith.subf %1399, %1391 : vector<8x128xf32>
    %1433 = vector.broadcast %1359 : f32 to vector<8x128xf32>
    %1434 = arith.addf %1432, %1433 : vector<8x128xf32>
    %1435 = arith.subf %1383, %1408 : vector<8x128xf32>
    %1436 = vector.broadcast %1355 : f32 to vector<8x128xf32>
    %1437 = arith.addf %1435, %1436 : vector<8x128xf32>
    %1438 = vector.broadcast %1363 : f32 to vector<8x128xf32>
    %1439 = arith.mulf %1434, %1438 : vector<8x128xf32>
    %cst_268 = arith.constant 0.000000e+00 : f32
    %1440 = vector.broadcast %cst_268 : f32 to vector<8x128xf32>
    %1441 = arith.maximumf %1439, %1440 : vector<8x128xf32>
    %cst_269 = arith.constant 1.000000e+00 : f32
    %1442 = vector.broadcast %cst_269 : f32 to vector<8x128xf32>
    %1443 = arith.minimumf %1441, %1442 : vector<8x128xf32>
    %1444 = arith.addf %1434, %1434 : vector<8x128xf32>
    %1445 = vector.broadcast %1360 : f32 to vector<8x128xf32>
    %1446 = arith.mulf %1443, %1445 : vector<8x128xf32>
    %1447 = arith.subf %1444, %1446 : vector<8x128xf32>
    %1448 = arith.mulf %1443, %1447 : vector<8x128xf32>
    %1449 = arith.subf %1437, %1448 : vector<8x128xf32>
    %1450 = vector.broadcast %1356 : f32 to vector<8x128xf32>
    %1451 = arith.mulf %1450, %1391 : vector<8x128xf32>
    %1452 = vector.broadcast %1357 : f32 to vector<8x128xf32>
    %1453 = arith.mulf %1452, %1399 : vector<8x128xf32>
    %1454 = arith.subf %1451, %1453 : vector<8x128xf32>
    %1455 = vector.broadcast %1355 : f32 to vector<8x128xf32>
    %1456 = arith.mulf %1455, %1399 : vector<8x128xf32>
    %1457 = vector.broadcast %1357 : f32 to vector<8x128xf32>
    %1458 = arith.mulf %1457, %1391 : vector<8x128xf32>
    %1459 = arith.subf %1456, %1458 : vector<8x128xf32>
    %1460 = vector.broadcast %1358 : f32 to vector<8x128xf32>
    %1461 = arith.subf %1460, %1454 : vector<8x128xf32>
    %1462 = arith.subf %1461, %1459 : vector<8x128xf32>
    %cst_270 = arith.constant 0.000000e+00 : f32
    %1463 = vector.broadcast %cst_270 : f32 to vector<8x128xf32>
    %1464 = arith.cmpf oge, %1462, %1463 : vector<8x128xf32>
    %cst_271 = arith.constant 0.000000e+00 : f32
    %1465 = vector.broadcast %cst_271 : f32 to vector<8x128xf32>
    %1466 = arith.cmpf oge, %1454, %1465 : vector<8x128xf32>
    %1467 = arith.andi %1464, %1466 : vector<8x128xi1>
    %cst_272 = arith.constant 0.000000e+00 : f32
    %1468 = vector.broadcast %cst_272 : f32 to vector<8x128xf32>
    %1469 = arith.cmpf oge, %1459, %1468 : vector<8x128xf32>
    %1470 = arith.andi %1467, %1469 : vector<8x128xi1>
    %1471 = arith.minimumf %1419, %1431 : vector<8x128xf32>
    %1472 = arith.minimumf %1471, %1449 : vector<8x128xf32>
    %1473 = arith.mulf %1407, %1407 : vector<8x128xf32>
    %1474 = arith.select %1470, %1473, %1472 : vector<8x128xi1>, vector<8x128xf32>
    %c0_273 = arith.constant 0 : index
    %c0_274 = arith.constant 0 : index
    %1475 = vector.load %arg5[%c0_273, %c0_274] : memref<8x128xf32, #tpu.memory_space<vmem>>, vector<8x128xf32>
    %1476 = arith.minimumf %1475, %1474 : vector<8x128xf32>
    %c0_275 = arith.constant 0 : index
    %c0_276 = arith.constant 0 : index
    %1477 = vector.load %arg5[%c0_275, %c0_276] : memref<8x128xf32, #tpu.memory_space<vmem>>, vector<8x128xf32>
    tpu.vector_store %arg5[%c0_275, %c0_276], %1476 {strides = array<i32>} : memref<8x128xf32, #tpu.memory_space<vmem>>, vector<8x128xf32>,
    %c0_277 = arith.constant 0 : index
    %c0_278 = arith.constant 0 : index
    %1478 = vector.load %arg6[%c0_277, %c0_278] : memref<8x128xf32, #tpu.memory_space<vmem>>, vector<8x128xf32>
    %1479 = arith.maximumf %1478, %1407 : vector<8x128xf32>
    %c0_279 = arith.constant 0 : index
    %c0_280 = arith.constant 0 : index
    %1480 = vector.load %arg6[%c0_279, %c0_280] : memref<8x128xf32, #tpu.memory_space<vmem>>, vector<8x128xf32>
    tpu.vector_store %arg6[%c0_279, %c0_280], %1479 {strides = array<i32>} : memref<8x128xf32, #tpu.memory_space<vmem>>, vector<8x128xf32>,
    %c231 = arith.constant 231 : index
    %1481 = memref.load %arg1[%c231] : memref<252xf32, #tpu.memory_space<smem>>
    %c232 = arith.constant 232 : index
    %1482 = memref.load %arg1[%c232] : memref<252xf32, #tpu.memory_space<smem>>
    %c233 = arith.constant 233 : index
    %1483 = memref.load %arg1[%c233] : memref<252xf32, #tpu.memory_space<smem>>
    %c234 = arith.constant 234 : index
    %1484 = memref.load %arg1[%c234] : memref<252xf32, #tpu.memory_space<smem>>
    %c235 = arith.constant 235 : index
    %1485 = memref.load %arg1[%c235] : memref<252xf32, #tpu.memory_space<smem>>
    %c236 = arith.constant 236 : index
    %1486 = memref.load %arg1[%c236] : memref<252xf32, #tpu.memory_space<smem>>
    %c237 = arith.constant 237 : index
    %1487 = memref.load %arg1[%c237] : memref<252xf32, #tpu.memory_space<smem>>
    %c238 = arith.constant 238 : index
    %1488 = memref.load %arg1[%c238] : memref<252xf32, #tpu.memory_space<smem>>
    %c239 = arith.constant 239 : index
    %1489 = memref.load %arg1[%c239] : memref<252xf32, #tpu.memory_space<smem>>
    %c240 = arith.constant 240 : index
    %1490 = memref.load %arg1[%c240] : memref<252xf32, #tpu.memory_space<smem>>
    %c241 = arith.constant 241 : index
    %1491 = memref.load %arg1[%c241] : memref<252xf32, #tpu.memory_space<smem>>
    %c242 = arith.constant 242 : index
    %1492 = memref.load %arg1[%c242] : memref<252xf32, #tpu.memory_space<smem>>
    %c243 = arith.constant 243 : index
    %1493 = memref.load %arg1[%c243] : memref<252xf32, #tpu.memory_space<smem>>
    %c244 = arith.constant 244 : index
    %1494 = memref.load %arg1[%c244] : memref<252xf32, #tpu.memory_space<smem>>
    %c245 = arith.constant 245 : index
    %1495 = memref.load %arg1[%c245] : memref<252xf32, #tpu.memory_space<smem>>
    %c246 = arith.constant 246 : index
    %1496 = memref.load %arg1[%c246] : memref<252xf32, #tpu.memory_space<smem>>
    %c247 = arith.constant 247 : index
    %1497 = memref.load %arg1[%c247] : memref<252xf32, #tpu.memory_space<smem>>
    %c248 = arith.constant 248 : index
    %1498 = memref.load %arg1[%c248] : memref<252xf32, #tpu.memory_space<smem>>
    %c249 = arith.constant 249 : index
    %1499 = memref.load %arg1[%c249] : memref<252xf32, #tpu.memory_space<smem>>
    %c250 = arith.constant 250 : index
    %1500 = memref.load %arg1[%c250] : memref<252xf32, #tpu.memory_space<smem>>
    %c251 = arith.constant 251 : index
    %1501 = memref.load %arg1[%c251] : memref<252xf32, #tpu.memory_space<smem>>
    %c0_281 = arith.constant 0 : index
    %c0_282 = arith.constant 0 : index
    %c0_283 = arith.constant 0 : index
    %1502 = vector.load %arg3[%c0_281, %c0_282, %c0_283] : memref<3x8x128xf32, #tpu.memory_space<vmem>>, vector<1x8x128xf32>
    %1503 = vector.shape_cast %1502 : vector<1x8x128xf32> to vector<8x128xf32>
    %1504 = vector.broadcast %1481 : f32 to vector<8x128xf32>
    %1505 = arith.subf %1503, %1504 : vector<8x128xf32>
    %c1_284 = arith.constant 1 : index
    %c0_285 = arith.constant 0 : index
    %c0_286 = arith.constant 0 : index
    %1506 = vector.load %arg3[%c1_284, %c0_285, %c0_286] : memref<3x8x128xf32, #tpu.memory_space<vmem>>, vector<1x8x128xf32>
    %1507 = vector.shape_cast %1506 : vector<1x8x128xf32> to vector<8x128xf32>
    %1508 = vector.broadcast %1482 : f32 to vector<8x128xf32>
    %1509 = arith.subf %1507, %1508 : vector<8x128xf32>
    %c2_287 = arith.constant 2 : index
    %c0_288 = arith.constant 0 : index
    %c0_289 = arith.constant 0 : index
    %1510 = vector.load %arg3[%c2_287, %c0_288, %c0_289] : memref<3x8x128xf32, #tpu.memory_space<vmem>>, vector<1x8x128xf32>
    %1511 = vector.shape_cast %1510 : vector<1x8x128xf32> to vector<8x128xf32>
    %1512 = vector.broadcast %1483 : f32 to vector<8x128xf32>
    %1513 = arith.subf %1511, %1512 : vector<8x128xf32>
    %1514 = arith.mulf %1505, %1505 : vector<8x128xf32>
    %1515 = arith.mulf %1509, %1509 : vector<8x128xf32>
    %1516 = arith.addf %1514, %1515 : vector<8x128xf32>
    %1517 = arith.mulf %1513, %1513 : vector<8x128xf32>
    %1518 = arith.addf %1516, %1517 : vector<8x128xf32>
    %1519 = vector.broadcast %1484 : f32 to vector<8x128xf32>
    %1520 = arith.mulf %1519, %1505 : vector<8x128xf32>
    %1521 = vector.broadcast %1485 : f32 to vector<8x128xf32>
    %1522 = arith.mulf %1521, %1509 : vector<8x128xf32>
    %1523 = arith.addf %1520, %1522 : vector<8x128xf32>
    %1524 = vector.broadcast %1486 : f32 to vector<8x128xf32>
    %1525 = arith.mulf %1524, %1513 : vector<8x128xf32>
    %1526 = arith.addf %1523, %1525 : vector<8x128xf32>
    %1527 = vector.broadcast %1487 : f32 to vector<8x128xf32>
    %1528 = arith.mulf %1527, %1505 : vector<8x128xf32>
    %1529 = vector.broadcast %1488 : f32 to vector<8x128xf32>
    %1530 = arith.mulf %1529, %1509 : vector<8x128xf32>
    %1531 = arith.addf %1528, %1530 : vector<8x128xf32>
    %1532 = vector.broadcast %1489 : f32 to vector<8x128xf32>
    %1533 = arith.mulf %1532, %1513 : vector<8x128xf32>
    %1534 = arith.addf %1531, %1533 : vector<8x128xf32>
    %1535 = vector.broadcast %1499 : f32 to vector<8x128xf32>
    %1536 = arith.mulf %1535, %1505 : vector<8x128xf32>
    %1537 = vector.broadcast %1500 : f32 to vector<8x128xf32>
    %1538 = arith.mulf %1537, %1509 : vector<8x128xf32>
    %1539 = arith.addf %1536, %1538 : vector<8x128xf32>
    %1540 = vector.broadcast %1501 : f32 to vector<8x128xf32>
    %1541 = arith.mulf %1540, %1513 : vector<8x128xf32>
    %1542 = arith.addf %1539, %1541 : vector<8x128xf32>
    %1543 = arith.addf %1526, %1526 : vector<8x128xf32>
    %1544 = vector.broadcast %1496 : f32 to vector<8x128xf32>
    %1545 = arith.mulf %1526, %1544 : vector<8x128xf32>
    %cst_290 = arith.constant 0.000000e+00 : f32
    %1546 = vector.broadcast %cst_290 : f32 to vector<8x128xf32>
    %1547 = arith.maximumf %1545, %1546 : vector<8x128xf32>
    %cst_291 = arith.constant 1.000000e+00 : f32
    %1548 = vector.broadcast %cst_291 : f32 to vector<8x128xf32>
    %1549 = arith.minimumf %1547, %1548 : vector<8x128xf32>
    %1550 = vector.broadcast %1490 : f32 to vector<8x128xf32>
    %1551 = arith.mulf %1549, %1550 : vector<8x128xf32>
    %1552 = arith.subf %1543, %1551 : vector<8x128xf32>
    %1553 = arith.mulf %1549, %1552 : vector<8x128xf32>
    %1554 = arith.subf %1518, %1553 : vector<8x128xf32>
    %1555 = vector.broadcast %1497 : f32 to vector<8x128xf32>
    %1556 = arith.mulf %1534, %1555 : vector<8x128xf32>
    %cst_292 = arith.constant 0.000000e+00 : f32
    %1557 = vector.broadcast %cst_292 : f32 to vector<8x128xf32>
    %1558 = arith.maximumf %1556, %1557 : vector<8x128xf32>
    %cst_293 = arith.constant 1.000000e+00 : f32
    %1559 = vector.broadcast %cst_293 : f32 to vector<8x128xf32>
    %1560 = arith.minimumf %1558, %1559 : vector<8x128xf32>
    %1561 = arith.addf %1534, %1534 : vector<8x128xf32>
    %1562 = vector.broadcast %1491 : f32 to vector<8x128xf32>
    %1563 = arith.mulf %1560, %1562 : vector<8x128xf32>
    %1564 = arith.subf %1561, %1563 : vector<8x128xf32>
    %1565 = arith.mulf %1560, %1564 : vector<8x128xf32>
    %1566 = arith.subf %1518, %1565 : vector<8x128xf32>
    %1567 = arith.subf %1534, %1526 : vector<8x128xf32>
    %1568 = vector.broadcast %1494 : f32 to vector<8x128xf32>
    %1569 = arith.addf %1567, %1568 : vector<8x128xf32>
    %1570 = arith.subf %1518, %1543 : vector<8x128xf32>
    %1571 = vector.broadcast %1490 : f32 to vector<8x128xf32>
    %1572 = arith.addf %1570, %1571 : vector<8x128xf32>
    %1573 = vector.broadcast %1498 : f32 to vector<8x128xf32>
    %1574 = arith.mulf %1569, %1573 : vector<8x128xf32>
    %cst_294 = arith.constant 0.000000e+00 : f32
    %1575 = vector.broadcast %cst_294 : f32 to vector<8x128xf32>
    %1576 = arith.maximumf %1574, %1575 : vector<8x128xf32>
    %cst_295 = arith.constant 1.000000e+00 : f32
    %1577 = vector.broadcast %cst_295 : f32 to vector<8x128xf32>
    %1578 = arith.minimumf %1576, %1577 : vector<8x128xf32>
    %1579 = arith.addf %1569, %1569 : vector<8x128xf32>
    %1580 = vector.broadcast %1495 : f32 to vector<8x128xf32>
    %1581 = arith.mulf %1578, %1580 : vector<8x128xf32>
    %1582 = arith.subf %1579, %1581 : vector<8x128xf32>
    %1583 = arith.mulf %1578, %1582 : vector<8x128xf32>
    %1584 = arith.subf %1572, %1583 : vector<8x128xf32>
    %1585 = vector.broadcast %1491 : f32 to vector<8x128xf32>
    %1586 = arith.mulf %1585, %1526 : vector<8x128xf32>
    %1587 = vector.broadcast %1492 : f32 to vector<8x128xf32>
    %1588 = arith.mulf %1587, %1534 : vector<8x128xf32>
    %1589 = arith.subf %1586, %1588 : vector<8x128xf32>
    %1590 = vector.broadcast %1490 : f32 to vector<8x128xf32>
    %1591 = arith.mulf %1590, %1534 : vector<8x128xf32>
    %1592 = vector.broadcast %1492 : f32 to vector<8x128xf32>
    %1593 = arith.mulf %1592, %1526 : vector<8x128xf32>
    %1594 = arith.subf %1591, %1593 : vector<8x128xf32>
    %1595 = vector.broadcast %1493 : f32 to vector<8x128xf32>
    %1596 = arith.subf %1595, %1589 : vector<8x128xf32>
    %1597 = arith.subf %1596, %1594 : vector<8x128xf32>
    %cst_296 = arith.constant 0.000000e+00 : f32
    %1598 = vector.broadcast %cst_296 : f32 to vector<8x128xf32>
    %1599 = arith.cmpf oge, %1597, %1598 : vector<8x128xf32>
    %cst_297 = arith.constant 0.000000e+00 : f32
    %1600 = vector.broadcast %cst_297 : f32 to vector<8x128xf32>
    %1601 = arith.cmpf oge, %1589, %1600 : vector<8x128xf32>
    %1602 = arith.andi %1599, %1601 : vector<8x128xi1>
    %cst_298 = arith.constant 0.000000e+00 : f32
    %1603 = vector.broadcast %cst_298 : f32 to vector<8x128xf32>
    %1604 = arith.cmpf oge, %1594, %1603 : vector<8x128xf32>
    %1605 = arith.andi %1602, %1604 : vector<8x128xi1>
    %1606 = arith.minimumf %1554, %1566 : vector<8x128xf32>
    %1607 = arith.minimumf %1606, %1584 : vector<8x128xf32>
    %1608 = arith.mulf %1542, %1542 : vector<8x128xf32>
    %1609 = arith.select %1605, %1608, %1607 : vector<8x128xi1>, vector<8x128xf32>
    %c0_299 = arith.constant 0 : index
    %c0_300 = arith.constant 0 : index
    %1610 = vector.load %arg5[%c0_299, %c0_300] : memref<8x128xf32, #tpu.memory_space<vmem>>, vector<8x128xf32>
    %1611 = arith.minimumf %1610, %1609 : vector<8x128xf32>
    %c0_301 = arith.constant 0 : index
    %c0_302 = arith.constant 0 : index
    %1612 = vector.load %arg5[%c0_301, %c0_302] : memref<8x128xf32, #tpu.memory_space<vmem>>, vector<8x128xf32>
    tpu.vector_store %arg5[%c0_301, %c0_302], %1611 {strides = array<i32>} : memref<8x128xf32, #tpu.memory_space<vmem>>, vector<8x128xf32>,
    %c0_303 = arith.constant 0 : index
    %c0_304 = arith.constant 0 : index
    %1613 = vector.load %arg6[%c0_303, %c0_304] : memref<8x128xf32, #tpu.memory_space<vmem>>, vector<8x128xf32>
    %1614 = arith.maximumf %1613, %1542 : vector<8x128xf32>
    %c0_305 = arith.constant 0 : index
    %c0_306 = arith.constant 0 : index
    %1615 = vector.load %arg6[%c0_305, %c0_306] : memref<8x128xf32, #tpu.memory_space<vmem>>, vector<8x128xf32>
    tpu.vector_store %arg6[%c0_305, %c0_306], %1614 {strides = array<i32>} : memref<8x128xf32, #tpu.memory_space<vmem>>, vector<8x128xf32>,
    %c0_307 = arith.constant 0 : index
    %1616 = memref.load %arg2[%c0_307] : memref<2xf32, #tpu.memory_space<smem>>
    %c1_308 = arith.constant 1 : index
    %1617 = memref.load %arg2[%c1_308] : memref<2xf32, #tpu.memory_space<smem>>
    %c0_309 = arith.constant 0 : index
    %c0_310 = arith.constant 0 : index
    %1618 = vector.load %arg5[%c0_309, %c0_310] : memref<8x128xf32, #tpu.memory_space<vmem>>, vector<8x128xf32>
    %cst_311 = arith.constant 0.000000e+00 : f32
    %1619 = vector.broadcast %cst_311 : f32 to vector<8x128xf32>
    %1620 = arith.maximumf %1618, %1619 : vector<8x128xf32>
    %1621 = math.sqrt %1620 : vector<8x128xf32>
    %1622 = vector.broadcast %1616 : f32 to vector<8x128xf32>
    %1623 = arith.mulf %1621, %1622 : vector<8x128xf32>
    %c0_312 = arith.constant 0 : index
    %c0_313 = arith.constant 0 : index
    %1624 = vector.load %arg6[%c0_312, %c0_313] : memref<8x128xf32, #tpu.memory_space<vmem>>, vector<8x128xf32>
    %1625 = vector.broadcast %1617 : f32 to vector<8x128xf32>
    %1626 = arith.cmpf ole, %1624, %1625 : vector<8x128xf32>
    %cst_314 = arith.constant 0.000000e+00 : f32
    %1627 = vector.broadcast %cst_314 : f32 to vector<8x128xf32>
    %1628 = arith.subf %1627, %1623 : vector<8x128xf32>
    %1629 = arith.select %1626, %1628, %1623 : vector<8x128xi1>, vector<8x128xf32>
    %c0_315 = arith.constant 0 : index
    %c0_316 = arith.constant 0 : index
    %1630 = vector.load %arg4[%c0_315, %c0_316] : memref<8x128xf32, #tpu.memory_space<vmem>>, vector<8x128xf32>
    tpu.vector_store %arg4[%c0_315, %c0_316], %1629 {strides = array<i32>} : memref<8x128xf32, #tpu.memory_space<vmem>>, vector<8x128xf32>,
    return
  }
  func.func @transform_0(%arg0: i32) -> i32 {
    %c0_i32 = arith.constant 0 : i32
    %c0_i32_0 = arith.constant 0 : i32
    return %c0_i32 : i32
  }
  func.func @transform_1(%arg0: i32) -> i32 {
    %c0_i32 = arith.constant 0 : i32
    %c0_i32_0 = arith.constant 0 : i32
    return %c0_i32 : i32
  }
  func.func @transform_2(%arg0: i32) -> (i32, i32, i32) {
    %c0_i32 = arith.constant 0 : i32
    %c0_i32_0 = arith.constant 0 : i32
    %c0_i32_1 = arith.constant 0 : i32
    return %c0_i32, %arg0, %c0_i32_0 : i32, i32, i32
  }
  func.func @transform_3(%arg0: i32) -> (i32, i32) {
    %c0_i32 = arith.constant 0 : i32
    %c0_i32_0 = arith.constant 0 : i32
    return %arg0, %c0_i32 : i32, i32
  }
}

</mosaic_0001>

<bundles_post_ra>
// kernel: sdf_loss_forward.1
= control target key start
LH: loop header
LB: loop body
LE: loop exit
PB: predicated region body
PF: predicated region fallthrough
CT: control target
= control target key end

     0   :  { %8 = vsyncpa [#allocation5], 0  ;;  %s3812_s0 = inlined_call_operand.vmem [shape: f32[252], index: 0, kind: input, shape index: {}]   ;;  %s3813_s1 = inlined_call_operand.vmem [shape: f32[2], index: 1, kind: input, shape index: {}]   ;;  %s3814_s2 = inlined_call_operand.vmem [shape: f32[3,8,128], index: 2, kind: input, shape index: {}]   ;;  %s3815_s3 = inlined_call_operand.vmem [shape: f32[8,128], index: 3, kind: output, shape index: {}]  }
   0x1   :  { %s16_s14 = sshll.u32 %s3812_s0, 4  ;;  %s17_s14 = int_to_ptr.vmem [resolvable:$true] %s16_s14 }
   0x2   :  { %9 = vsyncpa [#allocation7], 0  ;;  %s26_s17 = sshll.u32 %s3813_s1, 4  ;;  %s1770_s18 = scalar_lea.vmem %s17_s14, 32  ;;  %s27_s17 = int_to_ptr.vmem [resolvable:$true] %s26_s17 }
   0x3   :  { %p1771_p0 = scmp.ne.s32.totalorder %s17_s14, %s1770_s18  ;;  %p1775_p1 = scmp.lt.s32.totalorder %s17_s14, %s17_s14 }
   0x4   :  { %p1776_p2 = scmp.lt.s32.totalorder %s1770_s18, %s1770_s18 }
   0x6   :  { %p1777_p3 = por %p1776_p2, %p1775_p1 }
   0x8   :  { %p1778_p4 = pnand %p1777_p3, %p1771_p0 }
   0xa   :  { %1781 = shalt.err (!%p1778_p4)
}
   0xb   :  { %s1798_s19 = smov [#allocation4]   ;;  %s1782_s20 = scalar_lea.vmem %s27_s17, 16 }
   0xc   :  { %19 = dma.vmem_to_smem %s17_s14, 32, %s1798_s19, [#allocation5]  }
   0xd   :  { %p1783_p5 = scmp.ne.s32.totalorder %s27_s17, %s1782_s20  ;;  %p1787_p6 = scmp.lt.s32.totalorder %s27_s17, %s27_s17 }
   0xe   :  { %p1788_p7 = scmp.lt.s32.totalorder %s1782_s20, %s1782_s20 }
  0x10   :  { %p1789_p8 = por %p1788_p7, %p1787_p6 }
  0x12   :  { %p1790_p9 = pnand %p1789_p8, %p1783_p5 }
  0x14   :  { %1793 = shalt.err (!%p1790_p9)
}
  0x15   :  { %s1799_s0 = smov [#allocation6]  }
  0x16   :  { %29 = dma.vmem_to_smem %s27_s17, 16, %s1799_s0, [#allocation7]  }
  0x17   :  { %1794 = dma.done.wait [#allocation5], 32  }
  0x18   :  { %1795 = vsyncadd [#allocation5], 4294967264 }
  0x19   :  { %1796 = dma.done.wait [#allocation7], 16  }
  0x1a   :  { %1797 = vsyncadd [#allocation7], 4294967280 }
  0x1b   :  { %38 = sfence }
  0x1c   :  { %s39_s1 = sld [smem:[#allocation4]]  ;;  %s1490_s21 = sld [smem:[#allocation4 + $0x1]]  ;;  %v1829_v0 = vld [vmem:[%s3814_s2] sm:$0xff]  ;;  %v1834_v1 = vld [vmem:[%s3814_s2 + $0x8] sm:$0xff]  ;;  %v1839_v2 = vld [vmem:[%s3814_s2 + $0x10] sm:$0xff] }
  0x1d   :  { %s1491_s22 = sld [smem:[#allocation4 + $0x2]]  ;;  %s1492_s23 = sld [smem:[#allocation4 + $0x3]] }
  0x1e   :  { %s1493_s24 = sld [smem:[#allocation4 + $0x4]]  ;;  %s1494_s25 = sld [smem:[#allocation4 + $0x5]] }
  0x1f   :  { %s1495_s26 = sld [smem:[#allocation4 + $0x6]]  ;;  %s1496_s27 = sld [smem:[#allocation4 + $0x7]] }
  0x20   :  { %s1497_s28 = sld [smem:[#allocation4 + $0x8]]  ;;  %s1847_s8 = sld [smem:[#allocation4 + $0xf]] }
  0x21   :  { %s1849_s9 = sld [smem:[#allocation4 + $0x10]]  ;;  %s1502_s10 = sld [smem:[#allocation4 + $0xd]] }
  0x22   :  { %v61_v3 = vstv %s39_s1  ;;  %v65_v4 = vstv %s1490_s21  ;;  %s1859_s11 = sld [smem:[#allocation4 + $0x11]]  ;;  %s1866_s12 = sld [smem:[#allocation4 + $0x15]] }
  0x23   :  { %v1842_v5 = vsub.f32 %v1829_v0, %v61_v3  ;;  %v1845_v6 = vsub.f32 %v1834_v1, %v65_v4  ;;  %v69_v7 = vstv %s1491_s22  ;;  %v76_v8 = vstv %s1492_s23  ;;  %s1868_s13 = sld [smem:[#allocation4 + $0x9]]  ;;  %s1872_s14 = sld [smem:[#allocation4 + $0xa]] }
  0x24   :  { %v1852_v9 = vsub.f32 %v1839_v2, %v69_v7  ;;  %v78_v10 = vstv %s1493_s24  ;;  %v81_v11 = vstv %s1494_s25  ;;  %s1876_s15 = sld [smem:[#allocation4 + $0x16]]  ;;  %s1878_s16 = sld [smem:[#allocation4 + $0x12]] }
  0x25   :  { %v77_v12 = vmul.f32 %v76_v8, %v1842_v5  ;;  %v79_v13 = vmul.f32 %v78_v10, %v1845_v6  ;;  %v84_v15 = vstv %s1495_s26  ;;  %v86_v16 = vstv %s1496_s27  ;;  %s1880_s17 = sld [smem:[#allocation4 + $0x17]]  ;;  %s1882_s18 = sld [smem:[#allocation4 + $0xe]] }
  0x26   :  { %v82_v14 = vmul.f32 %v81_v11, %v1852_v9  ;;  %v85_v18 = vmul.f32 %v84_v15, %v1842_v5  ;;  %v87_v19 = vmul.f32 %v86_v16, %v1845_v6  ;;  %v89_v20 = vstv %s1497_s28  ;;  %s1886_s19 = sld [smem:[#allocation4 + $0x13]]  ;;  %s1888_s20 = sld [smem:[#allocation4 + $0x18]] }
  0x27   :  { %v80_v17 = vadd.f32 %v79_v13, %v77_v12  ;;  %v90_v23 = vmul.f32 %v89_v20, %v1852_v9  ;;  %v101_v25 = vstv %s1847_s8  ;;  %v110_v26 = vstv %s1849_s9  ;;  %s1890_s0 = sld [smem:[#allocation4 + $0x14]]  ;;  %s1897_s1 = sld [smem:[#allocation4 + $0x19]] }
  0x28   :  { %v88_v22 = vadd.f32 %v87_v19, %v85_v18  ;;  %v121_v28 = vstv %s1502_s10  ;;  %v71_v32 = vmul.f32 %v1842_v5, %v1842_v5  ;;  %v72_v33 = vmul.f32 %v1845_v6, %v1845_v6  ;;  %s1899_s21 = sld [smem:[#allocation4 + $0x1a]]  ;;  %s1901_s22 = sld [smem:[#allocation4 + $0x1b]] }
  0x29   :  { %v1861_v21 = vadd.f32 %v82_v14, %v80_v17  ;;  %v125_v34 = vstv %s1859_s11  ;;  %v178_v37 = vstv %s1866_s12  ;;  %s1904_s23 = sld [smem:[#allocation4 + $0x1c]]  ;;  %s1906_s24 = sld [smem:[#allocation4 + $0x1d]]  ;;  %v74_v40 = vmul.f32 %v1852_v9, %v1852_v9 }
  0x2a   :  { %v1864_v24 = vadd.f32 %v90_v23, %v88_v22  ;;  %v73_v39 = vadd.f32 %v72_v33, %v71_v32  ;;  %v1911_v41 = vsub.f32 %v1829_v0, %v178_v37  ;;  %v181_v42 = vstv %s1876_s15  ;;  %s1914_s25 = sld [smem:[#allocation4 + $0xb]]  ;;  %s1930_s26 = sld [smem:[#allocation4 + $0x24]] }
  0x2b   :  { %v102_v29 = vmul.f32 %v101_v25, %v1861_v21  ;;  %v92_v43 = vstv %s1878_s16  ;;  %v1918_v44 = vstv %s1868_s13  ;;  %v115_v45 = vstv %s1872_s14  ;;  %s1932_s27 = sld [smem:[#allocation4 + $0x25]]  ;;  %s1944_s28 = sld [smem:[#allocation4 + $0x22]] }
  0x2c   :  { %v120_v27 = vsub.f32 %v1864_v24, %v1861_v21  ;;  %v111_v30 = vmul.f32 %v110_v26, %v1864_v24  ;;  %v184_v46 = vstv %s1880_s17  ;;  %v1923_v49 = vsub.f32 %v1834_v1, %v181_v42  ;;  %s1958_s29 = sld [smem:[#allocation4 + $0x26]]  ;;  %s1969_s30 = sld [smem:[#allocation4 + $0xc]] }
  0x2d   :  { %v103_v35 = vmax.f32 %v102_v29, 0.0  ;;  %v1926_v50 = vsub.f32 %v1839_v2, %v184_v46  ;;  %v94_v51 = vstv %s1886_s19  ;;  %v130_v53 = vstv %s1882_s18  ;;  %s1974_s4 = sld [smem:[#allocation4 + $0x1e]]  ;;  %s1976_s5 = sld [smem:[#allocation4 + $0x27]] }
  0x2e   :  { %v122_v31 = vadd.f32 %v121_v28, %v120_v27  ;;  %v112_v36 = vmax.f32 %v111_v30, 0.0  ;;  %v191_v54 = vstv %s1888_s20  ;;  %v93_v55 = vmul.f32 %v92_v43, %v1842_v5  ;;  %s1989_s6 = sld [smem:[#allocation4 + $0x28]]  ;;  %s1992_s7 = sld [smem:[#allocation4 + $0x2a]] }
  0x2f   :  { %v104_v47 = vmin.f32 %v103_v35, 1.0  ;;  %v97_v56 = vstv %s1890_s0  ;;  %v1939_v57 = vadd.f32 %v1861_v21, %v1861_v21  ;;  %v192_v58 = vmul.f32 %v191_v54, %v1911_v41  ;;  %s1995_s8 = sld [smem:[#allocation4 + $0x1f]]  ;;  %s2001_s9 = sld [smem:[#allocation4 + $0x2b]] }
  0x30   :  { %v126_v38 = vmul.f32 %v125_v34, %v122_v31  ;;  %v113_v48 = vmin.f32 %v112_v36, 1.0  ;;  %v114_v59 = vadd.f32 %v1864_v24, %v1864_v24  ;;  %v193_v60 = vstv %s1897_s1  ;;  %s2008_s10 = sld [smem:[#allocation4 + $0x2c]]  ;;  %s2010_s11 = sld [smem:[#allocation4 + $0x2d]] }
  0x31   :  { %v196_v61 = vstv %s1899_s21  ;;  %v199_v62 = vstv %s1901_s22  ;;  %v106_v63 = vmul.f32 %v1918_v44, %v104_v47  ;;  %v194_v4 = vmul.f32 %v193_v60, %v1923_v49  ;;  %s2012_s12 = sld [smem:[#allocation4 + $0x29]]  ;;  %s2019_s13 = sld [smem:[#allocation4 + $0x20]] }
  0x32   :  { %v127_v52 = vmax.f32 %v126_v38, 0.0  ;;  %v116_v3 = vmul.f32 %v115_v45, %v113_v48  ;;  %v197_v5 = vmul.f32 %v196_v61, %v1926_v50  ;;  %v200_v8 = vmul.f32 %v199_v62, %v1911_v41  ;;  %s2026_s14 = sld [smem:[#allocation4 + $0x2e]]  ;;  %s2034_s15 = sld [smem:[#allocation4 + $0x2f]] }
  0x33   :  { %v201_v10 = vstv %s1904_s23  ;;  %v204_v11 = vstv %s1906_s24  ;;  %v95_v12 = vmul.f32 %v94_v51, %v1845_v6  ;;  %v195_v13 = vadd.f32 %v194_v4, %v192_v58  ;;  %s2036_s16 = sld [smem:[#allocation4 + $0x30]]  ;;  %s2045_s17 = sld [smem:[#allocation4 + $0x23]] }
  0x34   :  { %v1952_v7 = vmin.f32 %v127_v52, 1.0  ;;  %v202_v14 = vmul.f32 %v201_v10, %v1923_v49  ;;  %v205_v15 = vmul.f32 %v204_v11, %v1926_v50  ;;  %v1962_v16 = vadd.f32 %v74_v40, %v73_v39  ;;  %s2054_s18 = sld [smem:[#allocation4 + $0x31]]  ;;  %s2056_s19 = sld [smem:[#allocation4 + $0x32]] }
  0x35   :  { %v98_v17 = vmul.f32 %v97_v56, %v1852_v9  ;;  %v136_v18 = vstv %s1914_s25  ;;  %v107_v19 = vsub.f32 %v1939_v57, %v106_v63  ;;  %v129_v20 = vadd.f32 %v122_v31, %v122_v31  ;;  %s2072_s20 = sld [smem:[#allocation4 + $0x21]]  ;;  %s2087_s1 = sld [smem:[#allocation4 + $0x3a]] }
  0x36   :  { %v1967_v22 = vadd.f32 %v197_v5, %v195_v13  ;;  %v203_v23 = vadd.f32 %v202_v14, %v200_v8  ;;  %v117_v6 = vsub.f32 %v114_v59, %v116_v3  ;;  %v131_v25 = vmul.f32 %v130_v53, %v1952_v7  ;;  %s2077_s0 = sld [smem:[#allocation4 + $0x39]]  ;;  %s2095_s21 = sld [smem:[#allocation4 + $0x37]] }
  0x37   :  { %v216_v26 = vstv %s1930_s26  ;;  %v225_v27 = vstv %s1932_s27  ;;  %v96_v28 = vadd.f32 %v95_v12, %v93_v55  ;;  %v186_v9 = vmul.f32 %v1911_v41, %v1911_v41  ;;  %s2106_s22 = sld [smem:[#allocation4 + $0x3b]]  ;;  %s2120_s24 = sld [smem:[#allocation4 + $0x3c]] }
  0x38   :  { %v187_v29 = vmul.f32 %v1923_v49, %v1923_v49  ;;  %v1982_v30 = vadd.f32 %v205_v15, %v203_v23  ;;  %v123_v31 = vsub.f32 %v1962_v16, %v1939_v57  ;;  %v135_v32 = vmul.f32 %v115_v45, %v1861_v21  ;;  %s2118_s23 = sld [smem:[#allocation4 + $0x33]]  ;;  %s2134_s25 = sld [smem:[#allocation4 + $0x34]] }
  0x39   :  { %v139_v33 = vmul.f32 %v1918_v44, %v1864_v24  ;;  %v236_v34 = vstv %s1944_s28  ;;  %v137_v35 = vmul.f32 %v136_v18, %v1864_v24  ;;  %v217_v36 = vmul.f32 %v216_v26, %v1967_v22  ;;  %s2137_s26 = sld [smem:[#allocation4 + $0x3f]]  ;;  %s2143_s27 = sld [smem:[#allocation4 + $0x3d]] }
  0x3a   :  { %v226_v37 = vmul.f32 %v225_v27, %v1982_v30  ;;  %v235_v38 = vsub.f32 %v1982_v30, %v1967_v22  ;;  %v2003_v39 = vmul.f32 %v107_v19, %v104_v47  ;;  %v2005_v40 = vmul.f32 %v117_v6, %v113_v48  ;;  %s2145_s28 = sld [smem:[#allocation4 + $0x3e]] }
  0x3b   :  { %v132_v42 = vsub.f32 %v129_v20, %v131_v25  ;;  %v140_v43 = vmul.f32 %v136_v18, %v1861_v21  ;;  %v188_v24 = vadd.f32 %v187_v29, %v186_v9  ;;  %v189_v45 = vmul.f32 %v1926_v50, %v1926_v50 }
  0x3c   :  { %v2016_v46 = vadd.f32 %v236_v34, %v235_v38  ;;  %v240_v47 = vstv %s1958_s29  ;;  %v2021_v48 = vadd.f32 %v98_v17, %v96_v28  ;;  %v2024_v21 = vadd.f32 %v123_v31, %v1918_v44  ;;  %s2157_s29 = sld [smem:[#allocation4 + $0x40]] }
  0x3d   :  { %v218_v51 = vmax.f32 %v217_v36, 0.0  ;;  %v227_v52 = vmax.f32 %v226_v37, 0.0  ;;  %v2028_v53 = vsub.f32 %v135_v32, %v137_v35  ;;  %v2030_v54 = vsub.f32 %v139_v33, %v140_v43 }
  0x3e   :  { %v142_v55 = vstv %s1969_s30  ;;  %v241_v56 = vmul.f32 %v240_v47, %v2016_v46  ;;  %v109_v44 = vsub.f32 %v1962_v16, %v2003_v39  ;;  %v119_v57 = vsub.f32 %v1962_v16, %v2005_v40  ;;  %s2159_s30 = sld [smem:[#allocation4 + $0x41]] }
  0x3f   :  { %v2043_v58 = vmul.f32 %v132_v42, %v1952_v7  ;;  %v2047_v59 = vadd.f32 %v189_v45, %v188_v24  ;;  %v207_v60 = vstv %s1976_s5  ;;  %v209_v61 = vstv %s1989_s6  ;;  %s2174_s5 = sld [smem:[#allocation4 + $0x42]]  ;;  %s2181_s6 = sld [smem:[#allocation4 + $0x38]] }
  0x40   :  { %v2052_v62 = vstv %s1974_s4  ;;  %v297_v63 = vstv %s1992_s7  ;;  %v219_v3 = vmin.f32 %v218_v51, 1.0  ;;  %v228_v4 = vmin.f32 %v227_v52, 1.0  ;;  %s2167_s4 = sld [smem:[#allocation4 + $0x35]]  ;;  %s2183_s7 = sld [smem:[#allocation4 + $0x43]] }
  0x41   :  { %v230_v5 = vstv %s1995_s8  ;;  %v2061_v7 = vsub.f32 %v1829_v0, %v297_v63  ;;  %v242_v8 = vmax.f32 %v241_v56, 0.0  ;;  %v300_v10 = vstv %s2001_s9  ;;  %s2194_s8 = sld [smem:[#allocation4 + $0x44]]  ;;  %s2196_s9 = sld [smem:[#allocation4 + $0x45]] }
  0x42   :  { %v303_v11 = vstv %s2008_s10  ;;  %v310_v12 = vstv %s2010_s11  ;;  %v208_v13 = vmul.f32 %v207_v60, %v1911_v41  ;;  %v210_v14 = vmul.f32 %v209_v61, %v1923_v49  ;;  %s2207_s10 = sld [smem:[#allocation4 + $0x46]]  ;;  %s2209_s11 = sld [smem:[#allocation4 + $0x47]] }
  0x43   :  { %v212_v15 = vstv %s2012_s12  ;;  %v2070_v17 = vsub.f32 %v1834_v1, %v300_v10  ;;  %v215_v18 = vadd.f32 %v1967_v22, %v1967_v22  ;;  %v251_v19 = vstv %s2019_s13  ;;  %s2242_s12 = sld [smem:[#allocation4 + $0x4e]] }
  0x44   :  { %v2080_v20 = vsub.f32 %v1839_v2, %v303_v11  ;;  %v311_v41 = vmul.f32 %v310_v12, %v2061_v7  ;;  %v221_v49 = vmul.f32 %v2052_v62, %v219_v3  ;;  %v229_v23 = vadd.f32 %v1982_v30, %v1982_v30  ;;  %s2249_s13 = sld [smem:[#allocation4 + $0x36]] }
  0x45   :  { %v231_v6 = vmul.f32 %v230_v5, %v228_v4  ;;  %v312_v25 = vstv %s2026_s14  ;;  %v243_v26 = vmin.f32 %v242_v8, 1.0  ;;  %v315_v28 = vstv %s2034_s15  ;;  %s2257_s14 = sld [smem:[#allocation4 + $0x4f]]  ;;  %s2264_s15 = sld [smem:[#allocation4 + $0x4c]] }
  0x46   :  { %v313_v27 = vmul.f32 %v312_v25, %v2070_v17  ;;  %v318_v9 = vstv %s2036_s16  ;;  %v245_v29 = vstv %s2045_s17  ;;  %v250_v31 = vmul.f32 %v230_v5, %v1967_v22  ;;  %s2276_s16 = sld [smem:[#allocation4 + $0x50]]  ;;  %s2285_s17 = sld [smem:[#allocation4 + $0x51]] }
  0x47   :  { %v252_v32 = vmul.f32 %v251_v19, %v1982_v30  ;;  %v316_v33 = vmul.f32 %v315_v28, %v2080_v20  ;;  %v319_v35 = vmul.f32 %v318_v9, %v2061_v7  ;;  %v320_v36 = vstv %s2054_s18  ;;  %s2300_s18 = sld [smem:[#allocation4 + $0x52]] }
  0x48   :  { %v314_v34 = vadd.f32 %v313_v27, %v311_v41  ;;  %v323_v37 = vstv %s2056_s19  ;;  %v222_v38 = vsub.f32 %v215_v18, %v221_v49  ;;  %v232_v42 = vsub.f32 %v229_v23, %v231_v6  ;;  %s2302_s19 = sld [smem:[#allocation4 + $0x53]] }
  0x49   :  { %v321_v43 = vmul.f32 %v320_v36, %v2070_v17  ;;  %v324_v24 = vmul.f32 %v323_v37, %v2080_v20  ;;  %v211_v45 = vadd.f32 %v210_v14, %v208_v13  ;;  %v213_v47 = vmul.f32 %v212_v15, %v1926_v50 }
  0x4a   :  { %v244_v51 = vadd.f32 %v2016_v46, %v2016_v46  ;;  %v246_v52 = vmul.f32 %v245_v29, %v243_v26  ;;  %v238_v56 = vsub.f32 %v2047_v59, %v215_v18  ;;  %v254_v60 = vmul.f32 %v2052_v62, %v1982_v30 }
  0x4b   :  { %v2111_v61 = vadd.f32 %v316_v33, %v314_v34  ;;  %v322_v63 = vadd.f32 %v321_v43, %v319_v35  ;;  %v2113_v5 = vsub.f32 %v250_v31, %v252_v32  ;;  %v255_v50 = vmul.f32 %v251_v19, %v1967_v22 }
  0x4c   :  { %v257_v8 = vstv %s2072_s20  ;;  %v335_v10 = vstv %s2077_s0  ;;  %v223_v46 = vmul.f32 %v222_v38, %v219_v3  ;;  %v233_v11 = vmul.f32 %v232_v42, %v228_v4  ;;  %s2319_s20 = sld [smem:[#allocation4 + $0x54]]  ;;  %s2321_s0 = sld [smem:[#allocation4 + $0x55]] }
  0x4d   :  { %v2122_v12 = vadd.f32 %v324_v24, %v322_v63  ;;  %v336_v30 = vmul.f32 %v335_v10, %v2111_v61  ;;  %v143_v13 = vsub.f32 %v142_v55, %v2028_v53  ;;  %v150_v22 = vmin.f32 %v109_v44, %v119_v57 }
  0x4e   :  { %v247_v3 = vsub.f32 %v244_v51, %v246_v52  ;;  %v344_v4 = vstv %s2087_s1  ;;  %v134_v14 = vsub.f32 %v2024_v21, %v2043_v58  ;;  %v2141_v15 = vadd.f32 %v213_v47, %v211_v45  ;;  %s2323_s1 = sld [smem:[#allocation4 + $0x48]] }
  0x4f   :  { %v345_v40 = vmul.f32 %v344_v4, %v2122_v12  ;;  %v355_v16 = vstv %s2095_s21  ;;  %v2150_v39 = vadd.f32 %v238_v56, %v2052_v62  ;;  %v2152_v55 = vsub.f32 %v254_v60, %v255_v50  ;;  %s2342_s21 = sld [smem:[#allocation4 + $0x49]] }
  0x50   :  { %v258_v44 = vsub.f32 %v257_v8, %v2113_v5  ;;  %v354_v21 = vsub.f32 %v2122_v12, %v2111_v61  ;;  %v224_v57 = vsub.f32 %v2047_v59, %v223_v46  ;;  %v234_v58 = vsub.f32 %v2047_v59, %v233_v11 }
  0x51   :  { %v305_v18 = vmul.f32 %v2061_v7, %v2061_v7  ;;  %v337_v62 = vmax.f32 %v336_v30, 0.0  ;;  %v2165_v19 = vmul.f32 %v247_v3, %v243_v26  ;;  %v306_v41 = vmul.f32 %v2070_v17, %v2070_v17 }
  0x52   :  { %v2171_v49 = vadd.f32 %v355_v16, %v354_v21  ;;  %v359_v23 = vstv %s2106_s22  ;;  %v144_v6 = vsub.f32 %v143_v13, %v2030_v54  ;;  %v2179_v59 = vmul.f32 %v2021_v48, %v2021_v48  ;;  %s2354_s22 = sld [smem:[#allocation4 + $0x56]] }
  0x53   :  { %v346_v25 = vmax.f32 %v345_v40, 0.0  ;;  %v2185_v26 = vmin.f32 %v150_v22, %v134_v14  ;;  %v259_v27 = vsub.f32 %v258_v44, %v2152_v55  ;;  %v2190_v28 = vmul.f32 %v2141_v15, %v2141_v15 }
  0x54   :  { %v308_v9 = vmul.f32 %v2080_v20, %v2080_v20  ;;  %v265_v29 = vmin.f32 %v224_v57, %v234_v58  ;;  %v326_v31 = vstv %s2120_s24  ;;  %v2199_v32 = vmin.f32 %v337_v62, 1.0  ;;  %s2368_s24 = sld [smem:[#allocation4 + $0x57]] }
  0x55   :  { %v360_v33 = vmul.f32 %v359_v23, %v2171_v49  ;;  %v249_v34 = vsub.f32 %v2150_v39, %v2165_v19  ;;  %v307_v35 = vadd.f32 %v306_v41, %v305_v18  ;;  %v2205_v36 = vstv %s2118_s23  ;;  %s2359_s23 = sld [smem:[#allocation4 + $0x4a]] }
  0x56   :  { %v416_v37 = vstv %s2137_s26  ;;  %v328_v38 = vstv %s2143_s27  ;;  %v331_v42 = vstv %s2145_s28  ;;  %v347_v43 = vmin.f32 %v346_v25, 1.0  ;;  %s2385_s26 = sld [smem:[#allocation4 + $0x4d]]  ;;  %s2392_s27 = sld [smem:[#allocation4 + $0x59]] }
  0x57   :  { %v2215_v24 = vsub.f32 %v1829_v0, %v416_v37  ;;  %vm2217_vm0 = vcmp.ge.f32.partialorder %v144_v6, 0.0  ;;  %vm146_vm1 = vcmp.ge.f32.partialorder %v2028_v53, 0.0  ;;  %v327_v47 = vmul.f32 %v326_v31, %v2061_v7  ;;  %s2394_s28 = sld [smem:[#allocation4 + $0x5a]] }
  0x58   :  { %v349_v51 = vstv %s2134_s25  ;;  %v419_v52 = vstv %s2157_s29  ;;  %v422_v56 = vstv %s2159_s30  ;;  %vm2226_vm2 = vcmp.ge.f32.partialorder %v259_v27, 0.0  ;;  %vm2294_vm6 = vmand %vm2217_vm0, %vm146_vm1  ;;  %s2370_s25 = sld [smem:[#allocation4 + $0x58]]  ;;  %s2406_s29 = sld [smem:[#allocation4 + $0x5b]] }
  0x59   :  { %vm261_vm3 = vcmp.ge.f32.partialorder %v2113_v5, 0.0  ;;  %v2233_v63 = vadd.f32 %v2111_v61, %v2111_v61  ;;  %v340_v50 = vmul.f32 %v2205_v36, %v2199_v32  ;;  %v361_v8 = vmax.f32 %v360_v33, 0.0  ;;  %s2408_s30 = sld [smem:[#allocation4 + $0x5c]] }
  0x5a   :  { %v2238_v7 = vsub.f32 %v1834_v1, %v419_v52  ;;  %v329_v10 = vmul.f32 %v328_v38, %v2070_v17  ;;  %v370_v46 = vstv %s2167_s4  ;;  %v2245_v11 = vsub.f32 %v1839_v2, %v422_v56  ;;  %vm2310_vm7 = vmand %vm2226_vm2, %vm261_vm3  ;;  %s2416_s4 = sld [smem:[#allocation4 + $0x4b]] }
  0x5b   :  { %v429_v30 = vstv %s2174_s5  ;;  %vm148_vm4 = vcmp.ge.f32.partialorder %v2030_v54, 0.0  ;;  %v348_v13 = vadd.f32 %v2122_v12, %v2122_v12  ;;  %v350_v22 = vmul.f32 %v349_v51, %v347_v43  ;;  %s2419_s5 = sld [smem:[#allocation4 + $0x63]] }
  0x5c   :  { %v364_v3 = vstv %s2181_s6  ;;  %v430_v17 = vmul.f32 %v429_v30, %v2215_v24  ;;  %vm263_vm5 = vcmp.ge.f32.partialorder %v2152_v55, 0.0  ;;  %v369_v4 = vmul.f32 %v349_v51, %v2111_v61  ;;  %vm2333_vm8 = vmand %vm2294_vm6, %vm148_vm4  ;;  %s2441_s6 = sld [smem:[#allocation4 + $0x64]] }
  0x5d   :  { %v431_v14 = vstv %s2183_s7  ;;  %v434_v40 = vstv %s2194_s8  ;;  %v437_v16 = vstv %s2196_s9  ;;  %v341_v39 = vsub.f32 %v2233_v63, %v340_v50  ;;  %vm2350_vm9 = vmand %vm2310_vm7, %vm263_vm5  ;;  %s2448_s7 = sld [smem:[#allocation4 + $0x61]]  ;;  %s2457_s8 = sld [smem:[#allocation4 + $0x65]] }
  0x5e   :  { %v362_v44 = vmin.f32 %v361_v8, 1.0  ;;  %v371_v21 = vmul.f32 %v370_v46, %v2122_v12  ;;  %v432_v57 = vmul.f32 %v431_v14, %v2238_v7  ;;  %v435_v58 = vmul.f32 %v434_v40, %v2245_v11  ;;  %s2472_s9 = sld [smem:[#allocation4 + $0x66]] }
  0x5f   :  { %v438_v18 = vmul.f32 %v437_v16, %v2215_v24  ;;  %v439_v62 = vstv %s2207_s10  ;;  %v442_v19 = vstv %s2209_s11  ;;  %v351_v41 = vsub.f32 %v348_v13, %v350_v22  ;;  %s2491_s10 = sld [smem:[#allocation4 + $0x69]]  ;;  %s2505_s11 = sld [smem:[#allocation4 + $0x5d]] }
  0x60   :  { %v433_v23 = vadd.f32 %v432_v57, %v430_v17  ;;  %v440_v6 = vmul.f32 %v439_v62, %v2238_v7  ;;  %v443_v25 = vmul.f32 %v442_v19, %v2245_v11  ;;  %v2273_v27 = vmin.f32 %v265_v29, %v249_v34 }
  0x61   :  { %v309_v31 = vadd.f32 %v308_v9, %v307_v35  ;;  %v330_v33 = vadd.f32 %v329_v10, %v327_v47  ;;  %v332_v37 = vmul.f32 %v331_v42, %v2080_v20  ;;  %v363_v38 = vadd.f32 %v2171_v49, %v2171_v49 }
  0x62   :  { %v365_v51 = vmul.f32 %v364_v3, %v362_v44  ;;  %v373_v52 = vmul.f32 %v2205_v36, %v2122_v12  ;;  %v441_v56 = vadd.f32 %v440_v6, %v438_v18  ;;  %v2282_v50 = vsub.f32 %v369_v4, %v371_v21 }
  0x63   :  { %v374_v29 = vmul.f32 %v370_v46, %v2111_v61  ;;  %v2287_v9 = vadd.f32 %v435_v58, %v433_v23  ;;  %v454_v20 = vstv %s2242_s12  ;;  %v342_v12 = vmul.f32 %v341_v39, %v2199_v32  ;;  %s2507_s12 = sld [smem:[#allocation4 + $0x5e]] }
  0x64   :  { %v352_v34 = vmul.f32 %v351_v41, %v347_v43  ;;  %v376_v35 = vstv %s2249_s13  ;;  %v2304_v61 = vadd.f32 %v443_v25, %v441_v56  ;;  %v357_v42 = vsub.f32 %v309_v31, %v2233_v63  ;;  %s2513_s13 = sld [smem:[#allocation4 + $0x67]] }
  0x65   :  { %v424_v32 = vmul.f32 %v2215_v24, %v2215_v24  ;;  %v455_v43 = vmul.f32 %v454_v20, %v2287_v9  ;;  %v463_v45 = vstv %s2257_s14  ;;  %v366_v47 = vsub.f32 %v363_v38, %v365_v51  ;;  %s2518_s14 = sld [smem:[#allocation4 + $0x6a]] }
  0x66   :  { %v425_v5 = vmul.f32 %v2238_v7, %v2238_v7  ;;  %v464_v60 = vmul.f32 %v463_v45, %v2304_v61  ;;  %v474_v63 = vstv %s2264_s15  ;;  %v2337_v10 = vadd.f32 %v332_v37, %v330_v33  ;;  %s2523_s15 = sld [smem:[#allocation4 + $0x6b]] }
  0x67   :  { %v2339_v46 = vsub.f32 %v373_v52, %v374_v29  ;;  %v377_v30 = vsub.f32 %v376_v35, %v2282_v50  ;;  %v473_v13 = vsub.f32 %v2304_v61, %v2287_v9  ;;  %v343_v22 = vsub.f32 %v309_v31, %v342_v12 }
  0x68   :  { %v353_v3 = vsub.f32 %v309_v31, %v352_v34  ;;  %v2357_v17 = vadd.f32 %v357_v42, %v2205_v36  ;;  %v456_v4 = vmax.f32 %v455_v43, 0.0  ;;  %v478_v55 = vstv %s2276_s16  ;;  %s2533_s16 = sld [smem:[#allocation4 + $0x5f]] }
  0x69   :  { %v2361_v14 = vadd.f32 %v474_v63, %v473_v13  ;;  %v2364_v40 = vmul.f32 %v366_v47, %v362_v44  ;;  %v426_v16 = vadd.f32 %v425_v5, %v424_v32  ;;  %v427_v39 = vmul.f32 %v2245_v11, %v2245_v11 }
  0x6a   :  { %v465_v21 = vmax.f32 %v464_v60, 0.0  ;;  %v153_v36 = vsel %vm2333_vm8, %v2179_v59, %v2185_v26  ;;  %v268_v44 = vsel %vm2350_vm9, %v2190_v28, %v2273_v27  ;;  %v378_v57 = vsub.f32 %v377_v30, %v2339_v46  ;;  %v2578_v59 = vld [vmem:[%s3814_s2] sm:$0xff] }
  0x6b   :  { %v2383_v58 = vmul.f32 %v2337_v10, %v2337_v10  ;;  %v2387_v18 = vmin.f32 %v343_v22, %v353_v3  ;;  %v445_v62 = vstv %s2285_s17  ;;  %v447_v19 = vstv %s2300_s18  ;;  %s2535_s17 = sld [smem:[#allocation4 + $0x68]]  ;;  %s2542_s18 = sld [smem:[#allocation4 + $0x6c]] }
  0x6c   :  { %v479_v41 = vmul.f32 %v478_v55, %v2361_v14  ;;  %v450_v23 = vstv %s2302_s19  ;;  %v457_v6 = vmin.f32 %v456_v4, 1.0  ;;  %v535_v25 = vstv %s2319_s20  ;;  %s2544_s19 = sld [smem:[#allocation4 + $0x6d]]  ;;  %s2547_s20 = sld [smem:[#allocation4 + $0x62]] }
  0x6d   :  { %v538_v31 = vstv %s2321_s0  ;;  %v368_v33 = vsub.f32 %v2357_v17, %v2364_v40  ;;  %v2401_v37 = vadd.f32 %v427_v39, %v426_v16  ;;  %v2404_v38 = vstv %s2323_s1  ;;  %s2571_s0 = sld [smem:[#allocation4 + $0x6e]]  ;;  %s2573_s1 = sld [smem:[#allocation4 + $0x6f]] }
  0x6e   :  { %v466_v51 = vmin.f32 %v465_v21, 1.0  ;;  %v446_v52 = vmul.f32 %v445_v62, %v2215_v24  ;;  %v448_v56 = vmul.f32 %v447_v19, %v2238_v7  ;;  %v468_v29 = vstv %s2342_s21  ;;  %s2791_s21 = sld [smem:[#allocation4 + $0x86]] }
  0x6f   :  { %v2414_v20 = vsub.f32 %v1829_v0, %v535_v25  ;;  %v451_v49 = vmul.f32 %v450_v23, %v2245_v11  ;;  %v480_v12 = vmax.f32 %v479_v41, 0.0  ;;  %v2422_v34 = vsub.f32 %v1834_v1, %v538_v31 }
  0x70   :  { %v541_v24 = vstv %s2354_s22  ;;  %vm2425_vm10 = vcmp.ge.f32.partialorder %v378_v57, 0.0  ;;  %vm380_vm11 = vcmp.ge.f32.partialorder %v2282_v50, 0.0  ;;  %v2432_v0 = vadd.f32 %v2287_v9, %v2287_v9  ;;  %s2804_s22 = sld [smem:[#allocation4 + $0x8d]] }
  0x71   :  { %v459_v11 = vmul.f32 %v2404_v38, %v457_v6  ;;  %v467_v35 = vadd.f32 %v2304_v61, %v2304_v61  ;;  %v2438_v1 = vsub.f32 %v1839_v2, %v541_v24  ;;  %v469_v53 = vmul.f32 %v468_v29, %v466_v51  ;;  %vm2497_vm13 = vmand %vm2425_vm10, %vm380_vm11 }
  0x72   :  { %v489_v42 = vstv %s2359_s23  ;;  %v548_v32 = vstv %s2368_s24  ;;  %v550_v43 = vstv %s2370_s25  ;;  %v449_v45 = vadd.f32 %v448_v56, %v446_v52  ;;  %s2595_s25 = sld [smem:[#allocation4 + $0x70]]  ;;  %s2816_s23 = sld [smem:[#allocation4 + $0x8e]] }
  0x73   :  { %v483_v47 = vstv %s2385_s26  ;;  %v488_v5 = vmul.f32 %v468_v29, %v2287_v9  ;;  %v549_v60 = vmul.f32 %v548_v32, %v2414_v20  ;;  %v481_v63 = vmin.f32 %v480_v12, 1.0  ;;  %s2597_s26 = sld [smem:[#allocation4 + $0x71]]  ;;  %s2823_s24 = sld [smem:[#allocation4 + $0x8b]] }
  0x74   :  { %v551_v2 = vmul.f32 %v550_v43, %v2422_v34  ;;  %v553_v30 = vstv %s2392_s27  ;;  %v556_v13 = vstv %s2394_s28  ;;  %v460_v22 = vsub.f32 %v2432_v0, %v459_v11  ;;  %s2845_s27 = sld [smem:[#allocation4 + $0x91]]  ;;  %s2860_s28 = sld [smem:[#allocation4 + $0x87]] }
  0x75   :  { %v490_v3 = vmul.f32 %v489_v42, %v2304_v61  ;;  %v554_v4 = vmul.f32 %v553_v30, %v2438_v1  ;;  %v557_v55 = vmul.f32 %v556_v13, %v2414_v20  ;;  %v470_v16 = vsub.f32 %v467_v35, %v469_v53 }
  0x76   :  { %v552_v39 = vadd.f32 %v551_v2, %v549_v60  ;;  %v558_v21 = vstv %s2406_s29  ;;  %v561_v57 = vstv %s2408_s30  ;;  %v492_v62 = vmul.f32 %v2404_v38, %v2304_v61  ;;  %s2614_s29 = sld [smem:[#allocation4 + $0x60]] }
  0x77   :  { %v493_v19 = vmul.f32 %v489_v42, %v2287_v9  ;;  %v559_v41 = vmul.f32 %v558_v21, %v2422_v34  ;;  %v562_v23 = vmul.f32 %v561_v57, %v2438_v1  ;;  %v482_v25 = vadd.f32 %v2361_v14, %v2361_v14  ;;  %v2602_v57 = vld [vmem:[%s3814_s2 + $0x10] sm:$0xff]  ;;  %s2635_s30 = sld [smem:[#allocation4 + $0x78]] }
  0x78   :  { %v484_v31 = vmul.f32 %v483_v47, %v481_v63  ;;  %v495_v52 = vstv %s2416_s4  ;;  %v573_v56 = vstv %s2419_s5  ;;  %v461_v29 = vmul.f32 %v460_v22, %v457_v6  ;;  %s2637_s4 = sld [smem:[#allocation4 + $0x79]]  ;;  %s2649_s5 = sld [smem:[#allocation4 + $0x76]] }
  0x79   :  { %v2470_v12 = vsub.f32 %v488_v5, %v490_v3  ;;  %v2474_v24 = vadd.f32 %v554_v4, %v552_v39  ;;  %v560_v61 = vadd.f32 %v559_v41, %v557_v55  ;;  %v471_v9 = vmul.f32 %v470_v16, %v466_v51 }
  0x7a   :  { %v543_v11 = vmul.f32 %v2414_v20, %v2414_v20  ;;  %v544_v35 = vmul.f32 %v2422_v34, %v2422_v34  ;;  %v582_v14 = vstv %s2441_s6  ;;  %vm382_vm12 = vcmp.ge.f32.partialorder %v2339_v46, 0.0  ;;  %s2658_s6 = sld [smem:[#allocation4 + $0x7a]] }
  0x7b   :  { %v2486_v6 = vmin.f32 %v2387_v18, %v368_v33  ;;  %v2488_v53 = vadd.f32 %v562_v23, %v560_v61  ;;  %v574_v42 = vmul.f32 %v573_v56, %v2474_v24  ;;  %v2501_v32 = vadd.f32 %v451_v49, %v449_v45  ;;  %vm2529_vm14 = vmand %vm2497_vm13, %vm382_vm12 }
  0x7c   :  { %v476_v17 = vsub.f32 %v2401_v37, %v2432_v0  ;;  %v485_v40 = vsub.f32 %v482_v25, %v484_v31  ;;  %v593_v18 = vstv %s2448_s7  ;;  %v2510_v33 = vsub.f32 %v492_v62, %v493_v19  ;;  %s2668_s7 = sld [smem:[#allocation4 + $0x7b]] }
  0x7d   :  { %v496_v50 = vsub.f32 %v495_v52, %v2470_v12  ;;  %v583_v7 = vmul.f32 %v582_v14, %v2488_v53  ;;  %v592_v49 = vsub.f32 %v2488_v53, %v2474_v24  ;;  %v462_v0 = vsub.f32 %v2401_v37, %v461_v29 }
  0x7e   :  { %v472_v43 = vsub.f32 %v2401_v37, %v471_v9  ;;  %v545_v45 = vadd.f32 %v544_v35, %v543_v11  ;;  %v597_v47 = vstv %s2457_s8  ;;  %v546_v37 = vmul.f32 %v2438_v1, %v2438_v1  ;;  %s2680_s8 = sld [smem:[#allocation4 + $0x72]] }
  0x7f   :  { %v575_v60 = vmax.f32 %v574_v42, 0.0  ;;  %v584_v2 = vmax.f32 %v583_v7, 0.0  ;;  %v2539_v30 = vadd.f32 %v593_v18, %v592_v49  ;;  %v477_v13 = vadd.f32 %v476_v17, %v2404_v38 }
  0x80   :  { %v486_v46 = vmul.f32 %v485_v40, %v481_v63  ;;  %v497_v22 = vsub.f32 %v496_v50, %v2510_v33  ;;  %v564_v3 = vstv %s2472_s9  ;;  %v2561_v38 = vmin.f32 %v153_v36, %v268_v44  ;;  %v2586_v36 = vld [vmem:[%s3814_s2 + $0x8] sm:$0xff]  ;;  %s2690_s9 = sld [smem:[#allocation4 + $0x73]] }
  0x81   :  { %v598_v4 = vmul.f32 %v597_v47, %v2539_v30  ;;  %v387_v63 = vsel %vm2529_vm14, %v2383_v58, %v2486_v6  ;;  %v503_v55 = vmin.f32 %v462_v0, %v472_v43  ;;  %v2569_v54 = vmul.f32 %v2501_v32, %v2501_v32 }
  0x82   :  { %v2580_v26 = vadd.f32 %v546_v37, %v545_v45  ;;  %v576_v28 = vmin.f32 %v575_v60, 1.0  ;;  %v585_v27 = vmin.f32 %v584_v2, 1.0  ;;  %v654_v8 = vstv %s2491_s10  ;;  %s2695_s10 = sld [smem:[#allocation4 + $0x7e]] }
  0x83   :  { %v487_v44 = vsub.f32 %v477_v13, %v486_v46  ;;  %v2589_v16 = vmul.f32 %v564_v3, %v2414_v20  ;;  %v2592_v39 = vstv %s2505_s11  ;;  %v587_v21 = vstv %s2507_s12  ;;  %s2702_s11 = sld [smem:[#allocation4 + $0x7c]] }
  0x84   :  { %vm2604_vm15 = vcmp.ge.f32.partialorder %v497_v22, 0.0  ;;  %vm499_vm0 = vcmp.ge.f32.partialorder %v2470_v12, 0.0  ;;  %v566_v20 = vstv %s2513_s13  ;;  %v599_v19 = vmax.f32 %v598_v4, 0.0  ;;  %s2714_s12 = sld [smem:[#allocation4 + $0x74]]  ;;  %s2718_s13 = sld [smem:[#allocation4 + $0x7f]] }
  0x85   :  { %v2611_v41 = vsub.f32 %v2578_v59, %v654_v8  ;;  %v657_v23 = vstv %s2518_s14  ;;  %v2618_v25 = vadd.f32 %v2474_v24, %v2474_v24  ;;  %v586_v31 = vadd.f32 %v2488_v53, %v2488_v53  ;;  %vm2676_vm2 = vmand %vm2604_vm15, %vm499_vm0  ;;  %s2724_s14 = sld [smem:[#allocation4 + $0x80]] }
  0x86   :  { %v2623_v52 = vsub.f32 %v2586_v36, %v657_v23  ;;  %v660_v56 = vstv %s2523_s15  ;;  %v578_v29 = vmul.f32 %v2592_v39, %v576_v28  ;;  %v588_v61 = vmul.f32 %v587_v21, %v585_v27  ;;  %s2731_s15 = sld [smem:[#allocation4 + $0x7d]] }
  0x87   :  { %v608_v9 = vstv %s2533_s16  ;;  %v2629_v11 = vsub.f32 %v2602_v57, %v660_v56  ;;  %vm501_vm1 = vcmp.ge.f32.partialorder %v2510_v33, 0.0  ;;  %v2632_v35 = vmin.f32 %v503_v55, %v487_v44  ;;  %s2748_s16 = sld [smem:[#allocation4 + $0x77]] }
  0x88   :  { %v569_v14 = vstv %s2535_s17  ;;  %v667_v42 = vstv %s2542_s18  ;;  %v669_v51 = vstv %s2544_s19  ;;  %v600_v17 = vmin.f32 %v599_v19, 1.0  ;;  %vm2708_vm3 = vmand %vm2676_vm2, %vm501_vm1  ;;  %s2750_s17 = sld [smem:[#allocation4 + $0x81]]  ;;  %s2758_s18 = sld [smem:[#allocation4 + $0x82]] }
  0x89   :  { %v602_v40 = vstv %s2547_s20  ;;  %v607_v18 = vmul.f32 %v587_v21, %v2474_v24  ;;  %v668_v50 = vmul.f32 %v667_v42, %v2611_v41  ;;  %v609_v7 = vmul.f32 %v608_v9, %v2488_v53  ;;  %s2762_s19 = sld [smem:[#allocation4 + $0x83]]  ;;  %s2770_s20 = sld [smem:[#allocation4 + $0x84]] }
  0x8a   :  { %v670_v49 = vmul.f32 %v669_v51, %v2623_v52  ;;  %v672_v0 = vstv %s2571_s0  ;;  %v675_v43 = vstv %s2573_s1  ;;  %v579_v45 = vsub.f32 %v2618_v25, %v578_v29  ;;  %s2772_s0 = sld [smem:[#allocation4 + $0x85]] }
  0x8b   :  { %v589_v47 = vsub.f32 %v586_v31, %v588_v61  ;;  %v673_v37 = vmul.f32 %v672_v0, %v2629_v11  ;;  %v676_v60 = vmul.f32 %v675_v43, %v2611_v41  ;;  %v567_v2 = vmul.f32 %v566_v20, %v2422_v34  ;;  %s2786_s1 = sld [smem:[#allocation4 + $0x75]] }
  0x8c   :  { %v671_v13 = vadd.f32 %v670_v49, %v668_v50  ;;  %v677_v46 = vstv %s2595_s25  ;;  %v680_v22 = vstv %s2597_s26  ;;  %v601_v3 = vadd.f32 %v2539_v30, %v2539_v30  ;;  %s2838_s25 = sld [smem:[#allocation4 + $0x8f]]  ;;  %s2843_s26 = sld [smem:[#allocation4 + $0x90]] }
  0x8d   :  { %v603_v4 = vmul.f32 %v602_v40, %v600_v17  ;;  %v678_v55 = vmul.f32 %v677_v46, %v2623_v52  ;;  %v681_v8 = vmul.f32 %v680_v22, %v2629_v11  ;;  %v2662_v44 = vsub.f32 %v607_v18, %v609_v7 }
  0x8e   :  { %v611_v34 = vmul.f32 %v2592_v39, %v2488_v53  ;;  %v612_v21 = vmul.f32 %v608_v9, %v2474_v24  ;;  %v614_v20 = vstv %s2614_s29  ;;  %v580_v19 = vmul.f32 %v579_v45, %v576_v28  ;;  %s2881_s29 = sld [smem:[#allocation4 + $0x88]] }
  0x8f   :  { %v590_v23 = vmul.f32 %v589_v47, %v585_v27  ;;  %v2670_v30 = vadd.f32 %v673_v37, %v671_v13  ;;  %v679_v31 = vadd.f32 %v678_v55, %v676_v60  ;;  %v662_v24 = vmul.f32 %v2611_v41, %v2611_v41 }
  0x90   :  { %v663_v53 = vmul.f32 %v2623_v52, %v2623_v52  ;;  %v692_v28 = vstv %s2635_s30  ;;  %v701_v27 = vstv %s2637_s4  ;;  %v595_v29 = vsub.f32 %v2580_v26, %v2618_v25  ;;  %s2883_s30 = sld [smem:[#allocation4 + $0x92]]  ;;  %s2896_s4 = sld [smem:[#allocation4 + $0x93]] }
  0x91   :  { %v604_v12 = vsub.f32 %v601_v3, %v603_v4  ;;  %v2692_v62 = vadd.f32 %v681_v8, %v679_v31  ;;  %v693_v61 = vmul.f32 %v692_v28, %v2670_v30  ;;  %v568_v9 = vadd.f32 %v567_v2, %v2589_v16 }
  0x92   :  { %v570_v42 = vmul.f32 %v569_v14, %v2438_v1  ;;  %v2699_v51 = vsub.f32 %v611_v34, %v612_v21  ;;  %v615_v40 = vsub.f32 %v614_v20, %v2662_v44  ;;  %v581_v18 = vsub.f32 %v2580_v26, %v580_v19 }
  0x93   :  { %v591_v16 = vsub.f32 %v2580_v26, %v590_v23  ;;  %v702_v1 = vmul.f32 %v701_v27, %v2692_v62  ;;  %v712_v14 = vstv %s2649_s5  ;;  %v664_v50 = vadd.f32 %v663_v53, %v662_v24  ;;  %s2898_s5 = sld [smem:[#allocation4 + $0x94]] }
  0x94   :  { %v665_v33 = vmul.f32 %v2629_v11, %v2629_v11  ;;  %v694_v7 = vmax.f32 %v693_v61, 0.0  ;;  %v711_v49 = vsub.f32 %v2692_v62, %v2670_v30  ;;  %v2727_v26 = vadd.f32 %v595_v29, %v2592_v39 }
  0x95   :  { %v2729_v0 = vmul.f32 %v604_v12, %v600_v17  ;;  %v703_v43 = vmax.f32 %v702_v1, 0.0  ;;  %v716_v45 = vstv %s2658_s6  ;;  %v273_v47 = vmax.f32 %v2021_v48, %v2141_v15  ;;  %s2908_s6 = sld [smem:[#allocation4 + $0x89]] }
  0x96   :  { %v2742_v37 = vmin.f32 %v2561_v38, %v387_v63  ;;  %v506_v39 = vsel %vm2708_vm3, %v2569_v54, %v2632_v35  ;;  %v713_v17 = vadd.f32 %v712_v14, %v711_v49  ;;  %v2752_v5 = vadd.f32 %v570_v42, %v568_v9 }
  0x97   :  { %v616_v58 = vsub.f32 %v615_v40, %v2699_v51  ;;  %v2755_v6 = vmin.f32 %v581_v18, %v591_v16  ;;  %v683_v38 = vstv %s2668_s7  ;;  %v2760_v63 = vadd.f32 %v665_v33, %v664_v50  ;;  %s2923_s7 = sld [smem:[#allocation4 + $0x95]] }
  0x98   :  { %v695_v60 = vmin.f32 %v694_v7, 1.0  ;;  %v704_v2 = vmin.f32 %v703_v43, 1.0  ;;  %v717_v13 = vmul.f32 %v716_v45, %v713_v17  ;;  %v606_v46 = vsub.f32 %v2727_v26, %v2729_v0 }
  0x99   :  { %v2767_v22 = vstv %s2680_s8  ;;  %v706_v3 = vstv %s2690_s9  ;;  %v773_v4 = vstv %s2695_s10  ;;  %v684_v55 = vmul.f32 %v683_v38, %v2611_v41  ;;  %s2925_s8 = sld [smem:[#allocation4 + $0x96]]  ;;  %s2934_s9 = sld [smem:[#allocation4 + $0x8c]] }
  0x9a   :  { %v685_v8 = vstv %s2702_s11  ;;  %v2779_v34 = vadd.f32 %v2670_v30, %v2670_v30  ;;  %v718_v21 = vmax.f32 %v717_v13, 0.0  ;;  %vm2781_vm4 = vcmp.ge.f32.partialorder %v616_v58, 0.0  ;;  %s2938_s10 = sld [smem:[#allocation4 + $0x97]]  ;;  %s2948_s11 = sld [smem:[#allocation4 + $0x98]] }
  0x9b   :  { %vm618_vm5 = vcmp.ge.f32.partialorder %v2662_v44, 0.0  ;;  %v705_v19 = vadd.f32 %v2692_v62, %v2692_v62  ;;  %v727_v41 = vstv %s2714_s12  ;;  %v2794_v23 = vsub.f32 %v2578_v59, %v773_v4  ;;  %s2960_s12 = sld [smem:[#allocation4 + $0x99]] }
  0x9c   :  { %v776_v31 = vstv %s2718_s13  ;;  %v697_v56 = vmul.f32 %v2767_v22, %v695_v60  ;;  %v707_v24 = vmul.f32 %v706_v3, %v704_v2  ;;  %v779_v28 = vstv %s2724_s14  ;;  %vm2852_vm7 = vmand %vm2781_vm4, %vm618_vm5  ;;  %s2965_s13 = sld [smem:[#allocation4 + $0x9a]]  ;;  %s2970_s14 = sld [smem:[#allocation4 + $0x9b]] }
  0x9d   :  { %v2799_v53 = vsub.f32 %v2586_v36, %v776_v31  ;;  %v686_v27 = vmul.f32 %v685_v8, %v2623_v52  ;;  %v688_v29 = vstv %s2731_s15  ;;  %v719_v12 = vmin.f32 %v718_v21, 1.0  ;;  %s2974_s15 = sld [smem:[#allocation4 + $0x8a]] }
  0x9e   :  { %v2807_v61 = vsub.f32 %v2602_v57, %v779_v28  ;;  %vm620_vm6 = vcmp.ge.f32.partialorder %v2699_v51, 0.0  ;;  %v721_v9 = vstv %s2748_s16  ;;  %v726_v42 = vmul.f32 %v706_v3, %v2670_v30  ;;  %s2986_s16 = sld [smem:[#allocation4 + $0xa2]] }
  0x9f   :  { %v728_v40 = vmul.f32 %v727_v41, %v2692_v62  ;;  %v786_v18 = vstv %s2750_s17  ;;  %v720_v16 = vadd.f32 %v713_v17, %v713_v17  ;;  %v730_v52 = vmul.f32 %v2767_v22, %v2692_v62  ;;  %vm2889_vm8 = vmand %vm2852_vm7, %vm620_vm6  ;;  %s3000_s17 = sld [smem:[#allocation4 + $0xa3]] }
  0xa0   :  { %v787_v1 = vmul.f32 %v786_v18, %v2794_v23  ;;  %v788_v14 = vstv %s2758_s18  ;;  %v698_v50 = vsub.f32 %v2779_v34, %v697_v56  ;;  %v708_v33 = vsub.f32 %v705_v19, %v707_v24  ;;  %s3013_s18 = sld [smem:[#allocation4 + $0xa0]] }
  0xa1   :  { %v789_v7 = vmul.f32 %v788_v14, %v2799_v53  ;;  %v791_v49 = vstv %s2762_s19  ;;  %v722_v43 = vmul.f32 %v721_v9, %v719_v12  ;;  %v794_v17 = vstv %s2770_s20  ;;  %s3028_s19 = sld [smem:[#allocation4 + $0xa4]]  ;;  %s3037_s20 = sld [smem:[#allocation4 + $0xa5]] }
  0xa2   :  { %v792_v45 = vmul.f32 %v791_v49, %v2807_v61  ;;  %v796_v62 = vstv %s2772_s0  ;;  %v2828_v58 = vsub.f32 %v726_v42, %v728_v40  ;;  %v731_v38 = vmul.f32 %v727_v41, %v2670_v30  ;;  %s3039_s0 = sld [smem:[#allocation4 + $0xa6]] }
  0xa3   :  { %v790_v13 = vadd.f32 %v789_v7, %v787_v1  ;;  %v795_v3 = vmul.f32 %v794_v17, %v2794_v23  ;;  %v689_v4 = vmul.f32 %v688_v29, %v2629_v11  ;;  %v733_v8 = vstv %s2786_s1  ;;  %s3056_s1 = sld [smem:[#allocation4 + $0x9c]] }
  0xa4   :  { %v797_v21 = vmul.f32 %v796_v62, %v2799_v53  ;;  %v799_v19 = vstv %s2791_s21  ;;  %v699_v31 = vmul.f32 %v698_v50, %v695_v60  ;;  %v714_v56 = vsub.f32 %v2760_v63, %v2779_v34  ;;  %s3060_s21 = sld [smem:[#allocation4 + $0x9d]] }
  0xa5   :  { %v2840_v24 = vadd.f32 %v792_v45, %v790_v13  ;;  %v800_v30 = vmul.f32 %v799_v19, %v2807_v61  ;;  %v709_v41 = vmul.f32 %v708_v33, %v704_v2  ;;  %v723_v28 = vsub.f32 %v720_v16, %v722_v43 }
  0xa6   :  { %v798_v11 = vadd.f32 %v797_v21, %v795_v3  ;;  %v811_v29 = vstv %s2804_s22  ;;  %v687_v34 = vadd.f32 %v686_v27, %v684_v55  ;;  %v2856_v9 = vsub.f32 %v730_v52, %v731_v38  ;;  %s3062_s22 = sld [smem:[#allocation4 + $0xa7]] }
  0xa7   :  { %v734_v2 = vsub.f32 %v733_v8, %v2828_v58  ;;  %v812_v42 = vmul.f32 %v811_v29, %v2840_v24  ;;  %v781_v40 = vmul.f32 %v2794_v23, %v2794_v23  ;;  %v782_v44 = vmul.f32 %v2799_v53, %v2799_v53 }
  0xa8   :  { %v2866_v20 = vadd.f32 %v800_v30, %v798_v11  ;;  %v820_v18 = vstv %s2816_s23  ;;  %v2873_v55 = vmin.f32 %v2755_v6, %v606_v46  ;;  %v2877_v27 = vmul.f32 %v2752_v5, %v2752_v5  ;;  %s3075_s23 = sld [smem:[#allocation4 + $0xa8]] }
  0xa9   :  { %v700_v16 = vsub.f32 %v2760_v63, %v699_v31  ;;  %v715_v52 = vadd.f32 %v714_v56, %v2767_v22  ;;  %v710_v0 = vsub.f32 %v2760_v63, %v709_v41  ;;  %v724_v6 = vmul.f32 %v723_v28, %v719_v12 }
  0xaa   :  { %v821_v46 = vmul.f32 %v820_v18, %v2866_v20  ;;  %v831_v1 = vstv %s2823_s24  ;;  %v2904_v51 = vmax.f32 %v273_v47, %v2337_v10  ;;  %v2906_v22 = vadd.f32 %v689_v4, %v687_v34  ;;  %s3077_s24 = sld [smem:[#allocation4 + $0xa9]] }
  0xab   :  { %v813_v63 = vmax.f32 %v812_v42, 0.0  ;;  %v830_v12 = vsub.f32 %v2866_v20, %v2840_v24  ;;  %v2918_v14 = vmin.f32 %v2742_v37, %v506_v39  ;;  %v735_v48 = vsub.f32 %v734_v2, %v2856_v9 }
  0xac   :  { %v783_v15 = vadd.f32 %v782_v44, %v781_v40  ;;  %v784_v10 = vmul.f32 %v2807_v61, %v2807_v61  ;;  %v625_v25 = vsel %vm2889_vm8, %v2877_v27, %v2873_v55  ;;  %v822_v47 = vmax.f32 %v821_v46, 0.0 }
  0xad   :  { %v2931_v54 = vadd.f32 %v831_v1, %v830_v12  ;;  %v835_v35 = vstv %s2838_s25  ;;  %v725_v37 = vsub.f32 %v715_v52, %v724_v6  ;;  %v741_v39 = vmin.f32 %v700_v16, %v710_v0  ;;  %s3085_s25 = sld [smem:[#allocation4 + $0x9e]] }
  0xae   :  { %v802_v50 = vstv %s2843_s26  ;;  %v804_v33 = vstv %s2845_s27  ;;  %vm737_vm9 = vcmp.ge.f32.partialorder %v2828_v58, 0.0  ;;  %vm739_vm10 = vcmp.ge.f32.partialorder %v2856_v9, 0.0  ;;  %s3095_s26 = sld [smem:[#allocation4 + $0xaa]]  ;;  %s3098_s27 = sld [smem:[#allocation4 + $0xa1]] }
  0xaf   :  { %v2944_v7 = vmul.f32 %v2906_v22, %v2906_v22  ;;  %v2946_v49 = vmin.f32 %v813_v63, 1.0  ;;  %vm2950_vm11 = vcmp.ge.f32.partialorder %v735_v48, 0.0  ;;  %v2954_v45 = vadd.f32 %v784_v10, %v783_v15 }
  0xb0   :  { %v2957_v17 = vstv %s2860_s28  ;;  %v836_v62 = vmul.f32 %v835_v35, %v2931_v54  ;;  %v803_v38 = vmul.f32 %v802_v50, %v2794_v23  ;;  %v805_v13 = vmul.f32 %v804_v33, %v2799_v53  ;;  %vm738_vm12 = vmand %vm2950_vm11, %vm737_vm9  ;;  %s3110_s28 = sld [smem:[#allocation4 + $0xab]] }
  0xb1   :  { %v807_v3 = vstv %s2883_s30  ;;  %v823_v4 = vmin.f32 %v822_v47, 1.0  ;;  %v2967_v8 = vmin.f32 %v741_v39, %v725_v37  ;;  %v825_v21 = vstv %s2881_s29  ;;  %vm3021_vm13 = vmand %vm738_vm12, %vm739_vm10  ;;  %s3112_s29 = sld [smem:[#allocation4 + $0xac]]  ;;  %s3122_s30 = sld [smem:[#allocation4 + $0xad]] }
  0xb2   :  { %v892_v19 = vstv %s2896_s4  ;;  %v895_v31 = vstv %s2898_s5  ;;  %v2978_v23 = vadd.f32 %v2840_v24, %v2840_v24  ;;  %v816_v53 = vmul.f32 %v2957_v17, %v2946_v49  ;;  %s3124_s4 = sld [smem:[#allocation4 + $0xae]]  ;;  %s3131_s5 = sld [smem:[#allocation4 + $0x9f]] }
  0xb3   :  { %v846_v56 = vstv %s2908_s6  ;;  %v2984_v30 = vsub.f32 %v2578_v59, %v892_v19  ;;  %v837_v41 = vmax.f32 %v836_v62, 0.0  ;;  %v2989_v28 = vsub.f32 %v2586_v36, %v895_v31  ;;  %s3146_s6 = sld [smem:[#allocation4 + $0xaf]] }
  0xb4   :  { %v898_v11 = vstv %s2923_s7  ;;  %v905_v29 = vstv %s2925_s8  ;;  %v808_v60 = vmul.f32 %v807_v3, %v2807_v61  ;;  %v824_v34 = vadd.f32 %v2866_v20, %v2866_v20  ;;  %s3148_s7 = sld [smem:[#allocation4 + $0xb0]]  ;;  %s3157_s8 = sld [smem:[#allocation4 + $0xb7]] }
  0xb5   :  { %v826_v2 = vmul.f32 %v825_v21, %v823_v4  ;;  %v2997_v42 = vsub.f32 %v2602_v57, %v898_v11  ;;  %v806_v40 = vadd.f32 %v805_v13, %v803_v38  ;;  %v840_v44 = vstv %s2934_s9  ;;  %s3171_s9 = sld [smem:[#allocation4 + $0xb8]] }
  0xb6   :  { %v906_v18 = vmul.f32 %v905_v29, %v2984_v30  ;;  %v907_v16 = vstv %s2938_s10  ;;  %v845_v61 = vmul.f32 %v825_v21, %v2840_v24  ;;  %v847_v52 = vmul.f32 %v846_v56, %v2866_v20  ;;  %s3178_s10 = sld [smem:[#allocation4 + $0xb5]] }
  0xb7   :  { %v908_v0 = vmul.f32 %v907_v16, %v2989_v28  ;;  %v910_v6 = vstv %s2948_s11  ;;  %v817_v46 = vsub.f32 %v2978_v23, %v816_v53  ;;  %v838_v1 = vmin.f32 %v837_v41, 1.0  ;;  %s3188_s11 = sld [smem:[#allocation4 + $0xb9]] }
  0xb8   :  { %v911_v63 = vmul.f32 %v910_v6, %v2997_v42  ;;  %v913_v58 = vstv %s2960_s12  ;;  %v827_v12 = vsub.f32 %v824_v34, %v826_v2  ;;  %v915_v10 = vstv %s2965_s13  ;;  %s3192_s12 = sld [smem:[#allocation4 + $0xb1]]  ;;  %s3194_s13 = sld [smem:[#allocation4 + $0xba]] }
  0xb9   :  { %v909_v48 = vadd.f32 %v908_v0, %v906_v18  ;;  %v914_v15 = vmul.f32 %v913_v58, %v2984_v30  ;;  %v849_v35 = vmul.f32 %v2957_v17, %v2866_v20  ;;  %v850_v37 = vmul.f32 %v846_v56, %v2840_v24 }
  0xba   :  { %v916_v39 = vmul.f32 %v915_v10, %v2989_v28  ;;  %v918_v50 = vstv %s2970_s14  ;;  %v839_v33 = vadd.f32 %v2931_v54, %v2931_v54  ;;  %v3034_v43 = vsub.f32 %v845_v61, %v847_v52  ;;  %s3206_s14 = sld [smem:[#allocation4 + $0xb2]] }
  0xbb   :  { %v852_v9 = vstv %s2974_s15  ;;  %v919_v20 = vmul.f32 %v918_v50, %v2997_v42  ;;  %v841_v62 = vmul.f32 %v840_v44, %v838_v1  ;;  %v3042_v24 = vadd.f32 %v911_v63, %v909_v48  ;;  %s3220_s15 = sld [smem:[#allocation4 + $0xb3]] }
  0xbc   :  { %v917_v38 = vadd.f32 %v916_v39, %v914_v15  ;;  %v930_v13 = vstv %s2986_s16  ;;  %v627_v54 = vmin.f32 %v2918_v14, %v625_v25  ;;  %v744_v3 = vsel %vm3021_vm13, %v2944_v7, %v2967_v8  ;;  %s3226_s16 = sld [smem:[#allocation4 + $0xbb]] }
  0xbd   :  { %v818_v21 = vmul.f32 %v817_v46, %v2946_v49  ;;  %v828_v19 = vmul.f32 %v827_v12, %v823_v4  ;;  %v833_v31 = vsub.f32 %v2954_v45, %v2978_v23  ;;  %v931_v27 = vmul.f32 %v930_v13, %v3042_v24 }
  0xbe   :  { %v3064_v55 = vadd.f32 %v919_v20, %v917_v38  ;;  %v939_v26 = vstv %s3000_s17  ;;  %v3068_v14 = vadd.f32 %v808_v60, %v806_v40  ;;  %v3070_v25 = vsub.f32 %v849_v35, %v850_v37  ;;  %s3241_s17 = sld [smem:[#allocation4 + $0xbd]] }
  0xbf   :  { %v853_v7 = vsub.f32 %v852_v9, %v3034_v43  ;;  %v900_v49 = vmul.f32 %v2984_v30, %v2984_v30  ;;  %v842_v4 = vsub.f32 %v839_v33, %v841_v62  ;;  %v901_v8 = vmul.f32 %v2989_v28, %v2989_v28 }
  0xc0   :  { %v940_v23 = vmul.f32 %v939_v26, %v3064_v55  ;;  %v950_v53 = vstv %s3013_s18  ;;  %v819_v56 = vsub.f32 %v2954_v45, %v818_v21  ;;  %v829_v41 = vsub.f32 %v2954_v45, %v828_v19  ;;  %s3243_s18 = sld [smem:[#allocation4 + $0xb6]] }
  0xc1   :  { %v932_v11 = vmax.f32 %v931_v27, 0.0  ;;  %v949_v29 = vsub.f32 %v3064_v55, %v3042_v24  ;;  %v3089_v60 = vmin.f32 %v627_v54, %v744_v3  ;;  %v3092_v34 = vadd.f32 %v833_v31, %v2957_v17 }
  0xc2   :  { %v941_v2 = vmax.f32 %v940_v23, 0.0  ;;  %v954_v40 = vstv %s3028_s19  ;;  %v854_v44 = vsub.f32 %v853_v7, %v3070_v25  ;;  %v921_v45 = vstv %s3037_s20  ;;  %s3254_s19 = sld [smem:[#allocation4 + $0xbe]]  ;;  %s3264_s20 = sld [smem:[#allocation4 + $0xbc]] }
  0xc3   :  { %v923_v18 = vstv %s3039_s0  ;;  %v951_v16 = vadd.f32 %v950_v53, %v949_v29  ;;  %v3102_v61 = vmul.f32 %v842_v4, %v838_v1  ;;  %v3106_v52 = vmul.f32 %v3068_v14, %v3068_v14  ;;  %s3267_s0 = sld [smem:[#allocation4 + $0xbf]] }
  0xc4   :  { %v902_v17 = vadd.f32 %v901_v8, %v900_v49  ;;  %v903_v0 = vmul.f32 %v2997_v42, %v2997_v42  ;;  %v3114_v6 = vmin.f32 %v819_v56, %v829_v41  ;;  %v933_v46 = vmin.f32 %v932_v11, 1.0 }
  0xc5   :  { %v942_v1 = vmin.f32 %v941_v2, 1.0  ;;  %v955_v63 = vmul.f32 %v954_v40, %v951_v16  ;;  %v922_v58 = vmul.f32 %v921_v45, %v2984_v30  ;;  %v924_v12 = vmul.f32 %v923_v18, %v2989_v28 }
  0xc6   :  { %v3119_v48 = vstv %s3056_s1  ;;  %v944_v15 = vstv %s3060_s21  ;;  %vm3126_vm14 = vcmp.ge.f32.partialorder %v854_v44, 0.0  ;;  %vm856_vm15 = vcmp.ge.f32.partialorder %v3034_v43, 0.0  ;;  %s3279_s1 = sld [smem:[#allocation4 + $0xc0]]  ;;  %s3281_s21 = sld [smem:[#allocation4 + $0xc1]] }
  0xc7   :  { %v926_v47 = vstv %s3062_s22  ;;  %v956_v30 = vmax.f32 %v955_v63, 0.0  ;;  %v1011_v35 = vstv %s3075_s23  ;;  %v1014_v28 = vstv %s3077_s24  ;;  %vm3202_vm1 = vmand %vm3126_vm14, %vm856_vm15  ;;  %s3285_s22 = sld [smem:[#allocation4 + $0xb4]]  ;;  %s3293_s23 = sld [smem:[#allocation4 + $0xc2]] }
  0xc8   :  { %v844_v37 = vsub.f32 %v3092_v34, %v3102_v61  ;;  %v3138_v39 = vadd.f32 %v903_v0, %v902_v17  ;;  %v3142_v50 = vadd.f32 %v3042_v24, %v3042_v24  ;;  %v943_v33 = vadd.f32 %v3064_v55, %v3064_v55  ;;  %s3295_s24 = sld [smem:[#allocation4 + $0xc3]] }
  0xc9   :  { %v935_v9 = vmul.f32 %v3119_v48, %v933_v46  ;;  %v945_v20 = vmul.f32 %v944_v15, %v942_v1  ;;  %v965_v62 = vstv %s3085_s25  ;;  %v3153_v38 = vsub.f32 %v2578_v59, %v1011_v35  ;;  %s3301_s25 = sld [smem:[#allocation4 + $0xc4]] }
  0xca   :  { %vm858_vm0 = vcmp.ge.f32.partialorder %v3070_v25, 0.0  ;;  %v925_v13 = vadd.f32 %v924_v12, %v922_v58  ;;  %v927_v54 = vmul.f32 %v926_v47, %v2997_v42  ;;  %v3160_v3 = vsub.f32 %v2586_v36, %v1014_v28 }
  0xcb   :  { %v1017_v21 = vstv %s3095_s26  ;;  %v957_v19 = vmin.f32 %v956_v30, 1.0  ;;  %v959_v31 = vstv %s3098_s27  ;;  %v964_v27 = vmul.f32 %v944_v15, %v3042_v24  ;;  %vm3234_vm2 = vmand %vm3202_vm1, %vm858_vm0  ;;  %s3303_s26 = sld [smem:[#allocation4 + $0xc5]]  ;;  %s3327_s27 = sld [smem:[#allocation4 + $0xcc]] }
  0xcc   :  { %v3166_v26 = vsub.f32 %v2602_v57, %v1017_v21  ;;  %v966_v7 = vmul.f32 %v965_v62, %v3064_v55  ;;  %v968_v42 = vmul.f32 %v3119_v48, %v3064_v55  ;;  %v1024_v49 = vstv %s3110_s28  ;;  %s3329_s28 = sld [smem:[#allocation4 + $0xcd]] }
  0xcd   :  { %v1026_v4 = vstv %s3112_s29  ;;  %v936_v8 = vsub.f32 %v3142_v50, %v935_v9  ;;  %v946_v23 = vsub.f32 %v943_v33, %v945_v20  ;;  %v969_v53 = vmul.f32 %v965_v62, %v3042_v24  ;;  %s3337_s29 = sld [smem:[#allocation4 + $0xcf]] }
  0xce   :  { %v1025_v56 = vmul.f32 %v1024_v49, %v3153_v38  ;;  %v958_v41 = vadd.f32 %v951_v16, %v951_v16  ;;  %v1027_v11 = vmul.f32 %v1026_v4, %v3160_v3  ;;  %v1029_v29 = vstv %s3122_s30  ;;  %s3340_s30 = sld [smem:[#allocation4 + $0xd0]] }
  0xcf   :  { %v1032_v55 = vstv %s3124_s4  ;;  %v960_v34 = vmul.f32 %v959_v31, %v957_v19  ;;  %v971_v2 = vstv %s3131_s5  ;;  %v1030_v40 = vmul.f32 %v1029_v29, %v3166_v26  ;;  %s3345_s4 = sld [smem:[#allocation4 + $0xca]]  ;;  %s3353_s5 = sld [smem:[#allocation4 + $0xce]] }
  0xd0   :  { %v1033_v44 = vmul.f32 %v1032_v55, %v3153_v38  ;;  %v3186_v45 = vsub.f32 %v964_v27, %v966_v7  ;;  %v1028_v24 = vadd.f32 %v1027_v11, %v1025_v56  ;;  %v1034_v18 = vstv %s3146_s6  ;;  %s3355_s6 = sld [smem:[#allocation4 + $0xd1]] }
  0xd1   :  { %v1037_v16 = vstv %s3148_s7  ;;  %v937_v61 = vmul.f32 %v936_v8, %v933_v46  ;;  %v947_v17 = vmul.f32 %v946_v23, %v942_v1  ;;  %v1035_v0 = vmul.f32 %v1034_v18, %v3160_v3  ;;  %s3381_s7 = sld [smem:[#allocation4 + $0xc6]] }
  0xd2   :  { %v1038_v63 = vmul.f32 %v1037_v16, %v3166_v26  ;;  %v1019_v46 = vmul.f32 %v3153_v38, %v3153_v38  ;;  %v1020_v1 = vmul.f32 %v3160_v3, %v3160_v3  ;;  %v3212_v12 = vadd.f32 %v1030_v40, %v1028_v24 }
  0xd3   :  { %v1049_v15 = vstv %s3157_s8  ;;  %v3216_v43 = vmin.f32 %v3114_v6, %v844_v37  ;;  %v952_v10 = vsub.f32 %v3138_v39, %v3142_v50  ;;  %v961_v47 = vsub.f32 %v958_v41, %v960_v34  ;;  %s3387_s8 = sld [smem:[#allocation4 + $0xc7]] }
  0xd4   :  { %v1036_v30 = vadd.f32 %v1035_v0, %v1033_v44  ;;  %v3222_v35 = vadd.f32 %v927_v54, %v925_v13  ;;  %v3224_v28 = vsub.f32 %v968_v42, %v969_v53  ;;  %v1050_v33 = vmul.f32 %v1049_v15, %v3212_v12 }
  0xd5   :  { %v1058_v9 = vstv %s3171_s9  ;;  %v938_v37 = vsub.f32 %v3138_v39, %v937_v61  ;;  %v948_v50 = vsub.f32 %v3138_v39, %v947_v17  ;;  %v972_v20 = vsub.f32 %v971_v2, %v3186_v45  ;;  %s3393_s9 = sld [smem:[#allocation4 + $0xd2]] }
  0xd6   :  { %v1039_v62 = vadd.f32 %v1038_v63, %v1036_v30  ;;  %v1021_v25 = vadd.f32 %v1020_v1, %v1019_v46  ;;  %v1022_v13 = vmul.f32 %v3166_v26, %v3166_v26  ;;  %v1051_v54 = vmax.f32 %v1050_v33, 0.0 }
  0xd7   :  { %v1069_v21 = vstv %s3178_s10  ;;  %v3249_v31 = vadd.f32 %v952_v10, %v3119_v48  ;;  %v3251_v39 = vmul.f32 %v961_v47, %v957_v19  ;;  %v863_v42 = vsel %vm3234_vm2, %v3106_v52, %v3216_v43  ;;  %s3407_s10 = sld [smem:[#allocation4 + $0xc8]] }
  0xd8   :  { %v1059_v27 = vmul.f32 %v1058_v9, %v1039_v62  ;;  %v1068_v7 = vsub.f32 %v1039_v62, %v3212_v12  ;;  %v3262_v49 = vmul.f32 %v3222_v35, %v3222_v35  ;;  %v1052_v48 = vmin.f32 %v1051_v54, 1.0 }
  0xd9   :  { %v1073_v19 = vstv %s3188_s11  ;;  %v1040_v4 = vstv %s3194_s13  ;;  %v3271_v8 = vstv %s3192_s12  ;;  %v973_v56 = vsub.f32 %v972_v20, %v3224_v28  ;;  %s3411_s11 = sld [smem:[#allocation4 + $0xd3]]  ;;  %s3420_s12 = sld [smem:[#allocation4 + $0xd4]] }
  0xda   :  { %v1060_v23 = vmax.f32 %v1059_v27, 0.0  ;;  %v1070_v53 = vadd.f32 %v1069_v21, %v1068_v7  ;;  %v3274_v41 = vmin.f32 %v938_v37, %v948_v50  ;;  %v3276_v11 = vadd.f32 %v1022_v13, %v1021_v25  ;;  %s3436_s13 = sld [smem:[#allocation4 + $0xcb]] }
  0xdb   :  { %v1063_v29 = vstv %s3206_s14  ;;  %v963_v55 = vsub.f32 %v3249_v31, %v3251_v39  ;;  %v1084_v40 = vstv %s3220_s15  ;;  %v1041_v44 = vmul.f32 %v1040_v4, %v3153_v38  ;;  %s3438_s14 = sld [smem:[#allocation4 + $0xd5]]  ;;  %s3457_s15 = sld [smem:[#allocation4 + $0xd6]] }
  0xdc   :  { %v1061_v34 = vmin.f32 %v1060_v23, 1.0  ;;  %v1074_v2 = vmul.f32 %v1073_v19, %v1070_v53  ;;  %v1042_v24 = vstv %s3226_s16  ;;  %v1048_v18 = vadd.f32 %v3212_v12, %v3212_v12  ;;  %s3464_s16 = sld [smem:[#allocation4 + $0xd7]] }
  0xdd   :  { %v1054_v16 = vmul.f32 %v3271_v8, %v1052_v48  ;;  %v1062_v61 = vadd.f32 %v1039_v62, %v1039_v62  ;;  %v1130_v63 = vstv %s3241_s17  ;;  %v1078_v58 = vstv %s3243_s18  ;;  %s3650_s17 = sld [smem:[#allocation4 + $0xef]]  ;;  %s3660_s18 = sld [smem:[#allocation4 + $0xf6]] }
  0xde   :  { %v1064_v17 = vmul.f32 %v1063_v29, %v1061_v34  ;;  %v1075_v0 = vmax.f32 %v1074_v2, 0.0  ;;  %v1083_v38 = vmul.f32 %v1063_v29, %v3212_v12  ;;  %v1085_v46 = vmul.f32 %v1084_v40, %v1039_v62 }
  0xdf   :  { %v1087_v1 = vmul.f32 %v3271_v8, %v1039_v62  ;;  %vm3305_vm3 = vcmp.ge.f32.partialorder %v973_v56, 0.0  ;;  %vm975_vm4 = vcmp.ge.f32.partialorder %v3186_v45, 0.0  ;;  %v1088_v47 = vmul.f32 %v1084_v40, %v3212_v12 }
  0xe0   :  { %v1076_v10 = vmin.f32 %v1075_v0, 1.0  ;;  %v3312_v30 = vsub.f32 %v2578_v59, %v1130_v63  ;;  %v1133_v33 = vstv %s3254_s19  ;;  %v1045_v9 = vstv %s3264_s20  ;;  %vm3372_vm6 = vmand %vm3305_vm3, %vm975_vm4  ;;  %s3475_s19 = sld [smem:[#allocation4 + $0xd8]]  ;;  %s3477_s20 = sld [smem:[#allocation4 + $0xd9]] }
  0xe1   :  { %v1055_v37 = vsub.f32 %v1048_v18, %v1054_v16  ;;  %v3317_v50 = vsub.f32 %v2586_v36, %v1133_v33  ;;  %v1136_v20 = vstv %s3267_s0  ;;  %v1065_v62 = vsub.f32 %v1062_v61, %v1064_v17  ;;  %s3679_s0 = sld [smem:[#allocation4 + $0xf9]] }
  0xe2   :  { %v1077_v25 = vadd.f32 %v1070_v53, %v1070_v53  ;;  %v1079_v13 = vmul.f32 %v1078_v58, %v1076_v10  ;;  %v3321_v54 = vsub.f32 %v2602_v57, %v1136_v20  ;;  %vm977_vm5 = vcmp.ge.f32.partialorder %v3224_v28, 0.0 }
  0xe3   :  { %v1043_v59 = vmul.f32 %v1042_v24, %v3160_v3  ;;  %v3325_v12 = vsub.f32 %v1083_v38, %v1085_v46  ;;  %v1143_v36 = vstv %s3279_s1  ;;  %v1145_v21 = vstv %s3281_s21  ;;  %vm3403_vm8 = vmand %vm3372_vm6, %vm977_vm5  ;;  %s3689_s1 = sld [smem:[#allocation4 + $0xf4]]  ;;  %s3691_s21 = sld [smem:[#allocation4 + $0xfa]] }
  0xe4   :  { %v1071_v27 = vsub.f32 %v3276_v11, %v1048_v18  ;;  %v3334_v7 = vsub.f32 %v1087_v1, %v1088_v47  ;;  %v1090_v57 = vstv %s3285_s22  ;;  %v1144_v19 = vmul.f32 %v1143_v36, %v3312_v30  ;;  %s3699_s22 = sld [smem:[#allocation4 + $0xf0]] }
  0xe5   :  { %v1056_v3 = vmul.f32 %v1055_v37, %v1052_v48  ;;  %v1146_v4 = vmul.f32 %v1145_v21, %v3317_v50  ;;  %v1148_v23 = vstv %s3293_s23  ;;  %v1151_v53 = vstv %s3295_s24  ;;  %s3505_s23 = sld [smem:[#allocation4 + $0xc9]]  ;;  %s3510_s24 = sld [smem:[#allocation4 + $0xda]] }
  0xe6   :  { %v1066_v56 = vmul.f32 %v1065_v62, %v1061_v34  ;;  %v1080_v29 = vsub.f32 %v1077_v25, %v1079_v13  ;;  %v1149_v2 = vmul.f32 %v1148_v23, %v3321_v54  ;;  %v1152_v40 = vmul.f32 %v1151_v53, %v3312_v30 }
  0xe7   :  { %v1091_v24 = vsub.f32 %v1090_v57, %v3325_v12  ;;  %v1147_v18 = vadd.f32 %v1146_v4, %v1144_v19  ;;  %v1153_v16 = vstv %s3301_s25  ;;  %v1156_v61 = vstv %s3303_s26  ;;  %s3541_s25 = sld [smem:[#allocation4 + $0xe2]]  ;;  %s3548_s26 = sld [smem:[#allocation4 + $0xdc]] }
  0xe8   :  { %v1044_v48 = vadd.f32 %v1043_v59, %v1041_v44  ;;  %v1046_v17 = vmul.f32 %v1045_v9, %v3166_v26  ;;  %v1154_v34 = vmul.f32 %v1153_v16, %v3317_v50  ;;  %v1157_v0 = vmul.f32 %v1156_v61, %v3321_v54 }
  0xe9   :  { %v1057_v63 = vsub.f32 %v3276_v11, %v1056_v3  ;;  %v1072_v58 = vadd.f32 %v1071_v27, %v3271_v8  ;;  %v1138_v44 = vmul.f32 %v3312_v30, %v3312_v30  ;;  %v1139_v26 = vmul.f32 %v3317_v50, %v3317_v50 }
  0xea   :  { %v1067_v38 = vsub.f32 %v3276_v11, %v1066_v56  ;;  %v1081_v46 = vmul.f32 %v1080_v29, %v1076_v10  ;;  %v3366_v1 = vadd.f32 %v1149_v2, %v1147_v18  ;;  %v1155_v47 = vadd.f32 %v1154_v34, %v1152_v40  ;;  %v3483_v40 = vld [vmem:[%s3814_s2 + $0x8] sm:$0xff] }
  0xeb   :  { %v980_v33 = vmin.f32 %v3274_v41, %v963_v55  ;;  %v1092_v11 = vsub.f32 %v1091_v24, %v3334_v7  ;;  %v1168_v10 = vstv %s3327_s27  ;;  %v1177_v9 = vstv %s3329_s28  ;;  %s3550_s27 = sld [smem:[#allocation4 + $0xdf]]  ;;  %s3555_s28 = sld [smem:[#allocation4 + $0xe4]] }
  0xec   :  { %v3385_v45 = vadd.f32 %v1046_v17, %v1044_v48  ;;  %v3389_v15 = vadd.f32 %v1157_v0, %v1155_v47  ;;  %v1159_v37 = vstv %s3337_s29  ;;  %v1169_v20 = vmul.f32 %v1168_v10, %v3366_v1  ;;  %v3503_v17 = vld [vmem:[%s3814_s2 + $0x10] sm:$0xff]  ;;  %s3557_s29 = sld [smem:[#allocation4 + $0xe5]] }
  0xed   :  { %vm1094_vm7 = vcmp.ge.f32.partialorder %v3325_v12, 0.0  ;;  %v1140_v31 = vadd.f32 %v1139_v26, %v1138_v44  ;;  %v1141_v39 = vmul.f32 %v3321_v54, %v3321_v54  ;;  %v1161_v41 = vstv %s3340_s30  ;;  %v3469_v12 = vld [vmem:[%s3814_s2] sm:$0xff]  ;;  %s3530_s2 = sld [smem:[#allocation4 + $0xe1]]  ;;  %s3563_s30 = sld [smem:[#allocation4 + $0xdd]] }
  0xee   :  { %v1082_v62 = vsub.f32 %v1072_v58, %v1081_v46  ;;  %v1098_v25 = vmin.f32 %v1057_v63, %v1067_v38  ;;  %v1178_v13 = vmul.f32 %v1177_v9, %v3389_v15  ;;  %v1188_v59 = vstv %s3345_s4  ;;  %s3565_s4 = sld [smem:[#allocation4 + $0xe3]] }
  0xef   :  { %vm3413_vm9 = vcmp.ge.f32.partialorder %v1092_v11, 0.0  ;;  %v1160_v28 = vmul.f32 %v1159_v37, %v3312_v30  ;;  %v1170_v21 = vmax.f32 %v1169_v20, 0.0  ;;  %v1187_v27 = vsub.f32 %v3389_v15, %v3366_v1 }
  0xf0   :  { %v1162_v57 = vmul.f32 %v1161_v41, %v3317_v50  ;;  %v1164_v19 = vstv %s3355_s6  ;;  %v1179_v3 = vmax.f32 %v1178_v13, 0.0  ;;  %v1192_v4 = vstv %s3353_s5  ;;  %vm3444_vm10 = vmand %vm3413_vm9, %vm1094_vm7  ;;  %s3571_s5 = sld [smem:[#allocation4 + $0xdb]]  ;;  %s3591_s6 = sld [smem:[#allocation4 + $0xe6]] }
  0xf1   :  { %v511_v23 = vmax.f32 %v2904_v51, %v2501_v32  ;;  %v865_v30 = vmin.f32 %v3089_v60, %v863_v42  ;;  %v982_v53 = vsel %vm3403_vm8, %v3262_v49, %v980_v33  ;;  %v1189_v50 = vadd.f32 %v1188_v59, %v1187_v27 }
  0xf2   :  { %vm1096_vm11 = vcmp.ge.f32.partialorder %v3334_v7, 0.0  ;;  %v3449_v51 = vmin.f32 %v1098_v25, %v1082_v62  ;;  %v3453_v60 = vmul.f32 %v3385_v45, %v3385_v45  ;;  %v3455_v52 = vadd.f32 %v1141_v39, %v1140_v31 }
  0xf3   :  { %v1165_v43 = vmul.f32 %v1164_v19, %v3321_v54  ;;  %v3460_v6 = vmin.f32 %v1170_v21, 1.0  ;;  %v3462_v42 = vmin.f32 %v1179_v3, 1.0  ;;  %v1193_v49 = vmul.f32 %v1192_v4, %v1189_v50  ;;  %vm3494_vm12 = vmand %vm3444_vm10, %vm1096_vm11 }
  0xf4   :  { %v1163_v56 = vadd.f32 %v1162_v57, %v1160_v28  ;;  %v3472_v29 = vstv %s3381_s7  ;;  %v1182_v2 = vstv %s3387_s8  ;;  %v1249_v54 = vstv %s3393_s9  ;;  %s3596_s7 = sld [smem:[#allocation4 + $0xde]]  ;;  %s3602_s8 = sld [smem:[#allocation4 + $0xe7]] }
  0xf5   :  { %v3486_v24 = vmax.f32 %v511_v23, %v2752_v5  ;;  %v3488_v18 = vmin.f32 %v865_v30, %v982_v53  ;;  %v1167_v61 = vadd.f32 %v3366_v1, %v3366_v1  ;;  %v1194_v48 = vmax.f32 %v1193_v49, 0.0  ;;  %s3604_s9 = sld [smem:[#allocation4 + $0xe8]] }
  0xf6   :  { %v1181_v5 = vadd.f32 %v3389_v15, %v3389_v15  ;;  %v1203_v7 = vstv %s3407_s10  ;;  %v3513_v34 = vsub.f32 %v3469_v12, %v1249_v54  ;;  %v1252_v0 = vstv %s3411_s11  ;;  %s3608_s10 = sld [smem:[#allocation4 + $0xe0]]  ;;  %s3616_s11 = sld [smem:[#allocation4 + $0xe9]] }
  0xf7   :  { %v1173_v63 = vmul.f32 %v3472_v29, %v3460_v6  ;;  %v1183_v58 = vmul.f32 %v1182_v2, %v3462_v42  ;;  %v3520_v44 = vsub.f32 %v3483_v40, %v1252_v0  ;;  %v1255_v26 = vstv %s3420_s12  ;;  %s3618_s12 = sld [smem:[#allocation4 + $0xea]] }
  0xf8   :  { %v1101_v38 = vsel %vm3494_vm12, %v3453_v60, %v3449_v51  ;;  %v3527_v46 = vadd.f32 %v1165_v43, %v1163_v56  ;;  %v1190_v47 = vsub.f32 %v3455_v52, %v1167_v61  ;;  %v3533_v8 = vsub.f32 %v3503_v17, %v1255_v26 }
  0xf9   :  { %v1195_v33 = vmin.f32 %v1194_v48, 1.0  ;;  %v1197_v11 = vstv %s3436_s13  ;;  %v1202_v10 = vmul.f32 %v1182_v2, %v3366_v1  ;;  %v1262_v9 = vstv %s3438_s14  ;;  %s3629_s13 = sld [smem:[#allocation4 + $0xeb]]  ;;  %s3635_s14 = sld [smem:[#allocation4 + $0xec]] }
  0xfa   :  { %v1204_v37 = vmul.f32 %v1203_v7, %v3389_v15  ;;  %v1206_v20 = vmul.f32 %v3472_v29, %v3389_v15  ;;  %v1263_v31 = vmul.f32 %v1262_v9, %v3513_v34  ;;  %v1264_v39 = vstv %s3457_s15  ;;  %s3642_s15 = sld [smem:[#allocation4 + $0xed]] }
  0xfb   :  { %v1174_v41 = vsub.f32 %v1167_v61, %v1173_v63  ;;  %v1184_v55 = vsub.f32 %v1181_v5, %v1183_v58  ;;  %v1265_v62 = vmul.f32 %v1264_v39, %v3520_v44  ;;  %v1267_v25 = vstv %s3464_s16  ;;  %s3647_s16 = sld [smem:[#allocation4 + $0xee]] }
  0xfc   :  { %v1207_v13 = vmul.f32 %v1203_v7, %v3366_v1  ;;  %v1268_v15 = vmul.f32 %v1267_v25, %v3533_v8  ;;  %v1270_v59 = vstv %s3475_s19  ;;  %v1272_v36 = vstv %s3477_s20  ;;  %s3673_s19 = sld [smem:[#allocation4 + $0xf7]]  ;;  %s3677_s20 = sld [smem:[#allocation4 + $0xf1]] }
  0xfd   :  { %v1196_v28 = vadd.f32 %v1189_v50, %v1189_v50  ;;  %v1198_v21 = vmul.f32 %v1197_v11, %v1195_v33  ;;  %v1266_v27 = vadd.f32 %v1265_v62, %v1263_v31  ;;  %v1271_v57 = vmul.f32 %v1270_v59, %v3513_v34 }
  0xfe   :  { %v3560_v1 = vsub.f32 %v1202_v10, %v1204_v37  ;;  %v1209_v19 = vstv %s3505_s23  ;;  %v1273_v3 = vmul.f32 %v1272_v36, %v3520_v44  ;;  %v1275_v4 = vstv %s3510_s24  ;;  %s3701_s23 = sld [smem:[#allocation4 + $0xfb]]  ;;  %s3708_s24 = sld [smem:[#allocation4 + $0xf8]] }
  0xff   :  { %v1175_v23 = vmul.f32 %v1174_v41, %v3460_v6  ;;  %v1185_v30 = vmul.f32 %v1184_v55, %v3462_v42  ;;  %v1269_v53 = vadd.f32 %v1268_v15, %v1266_v27  ;;  %v1276_v50 = vmul.f32 %v1275_v4, %v3533_v8 }
 0x100   :  { %v1257_v32 = vmul.f32 %v3513_v34, %v3513_v34  ;;  %v1258_v43 = vmul.f32 %v3520_v44, %v3520_v44  ;;  %v1274_v49 = vadd.f32 %v1273_v3, %v1271_v57  ;;  %v1287_v56 = vstv %s3530_s2  ;;  %s3712_s2 = sld [smem:[#allocation4 + $0xf2]] }
 0x101   :  { %v3580_v2 = vadd.f32 %v1190_v47, %v3472_v29  ;;  %v1199_v6 = vsub.f32 %v1196_v28, %v1198_v21  ;;  %v3584_v42 = vmul.f32 %v3527_v46, %v3527_v46  ;;  %v1288_v54 = vmul.f32 %v1287_v56, %v1269_v53 }
 0x102   :  { %v3586_v61 = vsub.f32 %v1206_v20, %v1207_v13  ;;  %v3589_v48 = vsub.f32 %v1209_v19, %v3560_v1  ;;  %v1277_v5 = vadd.f32 %v1276_v50, %v1274_v49  ;;  %v1296_v29 = vstv %s3541_s25  ;;  %s3737_s25 = sld [smem:[#allocation4 + $0xf3]] }
 0x103   :  { %v1176_v7 = vsub.f32 %v3455_v52, %v1175_v23  ;;  %v1186_v0 = vsub.f32 %v3455_v52, %v1185_v30  ;;  %v1260_v63 = vmul.f32 %v3533_v8, %v3533_v8  ;;  %v1289_v58 = vmax.f32 %v1288_v54, 0.0 }
 0x104   :  { %v1259_v26 = vadd.f32 %v1258_v43, %v1257_v32  ;;  %v1297_v47 = vmul.f32 %v1296_v29, %v1277_v5  ;;  %v1301_v11 = vstv %s3548_s26  ;;  %v1307_v10 = vstv %s3550_s27  ;;  %s3751_s26 = sld [smem:[#allocation4 + $0xf5]]  ;;  %s1465_s27 = sld [smem:[#allocation6]] }
 0x105   :  { %v3606_v9 = vmul.f32 %v1199_v6, %v1195_v33  ;;  %v1278_v52 = vstv %s3555_s28  ;;  %v1280_v37 = vstv %s3557_s29  ;;  %v1306_v20 = vsub.f32 %v1277_v5, %v1269_v53  ;;  %s1765_s28 = sld [smem:[#allocation6 + $0x1]] }
 0x106   :  { %v3612_v31 = vmin.f32 %v1289_v58, 1.0  ;;  %v1298_v39 = vmax.f32 %v1297_v47, 0.0  ;;  %v1311_v41 = vstv %s3565_s4  ;;  %v1322_v55 = vstv %s3563_s30 }
 0x107   :  { %v3621_v62 = vstv %s3571_s5  ;;  %v1308_v25 = vadd.f32 %v1307_v10, %v1306_v20  ;;  %v1321_v33 = vmul.f32 %v1301_v11, %v1269_v53  ;;  %v1323_v13 = vmul.f32 %v1322_v55, %v1277_v5 }
 0x108   :  { %v1211_v15 = vsub.f32 %v3589_v48, %v3586_v61  ;;  %v3625_v59 = vmin.f32 %v1176_v7, %v1186_v0  ;;  %v3627_v36 = vadd.f32 %v1260_v63, %v1259_v26  ;;  %v1299_v28 = vmin.f32 %v1298_v39, 1.0 }
 0x109   :  { %v1201_v21 = vsub.f32 %v3580_v2, %v3606_v9  ;;  %v1279_v27 = vmul.f32 %v1278_v52, %v3513_v34  ;;  %v1281_v57 = vmul.f32 %v1280_v37, %v3520_v44  ;;  %v1312_v19 = vmul.f32 %v1311_v41, %v1308_v25 }
 0x10a   :  { %v1283_v3 = vstv %s3591_s6  ;;  %v3638_v4 = vadd.f32 %v1269_v53, %v1269_v53  ;;  %v1292_v23 = vmul.f32 %v3621_v62, %v3612_v31  ;;  %v1300_v30 = vadd.f32 %v1277_v5, %v1277_v5 }
 0x10b   :  { %v1313_v50 = vmax.f32 %v1312_v19, 0.0  ;;  %v3644_v32 = vsub.f32 %v1321_v33, %v1323_v13  ;;  %v1325_v34 = vmul.f32 %v3621_v62, %v1277_v5  ;;  %v1326_v44 = vmul.f32 %v1322_v55, %v1269_v53 }
 0x10c   :  { %v1302_v43 = vmul.f32 %v1301_v11, %v1299_v28  ;;  %v1328_v49 = vstv %s3596_s7  ;;  %v1368_v56 = vstv %s3602_s8  ;;  %v1371_v6 = vstv %s3604_s9 }
 0x10d   :  { %v1284_v54 = vmul.f32 %v1283_v3, %v3533_v8  ;;  %v1314_v29 = vmin.f32 %v1313_v50, 1.0  ;;  %v1316_v7 = vstv %s3608_s10  ;;  %v3657_v0 = vsub.f32 %v3469_v12, %v1368_v56 }
 0x10e   :  { %v1293_v5 = vsub.f32 %v3638_v4, %v1292_v23  ;;  %v3663_v53 = vsub.f32 %v3483_v40, %v1371_v6  ;;  %v1374_v63 = vstv %s3616_s11  ;;  %v1381_v58 = vstv %s3618_s12 }
 0x10f   :  { %v1315_v26 = vadd.f32 %v1308_v25, %v1308_v25  ;;  %v3667_v47 = vsub.f32 %v1325_v34, %v1326_v44  ;;  %v1329_v8 = vsub.f32 %v1328_v49, %v3644_v32  ;;  %v3671_v11 = vsub.f32 %v3503_v17, %v1374_v63 }
 0x110   :  { %v1303_v12 = vsub.f32 %v1300_v30, %v1302_v43  ;;  %v1317_v10 = vmul.f32 %v1316_v7, %v1314_v29  ;;  %v1382_v52 = vmul.f32 %v1381_v58, %v3657_v0  ;;  %v1383_v40 = vstv %s3629_s13 }
 0x111   :  { %v1376_v37 = vmul.f32 %v3657_v0, %v3657_v0  ;;  %v1377_v17 = vmul.f32 %v3663_v53, %v3663_v53  ;;  %v1384_v20 = vmul.f32 %v1383_v40, %v3663_v53  ;;  %v1386_v39 = vstv %s3635_s14 }
 0x112   :  { %v1282_v41 = vadd.f32 %v1281_v57, %v1279_v27  ;;  %v1309_v55 = vsub.f32 %v3627_v36, %v3638_v4  ;;  %v1387_v25 = vmul.f32 %v1386_v39, %v3671_v11  ;;  %v1389_v33 = vstv %s3642_s15 }
 0x113   :  { %vm1213_vm13 = vcmp.ge.f32.partialorder %v3560_v1, 0.0  ;;  %v3697_v13 = vmul.f32 %v1293_v5, %v3612_v31  ;;  %v1385_v27 = vadd.f32 %v1384_v20, %v1382_v52  ;;  %v1390_v57 = vmul.f32 %v1389_v33, %v3657_v0 }
 0x114   :  { %v1391_v19 = vstv %s3647_s16  ;;  %v3705_v3 = vmul.f32 %v1303_v12, %v1299_v28  ;;  %v1330_v4 = vsub.f32 %v1329_v8, %v3667_v47  ;;  %v1394_v30 = vstv %s3650_s17 }
 0x115   :  { %v1392_v23 = vmul.f32 %v1391_v19, %v3663_v53  ;;  %v1318_v31 = vsub.f32 %v1315_v26, %v1317_v10  ;;  %v1378_v50 = vadd.f32 %v1377_v17, %v1376_v37  ;;  %v1379_v34 = vmul.f32 %v3671_v11, %v3671_v11 }
 0x116   :  { %v1395_v44 = vmul.f32 %v1394_v30, %v3671_v11  ;;  %vm3720_vm14 = vcmp.ge.f32.partialorder %v1211_v15, 0.0  ;;  %vm1215_vm15 = vcmp.ge.f32.partialorder %v3586_v61, 0.0  ;;  %v1388_v43 = vadd.f32 %v1387_v25, %v1385_v27 }
 0x117   :  { %v1393_v49 = vadd.f32 %v1392_v23, %v1390_v57  ;;  %v1406_v56 = vstv %s3660_s18  ;;  %v3730_v6 = vmin.f32 %v3625_v59, %v1201_v21  ;;  %v3732_v48 = vadd.f32 %v1284_v54, %v1282_v41  ;;  %vm1214_vm3 = vmand %vm3720_vm14, %vm1213_vm13 }
 0x118   :  { %v1295_v15 = vsub.f32 %v3627_v36, %v3697_v13  ;;  %v1310_v7 = vadd.f32 %v1309_v55, %v3621_v62  ;;  %v1305_v5 = vsub.f32 %v3627_v36, %v3705_v3  ;;  %vm3741_vm0 = vcmp.ge.f32.partialorder %v1330_v4, 0.0  ;;  %vm3769_vm4 = vmand %vm1214_vm3, %vm1215_vm15 }
 0x119   :  { %vm1332_vm1 = vcmp.ge.f32.partialorder %v3644_v32, 0.0  ;;  %v1396_v9 = vadd.f32 %v1395_v44, %v1393_v49  ;;  %v1407_v59 = vmul.f32 %v1406_v56, %v1388_v43  ;;  %v1415_v21 = vstv %s3673_s19 }
 0x11a   :  { %v1319_v54 = vmul.f32 %v1318_v31, %v1314_v29  ;;  %v3747_v62 = vadd.f32 %v1379_v34, %v1378_v50  ;;  %v1397_v63 = vstv %s3679_s0  ;;  %v1420_v58 = vstv %s3677_s20  ;;  %vm1333_vm5 = vmand %vm3741_vm0, %vm1332_vm1 }
 0x11b   :  { %v1399_v36 = vstv %s3691_s21  ;;  %v1408_v26 = vmax.f32 %v1407_v59, 0.0  ;;  %v1416_v8 = vmul.f32 %v1415_v21, %v1396_v9  ;;  %v1426_v12 = vstv %s3689_s1 }
 0x11c   :  { %vm1334_vm2 = vcmp.ge.f32.partialorder %v3667_v47, 0.0  ;;  %v1402_v10 = vstv %s3701_s23  ;;  %v1405_v52 = vadd.f32 %v1388_v43, %v1388_v43  ;;  %v1410_v40 = vstv %s3699_s22 }
 0x11d   :  { %v1425_v37 = vsub.f32 %v1396_v9, %v1388_v43  ;;  %v1409_v17 = vmin.f32 %v1408_v26, 1.0  ;;  %v1417_v29 = vmax.f32 %v1416_v8, 0.0  ;;  %v1430_v20 = vstv %s3708_s24  ;;  %vm3795_vm6 = vmand %vm1333_vm5, %vm1334_vm2 }
 0x11e   :  { %v1440_v39 = vmul.f32 %v1420_v58, %v1388_v43  ;;  %v1419_v41 = vadd.f32 %v1396_v9, %v1396_v9  ;;  %v1441_v25 = vstv %s3712_s2  ;;  %v1444_v33 = vmul.f32 %v1410_v40, %v1396_v9 }
 0x11f   :  { %v1427_v55 = vadd.f32 %v1426_v12, %v1425_v37  ;;  %v1411_v13 = vmul.f32 %v1410_v40, %v1409_v17  ;;  %v1418_v27 = vmin.f32 %v1417_v29, 1.0  ;;  %v1442_v57 = vmul.f32 %v1441_v25, %v1396_v9 }
 0x120   :  { %v1445_v19 = vmul.f32 %v1441_v25, %v1388_v43  ;;  %v1398_v3 = vmul.f32 %v1397_v63, %v3657_v0  ;;  %v1400_v4 = vmul.f32 %v1399_v36, %v3663_v53  ;;  %v1447_v30 = vstv %s3737_s25 }
 0x121   :  { %v1431_v23 = vmul.f32 %v1430_v20, %v1427_v55  ;;  %v1412_v31 = vsub.f32 %v1405_v52, %v1411_v13  ;;  %v1421_v50 = vmul.f32 %v1420_v58, %v1418_v27  ;;  %v1443_v34 = vsub.f32 %v1440_v39, %v1442_v57 }
 0x122   :  { %v1446_v44 = vsub.f32 %v1444_v33, %v1445_v19  ;;  %v1320_v28 = vsub.f32 %v1310_v7, %v1319_v54  ;;  %v1336_v49 = vmin.f32 %v1295_v15, %v1305_v5  ;;  %v1403_v43 = vmul.f32 %v1402_v10, %v3671_v11 }
 0x123   :  { %v1432_v56 = vmax.f32 %v1431_v23, 0.0  ;;  %v1413_v0 = vmul.f32 %v1412_v31, %v1409_v17  ;;  %v1422_v9 = vsub.f32 %v1419_v41, %v1421_v50  ;;  %v1435_v53 = vstv %s3751_s26 }
 0x124   :  { %v1448_v59 = vsub.f32 %v1447_v30, %v1443_v34  ;;  %v1401_v21 = vadd.f32 %v1400_v4, %v1398_v3  ;;  %v1428_v61 = vsub.f32 %v3747_v62, %v1405_v52  ;;  %v1434_v58 = vadd.f32 %v1427_v55, %v1427_v55 }
 0x125   :  { %v1433_v63 = vmin.f32 %v1432_v56, 1.0  ;;  %v1103_v11 = vmin.f32 %v3488_v18, %v1101_v38  ;;  %v1220_v32 = vsel %vm3769_vm4, %v3584_v42, %v3730_v6  ;;  %v1423_v15 = vmul.f32 %v1422_v9, %v1418_v27 }
 0x126   :  { %v1449_v7 = vsub.f32 %v1448_v59, %v1446_v44  ;;  %v1337_v5 = vmin.f32 %v1336_v49, %v1320_v28  ;;  %v1338_v2 = vmul.f32 %v3732_v48, %v3732_v48  ;;  %v1414_v54 = vsub.f32 %v3747_v62, %v1413_v0 }
 0x127   :  { %v1436_v36 = vmul.f32 %v1435_v53, %v1433_v63  ;;  %v1424_v60 = vsub.f32 %v3747_v62, %v1423_v15  ;;  %vm1451_vm8 = vcmp.ge.f32.partialorder %v1443_v34, 0.0  ;;  %v1404_v18 = vadd.f32 %v1403_v43, %v1401_v21 }
 0x128   :  { %vm1450_vm7 = vcmp.ge.f32.partialorder %v1449_v7, 0.0  ;;  %v1429_v16 = vadd.f32 %v1428_v61, %v1410_v40  ;;  %v749_v42 = vmax.f32 %v3486_v24, %v2906_v22  ;;  %v1222_v6 = vmin.f32 %v1103_v11, %v1220_v32 }
 0x129   :  { %v1437_v38 = vsub.f32 %v1434_v58, %v1436_v36  ;;  %v1339_v26 = vsel %vm3795_vm6, %v1338_v2, %v1337_v5  ;;  %vm1452_vm9 = vmand %vm1450_vm7, %vm1451_vm8  ;;  %vm1453_vm10 = vcmp.ge.f32.partialorder %v1446_v44, 0.0  ;;  %v1455_v47 = vmin.f32 %v1414_v54, %v1424_v60 }
 0x12a   :  { %v1457_v10 = vmul.f32 %v1404_v18, %v1404_v18  ;;  %v868_v62 = vmax.f32 %v749_v42, %v3068_v14  ;;  %v1341_v52 = vmin.f32 %v1222_v6, %v1339_v26  ;;  %vm1454_vm11 = vmand %vm1452_vm9, %vm1453_vm10  ;;  %v1476_v33 = vstv %s1465_s27 }
 0x12b   :  { %v1438_v8 = vmul.f32 %v1437_v38, %v1433_v63 }
 0x12c   :  { %v987_v17 = vmax.f32 %v868_v62, %v3222_v35  ;;  %v1479_v35 = vstv %s1765_s28 }
 0x12d   :  { %v1439_v12 = vsub.f32 %v1429_v16, %v1438_v8 }
 0x12e   :  { %v1106_v24 = vmax.f32 %v987_v17, %v3385_v45 }
 0x12f   :  { %v1456_v37 = vmin.f32 %v1455_v47, %v1439_v12 }
 0x130   :  { %v1225_v20 = vmax.f32 %v1106_v24, %v3527_v46 }
 0x131   :  { %v1458_v40 = vsel %vm1454_vm11, %v1457_v10, %v1456_v37 }
 0x132   :  { %v1460_v29 = vmin.f32 %v1341_v52, %v1458_v40  ;;  %v1344_v39 = vmax.f32 %v1225_v20, %v3732_v48 }
 0x134   :  { %v1468_v22 = vmax.f32 %v1460_v29, 0.0  ;;  %v1463_v25 = vmax.f32 %v1344_v39, %v1404_v18 }
 0x136   :  { %1768 = vrsqrt.f32 %v1468_v22  ;;  %vm1471_vm12 = vcmp.eq.f32.partialorder %v1468_v22, inf  ;;  %v1474_v14 = vand.u32 2147483648, %v1468_v22  ;;  %vm1473_vm13 = vcmp.eq.f32.partialorder %v1468_v22, 0.0 }
 0x137   :  { %vm1480_vm14 = vcmp.le.f32.partialorder %v1463_v25, %v1479_v35 }
 0x140   :  { %v1769_v41 = vpop.eup %1768 }
 0x141   :  { %v1470_v55 = vmul.f32 %v1769_v41, %v1468_v22 }
 0x143   :  { %v1472_v13 = vsel %vm1471_vm12, %v1468_v22, %v1470_v55 }
 0x144   :  { %v1475_v27 = vsel %vm1473_vm13, %v1474_v14, %v1472_v13 }
 0x145   :  { %v1477_v57 = vmul.f32 %v1476_v33, %v1475_v27 }
 0x147   :  { %v1481_v45 = vsub.f32 0.0, %v1477_v57 }
 0x149   :  { %v1482_v19 = vsel %vm1480_vm14, %v1481_v45, %v1477_v57 }
 0x14a   :  { %1483 = vst [vmem:[%s3815_s3] sm:$0xff] %v1482_v19 }
 0x14b   :  { %1488 = vsyncpa [#allocation5], 1 }
 0x14c   :  { %1489 = vsyncpa [#allocation7], 1 }

</bundles_post_ra>
